<compile_context>
chip_gen: v7x
topology: tpu7x:2x2x1
jax: 0.10.0
libtpu: 0.0.40
codegen_flags: <defaults>
</compile_context>

<pallas_src>
import math

import jax
import jax.numpy as jnp
from jax import lax
from jax.experimental import pallas as pl
from jax.experimental.pallas import tpu as pltpu


_MASK_VALUE = -1e30  # large finite negative; exp(_MASK_VALUE - m) == 0 in f32


def _vmem_limit_bytes():
    """~96 MiB on v5e/v6e (128 MiB physical VMEM), ~48 MiB on v7x (64 MiB)."""
    try:
        cap = int(pltpu.get_tpu_info().vmem_capacity_bytes)
        return int(min(96 * 1024 * 1024, max(48 * 1024 * 1024, cap * 3 // 4)))
    except Exception:
        return 48 * 1024 * 1024


def _pick_tile(dim, candidates):
    """Largest candidate that exactly divides `dim`, else the full dim."""
    for t in candidates:
        if t <= dim and dim % t == 0:
            return t
    return dim


# ----------------------------------------------------------------------------
# Tiled linear:  out = x @ w_kn + b     (w_kn pre-transposed (K, N), bf16)
# ----------------------------------------------------------------------------
def _linear_kernel(x_ref, w_ref, b_ref, o_ref, acc_ref):
    @pl.when(pl.program_id(2) == 0)
    def _init():
        acc_ref[...] = jnp.zeros(acc_ref.shape, jnp.float32)

    # bf16 MXU operands, f32 accumulation.
    acc_ref[...] += jnp.dot(
        x_ref[...].astype(jnp.bfloat16),
        w_ref[...],
        preferred_element_type=jnp.float32,
    )

    @pl.when(pl.program_id(2) == pl.num_programs(2) - 1)
    def _finalize():
        o_ref[...] = (acc_ref[...] + b_ref[...]).astype(o_ref.dtype)


def linear_pallas(x2d, w_kn, b, out_dtype):
    M, K = x2d.shape
    K2, N = w_kn.shape
    assert K == K2
    b2d = b.reshape(1, N).astype(jnp.float32)

    tm = _pick_tile(M, (1024, 768, 512, 384, 256, 128, 64, 32, 16, 8))
    tn = _pick_tile(N, (768, 512, 384, 256, 128))
    tk = _pick_tile(K, (768, 512, 384, 256, 128))
    grid = (M // tm, N // tn, K // tk)

    # TODO(synk): on v7x, an fp8 weight path (bf16 activations, f32 accum)
    # would halve weight traffic; not implemented (not portable to v5e/v6e).
    return pl.pallas_call(
        _linear_kernel,
        out_shape=jax.ShapeDtypeStruct((M, N), out_dtype),
        grid=grid,
        in_specs=[
            pl.BlockSpec((tm, tk), lambda i, j, k: (i, k)),
            pl.BlockSpec((tk, tn), lambda i, j, k: (k, j)),
            pl.BlockSpec((1, tn), lambda i, j, k: (0, j)),
        ],
        out_specs=pl.BlockSpec((tm, tn), lambda i, j, k: (i, j)),
        scratch_shapes=[pltpu.VMEM((tm, tn), jnp.float32)],
        compiler_params=pltpu.CompilerParams(
            dimension_semantics=("parallel", "parallel", "arbitrary"),
            vmem_limit_bytes=_vmem_limit_bytes(),
        ),
    )(x2d, w_kn, b2d)


# ----------------------------------------------------------------------------
# Fused all-heads causal flash attention reading directly from (B, T, 3C).
# ----------------------------------------------------------------------------
def fused_causal_mha(qkv, n_head, tile=None):
    """qkv: (B, T, 3C) bf16 (c_attn output, [q | k | v] along the last axis).
    Returns (B, T, C) bf16."""
    B, T, C3 = qkv.shape
    C = C3 // 3
    H = n_head
    D = C // H
    assert C % 128 == 0, (
        "fused attention slices C-wide column blocks out of (B, T, 3C); "
        "lane tiling requires d_model % 128 == 0")
    # TODO(synk): for d_model not a multiple of 128, fall back to a per-head
    # (B*H, T, D) layout with explicit head split/merge.
    if tile is None:
        tile = _pick_tile(T, (256, 128, 64, 32, 16, 8))
    assert T % tile == 0
    n_q = T // tile
    scale = 1.0 / math.sqrt(D)

    # Flattened lower-triangular (qi, ki) schedule (scalar-prefetch tables):
    # the masked upper triangle is never visited at all.
    qi_list, ki_list = [], []
    for qi in range(n_q):
        for ki in range(qi + 1):
            qi_list.append(qi)
            ki_list.append(ki)
    qi_tbl = jnp.asarray(qi_list, dtype=jnp.int32)
    ki_tbl = jnp.asarray(ki_list, dtype=jnp.int32)
    n_steps = len(qi_list)

    def kernel(qi_ref, ki_ref, q_ref, k_ref, v_ref, o_ref,
               qs_ref, m_ref, l_ref, acc_ref):
        # q_ref/k_ref/v_ref/o_ref: (tile, C) after squeezing the batch dim.
        t = pl.program_id(1)
        qi = qi_ref[t]
        ki = ki_ref[t]

        @pl.when(ki == 0)
        def _init():
            # Hoisted once per q tile: scale (f32) then cast to bf16 MXU input.
            qs_ref[...] = (q_ref[...].astype(jnp.float32) * scale
                           ).astype(jnp.bfloat16)
            m_ref[...] = jnp.full(m_ref.shape, -jnp.inf, jnp.float32)
            l_ref[...] = jnp.zeros(l_ref.shape, jnp.float32)
            acc_ref[...] = jnp.zeros(acc_ref.shape, jnp.float32)

        def update_head(h, masked):
            q_h = qs_ref[:, h * D:(h + 1) * D]          # (tile, D) bf16
            k_h = k_ref[:, h * D:(h + 1) * D]           # (tile, D) bf16
            # QK^T without materializing a transpose (contract dim 1 of both).
            s = lax.dot_general(
                q_h, k_h,
                dimension_numbers=(((1,), (1,)), ((), ())),
                preferred_element_type=jnp.float32)     # (tile, tile) f32
            if masked:
                # Diagonal block (qi == ki, tq == tk): local indices coincide
                # with global causal offsets.
                row = lax.broadcasted_iota(jnp.int32, (tile, tile), 0)
                col = lax.broadcasted_iota(jnp.int32, (tile, tile), 1)
                s = jnp.where(col <= row, s, _MASK_VALUE)
            m_prev = m_ref[h]
            m_new = jnp.maximum(m_prev, jnp.max(s, axis=-1, keepdims=True))
            alpha = jnp.exp(m_prev - m_new)             # f32 softmax stats
            p = jnp.exp(s - m_new)
            # TODO(synk): on v6e/v7x the exp could run in bf16 (EUP bf16);
            # kept f32 so the same kernel is also correct/fast on v5e.
            l_ref[h] = alpha * l_ref[h] + jnp.sum(p, axis=-1, keepdims=True)
            v_h = v_ref[:, h * D:(h + 1) * D]
            acc_ref[h] = alpha * acc_ref[h] + jnp.dot(
                p.astype(jnp.bfloat16), v_h,
                preferred_element_type=jnp.float32)
            m_ref[h] = m_new

        @pl.when(ki < qi)          # fully unmasked kv block
        def _full_block():
            for h in range(H):
                update_head(h, masked=False)

        @pl.when(ki == qi)         # diagonal block: mask + finalize q tile
        def _diag_block():
            for h in range(H):
                update_head(h, masked=True)
            for h in range(H):
                inv_l = pl.reciprocal(l_ref[h], approx=False)   # exact
                o_ref[:, h * D:(h + 1) * D] = (
                    acc_ref[h] * inv_l).astype(o_ref.dtype)

    # Q / K / V are C-wide column blocks (block-col 0 / 1 / 2) of the same
    # (B, T, 3C) array; output is a lane-dense (B, T, C) slab.
    q_spec = pl.BlockSpec((None, tile, C), lambda b, t, qi, ki: (b, qi[t], 0))
    k_spec = pl.BlockSpec((None, tile, C), lambda b, t, qi, ki: (b, ki[t], 1))
    v_spec = pl.BlockSpec((None, tile, C), lambda b, t, qi, ki: (b, ki[t], 2))
    o_spec = pl.BlockSpec((None, tile, C), lambda b, t, qi, ki: (b, qi[t], 0))

    # TODO(synk): decouple tq/tk (larger q tile cuts K/V HBM re-reads) and add
    # pipeline_mode=pl.Buffered(3) on k/v for bandwidth-poor v5e.
    return pl.pallas_call(
        kernel,
        out_shape=jax.ShapeDtypeStruct((B, T, C), jnp.bfloat16),
        grid_spec=pltpu.PrefetchScalarGridSpec(
            num_scalar_prefetch=2,
            grid=(B, n_steps),
            in_specs=[q_spec, k_spec, v_spec],
            out_specs=o_spec,
            scratch_shapes=[
                pltpu.VMEM((tile, C), jnp.bfloat16),    # scaled q (hoisted)
                pltpu.VMEM((H, tile, 1), jnp.float32),  # running max m
                pltpu.VMEM((H, tile, 1), jnp.float32),  # running denom l
                pltpu.VMEM((H, tile, D), jnp.float32),  # unnormalized output
            ],
        ),
        compiler_params=pltpu.CompilerParams(
            dimension_semantics=("parallel", "arbitrary"),
            vmem_limit_bytes=_vmem_limit_bytes(),
        ),
    )(qi_tbl, ki_tbl, qkv, qkv, qkv)


# ----------------------------------------------------------------------------
# Module forward (only free reshapes between the Pallas calls)
# ----------------------------------------------------------------------------
def causal_self_attention(x, params, n_head, attn_tile=None):
    B, T, C = x.shape
    assert C % n_head == 0

    x2d = x.reshape(B * T, C)
    # c_attn: (B*T, C) -> (B*T, 3C); bf16 output feeds attention directly.
    qkv = linear_pallas(x2d, params["w_attn_t"], params["b_attn"],
                        out_dtype=jnp.bfloat16)
    qkv = qkv.reshape(B, T, 3 * C)                     # free reshape

    # Fused flash causal attention over all heads (no XLA head transposes).
    y = fused_causal_mha(qkv, n_head, tile=attn_tile)  # (B, T, C) bf16

    # c_proj: (B*T, C) -> (B*T, C); final output back in f32 like the module.
    out = linear_pallas(y.reshape(B * T, C), params["w_proj_t"],
                        params["b_proj"], out_dtype=jnp.float32)
    return out.reshape(B, T, C)


# ----------------------------------------------------------------------------
# Reference (pure JAX, f32) for correctness check
# ----------------------------------------------------------------------------
def causal_self_attention_ref(x, params, n_head):
    B, T, C = x.shape
    D = C // n_head
    qkv = x @ params["w_attn"].T + params["b_attn"]
    q, k, v = jnp.split(qkv, 3, axis=2)
    q = q.reshape(B, T, n_head, D).transpose(0, 2, 1, 3)
    k = k.reshape(B, T, n_head, D).transpose(0, 2, 1, 3)
    v = v.reshape(B, T, n_head, D).transpose(0, 2, 1, 3)
    s = jnp.einsum("bhtd,bhsd->bhts", q, k) / math.sqrt(D)
    mask = jnp.tril(jnp.ones((T, T), dtype=bool))
    s = jnp.where(mask, s, -jnp.inf)
    p = jax.nn.softmax(s, axis=-1)
    y = jnp.einsum("bhts,bhsd->bhtd", p, v)
    y = y.transpose(0, 2, 1, 3).reshape(B, T, C)
    return y @ params["w_proj"].T + params["b_proj"]


# ----------------------------------------------------------------------------
# Parameter init (mimics nn.Linear default uniform init) + one-time prep
# ----------------------------------------------------------------------------
def init_params(key, d_model):
    k1, k2, k3, k4 = jax.random.split(key, 4)
    bound = 1.0 / math.sqrt(d_model)
    return {
        "w_attn": jax.random.uniform(
            k1, (3 * d_model, d_model), jnp.float32, -bound, bound),
        "b_attn": jax.random.uniform(
            k2, (3 * d_model,), jnp.float32, -bound, bound),
        "w_proj": jax.random.uniform(
            k3, (d_model, d_model), jnp.float32, -bound, bound),
        "b_proj": jax.random.uniform(
            k4, (d_model,), jnp.float32, -bound, bound),
    }


def prepare_params(params):
    """One-time: pre-transpose weights to (K, N) and pre-cast to bf16 so the
    per-call path contains no XLA transpose / cast over the weights."""
    return {
        "w_attn_t": jnp.transpose(params["w_attn"]).astype(jnp.bfloat16),
        "b_attn": params["b_attn"].astype(jnp.float32),
        "w_proj_t": jnp.transpose(params["w_proj"]).astype(jnp.bfloat16),
        "b_proj": params["b_proj"].astype(jnp.float32),
    }


if __name__ == "__main__":
    # Small but tiling-friendly shapes: d_model=256, 2 heads (D=128), T=64.
    # attn_tile=16 gives a 4x4 lower-triangular block schedule (10 steps),
    # exercising init / off-diagonal / diagonal-finalize paths.
    B, T, C, H = 2, 64, 256, 2

    key = jax.random.PRNGKey(0)
    kx, kp = jax.random.split(key)
    x = jax.random.normal(kx, (B, T, C), jnp.float32)
    params = init_params(kp, C)
    kernel_params = prepare_params(params)

    # TODO(synk): the dropout arg of the PyTorch module is unused in its
    # forward (no F.dropout applied), so it is intentionally omitted here.

    fwd = jax.jit(causal_self_attention, static_argnums=(2, 3))
    out = jax.block_until_ready(fwd(x, kernel_params, H, 16))

    ref = causal_self_attention_ref(x, params, H)
    assert out.shape == (B, T, C)
    max_err = float(jnp.max(jnp.abs(out - ref)))
    # bf16 MXU operands (with f32 accumulation and f32 softmax statistics)
    # give ~1e-2 absolute error vs the f32 reference for O(1) activations.
    assert jnp.allclose(out, ref, atol=5e-2, rtol=5e-2), max_err

    print("KERNEL_OK")
</pallas_src>

<mosaic_0001>
module attributes {stable_mosaic.version = 11 : i64} {
  func.func @_linear_kernel(%arg0: i32, %arg1: i32, %arg2: i32, %arg3: memref<128x256xf32, #tpu.memory_space<vmem>>, %arg4: memref<256x768xbf16, #tpu.memory_space<vmem>>, %arg5: memref<1x768xf32, #tpu.memory_space<vmem>>, %arg6: memref<128x768xbf16, #tpu.memory_space<vmem>>, %arg7: memref<128x768xf32, #tpu.memory_space<vmem>>) attributes {dimension_semantics = [#tpu.dimension_semantics<parallel>, #tpu.dimension_semantics<parallel>, #tpu.dimension_semantics<arbitrary>], iteration_bounds = array<i64: 1, 1, 1>, scalar_prefetch = 0 : i64, scratch_operands = 1 : i64, tpu.core_type = #tpu.core_type<tc>, window_params = [{transform_indices = @transform_0, window_bounds = array<i64: 128, 256>}, {transform_indices = @transform_1, window_bounds = array<i64: 256, 768>}, {transform_indices = @transform_2, window_bounds = array<i64: 1, 768>}, {transform_indices = @transform_3, window_bounds = array<i64: 128, 768>}]} {
    %c0_i32 = arith.constant 0 : i32
    %0 = arith.cmpi eq, %arg2, %c0_i32 : i32
    %1 = arith.extui %0 : i1 to i32
    %c0_i32_0 = arith.constant 0 : i32
    %2 = arith.cmpi ne, %1, %c0_i32_0 : i32
    scf.if %2 {
      %cst_10 = arith.constant 0.000000e+00 : f32
      %13 = vector.broadcast %cst_10 : f32 to vector<128x768xf32>
      %c0_11 = arith.constant 0 : index
      %c0_12 = arith.constant 0 : index
      %14 = vector.load %arg7[%c0_11, %c0_12] : memref<128x768xf32, #tpu.memory_space<vmem>>, vector<128x768xf32>
      tpu.vector_store %arg7[%c0_11, %c0_12], %13 {strides = array<i32>} : memref<128x768xf32, #tpu.memory_space<vmem>>, vector<128x768xf32>,
    } else {
    }
    %c0 = arith.constant 0 : index
    %c0_1 = arith.constant 0 : index
    %3 = vector.load %arg7[%c0, %c0_1] : memref<128x768xf32, #tpu.memory_space<vmem>>, vector<128x768xf32>
    %c0_2 = arith.constant 0 : index
    %c0_3 = arith.constant 0 : index
    %4 = vector.load %arg3[%c0_2, %c0_3] : memref<128x256xf32, #tpu.memory_space<vmem>>, vector<128x256xf32>
    %5 = arith.truncf %4 : vector<128x256xf32> to vector<128x256xbf16>
    %c0_4 = arith.constant 0 : index
    %c0_5 = arith.constant 0 : index
    %6 = vector.load %arg4[%c0_4, %c0_5] : memref<256x768xbf16, #tpu.memory_space<vmem>>, vector<256x768xbf16>
    %cst = arith.constant dense<0.000000e+00> : vector<128x768xf32>
    %7 = tpu.matmul %5, %6, %cst {dimension_numbers = #tpu.dot_dimension_numbers<[1], [0], [0], [1], [0, 0, 1, 1], [], []>} : vector<128x256xbf16>, vector<256x768xbf16>, vector<128x768xf32> -> vector<128x768xf32>
    %8 = arith.addf %3, %7 : vector<128x768xf32>
    %c0_6 = arith.constant 0 : index
    %c0_7 = arith.constant 0 : index
    %9 = vector.load %arg7[%c0_6, %c0_7] : memref<128x768xf32, #tpu.memory_space<vmem>>, vector<128x768xf32>
    tpu.vector_store %arg7[%c0_6, %c0_7], %8 {strides = array<i32>} : memref<128x768xf32, #tpu.memory_space<vmem>>, vector<128x768xf32>,
    %c0_i32_8 = arith.constant 0 : i32
    %10 = arith.cmpi eq, %arg2, %c0_i32_8 : i32
    %11 = arith.extui %10 : i1 to i32
    %c0_i32_9 = arith.constant 0 : i32
    %12 = arith.cmpi ne, %11, %c0_i32_9 : i32
    scf.if %12 {
      %c0_10 = arith.constant 0 : index
      %c0_11 = arith.constant 0 : index
      %13 = vector.load %arg7[%c0_10, %c0_11] : memref<128x768xf32, #tpu.memory_space<vmem>>, vector<128x768xf32>
      %c0_12 = arith.constant 0 : index
      %c0_13 = arith.constant 0 : index
      %14 = vector.load %arg5[%c0_12, %c0_13] : memref<1x768xf32, #tpu.memory_space<vmem>>, vector<1x768xf32>
      %15 = vector.broadcast %14 : vector<1x768xf32> to vector<128x768xf32>
      %16 = arith.addf %13, %15 : vector<128x768xf32>
      %17 = arith.truncf %16 : vector<128x768xf32> to vector<128x768xbf16>
      %c0_14 = arith.constant 0 : index
      %c0_15 = arith.constant 0 : index
      %18 = vector.load %arg6[%c0_14, %c0_15] : memref<128x768xbf16, #tpu.memory_space<vmem>>, vector<128x768xbf16>
      tpu.vector_store %arg6[%c0_14, %c0_15], %17 {strides = array<i32>} : memref<128x768xbf16, #tpu.memory_space<vmem>>, vector<128x768xbf16>,
    } else {
    }
    return
  }
  func.func @transform_0(%arg0: i32, %arg1: i32, %arg2: i32) -> (i32, i32) {
    %c0_i32 = arith.constant 0 : i32
    return %arg0, %arg2 : i32, i32
  }
  func.func @transform_1(%arg0: i32, %arg1: i32, %arg2: i32) -> (i32, i32) {
    %c0_i32 = arith.constant 0 : i32
    return %arg2, %arg1 : i32, i32
  }
  func.func @transform_2(%arg0: i32, %arg1: i32, %arg2: i32) -> (i32, i32) {
    %c0_i32 = arith.constant 0 : i32
    %c0_i32_0 = arith.constant 0 : i32
    return %c0_i32, %arg1 : i32, i32
  }
  func.func @transform_3(%arg0: i32, %arg1: i32, %arg2: i32) -> (i32, i32) {
    %c0_i32 = arith.constant 0 : i32
    return %arg0, %arg1 : i32, i32
  }
}

module attributes {stable_mosaic.version = 11 : i64} {
  func.func @_linear_kernel(%arg0: i32, %arg1: i32, %arg2: i32, %arg3: memref<128x256xbf16, #tpu.memory_space<vmem>>, %arg4: memref<256x256xbf16, #tpu.memory_space<vmem>>, %arg5: memref<1x256xf32, #tpu.memory_space<vmem>>, %arg6: memref<128x256xf32, #tpu.memory_space<vmem>>, %arg7: memref<128x256xf32, #tpu.memory_space<vmem>>) attributes {dimension_semantics = [#tpu.dimension_semantics<parallel>, #tpu.dimension_semantics<parallel>, #tpu.dimension_semantics<arbitrary>], iteration_bounds = array<i64: 1, 1, 1>, scalar_prefetch = 0 : i64, scratch_operands = 1 : i64, tpu.core_type = #tpu.core_type<tc>, window_params = [{transform_indices = @transform_0, window_bounds = array<i64: 128, 256>}, {transform_indices = @transform_1, window_bounds = array<i64: 256, 256>}, {transform_indices = @transform_2, window_bounds = array<i64: 1, 256>}, {transform_indices = @transform_3, window_bounds = array<i64: 128, 256>}]} {
    %c0_i32 = arith.constant 0 : i32
    %0 = arith.cmpi eq, %arg2, %c0_i32 : i32
    %1 = arith.extui %0 : i1 to i32
    %c0_i32_0 = arith.constant 0 : i32
    %2 = arith.cmpi ne, %1, %c0_i32_0 : i32
    scf.if %2 {
      %cst_10 = arith.constant 0.000000e+00 : f32
      %12 = vector.broadcast %cst_10 : f32 to vector<128x256xf32>
      %c0_11 = arith.constant 0 : index
      %c0_12 = arith.constant 0 : index
      %13 = vector.load %arg7[%c0_11, %c0_12] : memref<128x256xf32, #tpu.memory_space<vmem>>, vector<128x256xf32>
      tpu.vector_store %arg7[%c0_11, %c0_12], %12 {strides = array<i32>} : memref<128x256xf32, #tpu.memory_space<vmem>>, vector<128x256xf32>,
    } else {
    }
    %c0 = arith.constant 0 : index
    %c0_1 = arith.constant 0 : index
    %3 = vector.load %arg7[%c0, %c0_1] : memref<128x256xf32, #tpu.memory_space<vmem>>, vector<128x256xf32>
    %c0_2 = arith.constant 0 : index
    %c0_3 = arith.constant 0 : index
    %4 = vector.load %arg3[%c0_2, %c0_3] : memref<128x256xbf16, #tpu.memory_space<vmem>>, vector<128x256xbf16>
    %c0_4 = arith.constant 0 : index
    %c0_5 = arith.constant 0 : index
    %5 = vector.load %arg4[%c0_4, %c0_5] : memref<256x256xbf16, #tpu.memory_space<vmem>>, vector<256x256xbf16>
    %cst = arith.constant dense<0.000000e+00> : vector<128x256xf32>
    %6 = tpu.matmul %4, %5, %cst {dimension_numbers = #tpu.dot_dimension_numbers<[1], [0], [0], [1], [0, 0, 1, 1], [], []>} : vector<128x256xbf16>, vector<256x256xbf16>, vector<128x256xf32> -> vector<128x256xf32>
    %7 = arith.addf %3, %6 : vector<128x256xf32>
    %c0_6 = arith.constant 0 : index
    %c0_7 = arith.constant 0 : index
    %8 = vector.load %arg7[%c0_6, %c0_7] : memref<128x256xf32, #tpu.memory_space<vmem>>, vector<128x256xf32>
    tpu.vector_store %arg7[%c0_6, %c0_7], %7 {strides = array<i32>} : memref<128x256xf32, #tpu.memory_space<vmem>>, vector<128x256xf32>,
    %c0_i32_8 = arith.constant 0 : i32
    %9 = arith.cmpi eq, %arg2, %c0_i32_8 : i32
    %10 = arith.extui %9 : i1 to i32
    %c0_i32_9 = arith.constant 0 : i32
    %11 = arith.cmpi ne, %10, %c0_i32_9 : i32
    scf.if %11 {
      %c0_10 = arith.constant 0 : index
      %c0_11 = arith.constant 0 : index
      %12 = vector.load %arg7[%c0_10, %c0_11] : memref<128x256xf32, #tpu.memory_space<vmem>>, vector<128x256xf32>
      %c0_12 = arith.constant 0 : index
      %c0_13 = arith.constant 0 : index
      %13 = vector.load %arg5[%c0_12, %c0_13] : memref<1x256xf32, #tpu.memory_space<vmem>>, vector<1x256xf32>
      %14 = vector.broadcast %13 : vector<1x256xf32> to vector<128x256xf32>
      %15 = arith.addf %12, %14 : vector<128x256xf32>
      %c0_14 = arith.constant 0 : index
      %c0_15 = arith.constant 0 : index
      %16 = vector.load %arg6[%c0_14, %c0_15] : memref<128x256xf32, #tpu.memory_space<vmem>>, vector<128x256xf32>
      tpu.vector_store %arg6[%c0_14, %c0_15], %15 {strides = array<i32>} : memref<128x256xf32, #tpu.memory_space<vmem>>, vector<128x256xf32>,
    } else {
    }
    return
  }
  func.func @transform_0(%arg0: i32, %arg1: i32, %arg2: i32) -> (i32, i32) {
    %c0_i32 = arith.constant 0 : i32
    return %arg0, %arg2 : i32, i32
  }
  func.func @transform_1(%arg0: i32, %arg1: i32, %arg2: i32) -> (i32, i32) {
    %c0_i32 = arith.constant 0 : i32
    return %arg2, %arg1 : i32, i32
  }
  func.func @transform_2(%arg0: i32, %arg1: i32, %arg2: i32) -> (i32, i32) {
    %c0_i32 = arith.constant 0 : i32
    %c0_i32_0 = arith.constant 0 : i32
    return %c0_i32, %arg1 : i32, i32
  }
  func.func @transform_3(%arg0: i32, %arg1: i32, %arg2: i32) -> (i32, i32) {
    %c0_i32 = arith.constant 0 : i32
    return %arg0, %arg1 : i32, i32
  }
}

module attributes {stable_mosaic.version = 11 : i64} {
  func.func @kernel(%arg0: i32, %arg1: i32, %arg2: memref<10xi32, #tpu.memory_space<smem>>, %arg3: memref<10xi32, #tpu.memory_space<smem>>, %arg4: memref<1x16x256xbf16, #tpu.memory_space<vmem>>, %arg5: memref<1x16x256xbf16, #tpu.memory_space<vmem>>, %arg6: memref<1x16x256xbf16, #tpu.memory_space<vmem>>, %arg7: memref<1x16x256xbf16, #tpu.memory_space<vmem>>, %arg8: memref<16x256xbf16, #tpu.memory_space<vmem>>, %arg9: memref<2x16x1xf32, #tpu.memory_space<vmem>>, %arg10: memref<2x16x1xf32, #tpu.memory_space<vmem>>, %arg11: memref<2x16x128xf32, #tpu.memory_space<vmem>>) attributes {dimension_semantics = [#tpu.dimension_semantics<parallel>, #tpu.dimension_semantics<arbitrary>], iteration_bounds = array<i64: 2, 10>, scalar_prefetch = 2 : i64, scratch_operands = 4 : i64, tpu.core_type = #tpu.core_type<tc>, window_params = [{transform_indices = @transform_0, window_bounds = array<i64: 1, 16, 256>}, {transform_indices = @transform_1, window_bounds = array<i64: 1, 16, 256>}, {transform_indices = @transform_2, window_bounds = array<i64: 1, 16, 256>}, {transform_indices = @transform_3, window_bounds = array<i64: 1, 16, 256>}]} {
    %0 = arith.index_cast %arg1 : i32 to index
    %1 = memref.load %arg2[%0] : memref<10xi32, #tpu.memory_space<smem>>
    %2 = arith.index_cast %arg1 : i32 to index
    %3 = memref.load %arg3[%2] : memref<10xi32, #tpu.memory_space<smem>>
    %c0_i32 = arith.constant 0 : i32
    %4 = arith.cmpi eq, %3, %c0_i32 : i32
    %5 = arith.extui %4 : i1 to i32
    %c0_i32_0 = arith.constant 0 : i32
    %6 = arith.cmpi ne, %5, %c0_i32_0 : i32
    scf.if %6 {
      %c0 = arith.constant 0 : index
      %c0_3 = arith.constant 0 : index
      %c0_4 = arith.constant 0 : index
      %13 = vector.load %arg4[%c0, %c0_3, %c0_4] : memref<1x16x256xbf16, #tpu.memory_space<vmem>>, vector<1x16x256xbf16>
      %14 = vector.shape_cast %13 : vector<1x16x256xbf16> to vector<16x256xbf16>
      %15 = arith.extf %14 : vector<16x256xbf16> to vector<16x256xf32>
      %cst = arith.constant 0.0883883461 : f32
      %16 = vector.broadcast %cst : f32 to vector<16x256xf32>
      %17 = arith.mulf %15, %16 : vector<16x256xf32>
      %18 = arith.truncf %17 : vector<16x256xf32> to vector<16x256xbf16>
      %c0_5 = arith.constant 0 : index
      %c0_6 = arith.constant 0 : index
      %19 = vector.load %arg8[%c0_5, %c0_6] : memref<16x256xbf16, #tpu.memory_space<vmem>>, vector<16x256xbf16>
      tpu.vector_store %arg8[%c0_5, %c0_6], %18 {strides = array<i32>} : memref<16x256xbf16, #tpu.memory_space<vmem>>, vector<16x256xbf16>,
      %cst_7 = arith.constant 0xFF800000 : f32
      %20 = vector.broadcast %cst_7 : f32 to vector<2x16x1xf32>
      %c0_8 = arith.constant 0 : index
      %c0_9 = arith.constant 0 : index
      %c0_10 = arith.constant 0 : index
      %21 = vector.load %arg9[%c0_8, %c0_9, %c0_10] : memref<2x16x1xf32, #tpu.memory_space<vmem>>, vector<2x16x1xf32>
      tpu.vector_store %arg9[%c0_8, %c0_9, %c0_10], %20 {strides = array<i32>} : memref<2x16x1xf32, #tpu.memory_space<vmem>>, vector<2x16x1xf32>,
      %cst_11 = arith.constant 0.000000e+00 : f32
      %22 = vector.broadcast %cst_11 : f32 to vector<2x16x1xf32>
      %c0_12 = arith.constant 0 : index
      %c0_13 = arith.constant 0 : index
      %c0_14 = arith.constant 0 : index
      %23 = vector.load %arg10[%c0_12, %c0_13, %c0_14] : memref<2x16x1xf32, #tpu.memory_space<vmem>>, vector<2x16x1xf32>
      tpu.vector_store %arg10[%c0_12, %c0_13, %c0_14], %22 {strides = array<i32>} : memref<2x16x1xf32, #tpu.memory_space<vmem>>, vector<2x16x1xf32>,
      %cst_15 = arith.constant 0.000000e+00 : f32
      %24 = vector.broadcast %cst_15 : f32 to vector<2x16x128xf32>
      %c0_16 = arith.constant 0 : index
      %c0_17 = arith.constant 0 : index
      %c0_18 = arith.constant 0 : index
      %25 = vector.load %arg11[%c0_16, %c0_17, %c0_18] : memref<2x16x128xf32, #tpu.memory_space<vmem>>, vector<2x16x128xf32>
      tpu.vector_store %arg11[%c0_16, %c0_17, %c0_18], %24 {strides = array<i32>} : memref<2x16x128xf32, #tpu.memory_space<vmem>>, vector<2x16x128xf32>,
    } else {
    }
    %7 = arith.cmpi slt, %3, %1 : i32
    %8 = arith.extui %7 : i1 to i32
    %c0_i32_1 = arith.constant 0 : i32
    %9 = arith.cmpi ne, %8, %c0_i32_1 : i32
    scf.if %9 {
      %c0 = arith.constant 0 : index
      %c0_3 = arith.constant 0 : index
      %13 = vector.load %arg8[%c0, %c0_3] : memref<16x256xbf16, #tpu.memory_space<vmem>>, vector<16x128xbf16>
      %c0_4 = arith.constant 0 : index
      %c0_5 = arith.constant 0 : index
      %c0_6 = arith.constant 0 : index
      %14 = vector.load %arg5[%c0_4, %c0_5, %c0_6] : memref<1x16x256xbf16, #tpu.memory_space<vmem>>, vector<1x16x128xbf16>
      %15 = vector.shape_cast %14 : vector<1x16x128xbf16> to vector<16x128xbf16>
      %cst = arith.constant dense<0.000000e+00> : vector<16x16xf32>
      %16 = tpu.matmul %13, %15, %cst {dimension_numbers = #tpu.dot_dimension_numbers<[1], [1], [0], [0], [0, 0, 1, 0], [], []>} : vector<16x128xbf16>, vector<16x128xbf16>, vector<16x16xf32> -> vector<16x16xf32>
      %c0_7 = arith.constant 0 : index
      %c0_8 = arith.constant 0 : index
      %c0_9 = arith.constant 0 : index
      %17 = vector.load %arg9[%c0_7, %c0_8, %c0_9] : memref<2x16x1xf32, #tpu.memory_space<vmem>>, vector<1x16x1xf32>
      %18 = vector.shape_cast %17 : vector<1x16x1xf32> to vector<16x1xf32>
      %cst_10 = arith.constant dense<0xFF800000> : vector<16xf32>
      %19 = vector.multi_reduction <maximumf>, %16, %cst_10 [1] : vector<16x16xf32> to vector<16xf32>
      %20 = vector.shape_cast %19 : vector<16xf32> to vector<16x1xf32>
      %21 = arith.maximumf %18, %20 : vector<16x1xf32>
      %22 = arith.subf %18, %21 : vector<16x1xf32>
      %23 = math.exp %22 : vector<16x1xf32>
      %24 = vector.broadcast %21 : vector<16x1xf32> to vector<16x16xf32>
      %25 = arith.subf %16, %24 : vector<16x16xf32>
      %26 = math.exp %25 : vector<16x16xf32>
      %c0_11 = arith.constant 0 : index
      %c0_12 = arith.constant 0 : index
      %c0_13 = arith.constant 0 : index
      %27 = vector.load %arg10[%c0_11, %c0_12, %c0_13] : memref<2x16x1xf32, #tpu.memory_space<vmem>>, vector<1x16x1xf32>
      %28 = vector.shape_cast %27 : vector<1x16x1xf32> to vector<16x1xf32>
      %29 = arith.mulf %23, %28 : vector<16x1xf32>
      %cst_14 = arith.constant dense<0.000000e+00> : vector<16xf32>
      %30 = vector.multi_reduction <add>, %26, %cst_14 [1] : vector<16x16xf32> to vector<16xf32>
      %31 = vector.shape_cast %30 : vector<16xf32> to vector<16x1xf32>
      %32 = arith.addf %29, %31 : vector<16x1xf32>
      %c0_15 = arith.constant 0 : index
      %c0_16 = arith.constant 0 : index
      %c0_17 = arith.constant 0 : index
      %33 = vector.load %arg10[%c0_15, %c0_16, %c0_17] : memref<2x16x1xf32, #tpu.memory_space<vmem>>, vector<1x16x1xf32>
      %34 = vector.shape_cast %33 : vector<1x16x1xf32> to vector<16x1xf32>
      %35 = vector.shape_cast %32 : vector<16x1xf32> to vector<1x16x1xf32>
      tpu.vector_store %arg10[%c0_15, %c0_16, %c0_17], %35 {strides = array<i32>} : memref<2x16x1xf32, #tpu.memory_space<vmem>>, vector<1x16x1xf32>,
      %c0_18 = arith.constant 0 : index
      %c0_19 = arith.constant 0 : index
      %c0_20 = arith.constant 0 : index
      %36 = vector.load %arg6[%c0_18, %c0_19, %c0_20] : memref<1x16x256xbf16, #tpu.memory_space<vmem>>, vector<1x16x128xbf16>
      %37 = vector.shape_cast %36 : vector<1x16x128xbf16> to vector<16x128xbf16>
      %c0_21 = arith.constant 0 : index
      %c0_22 = arith.constant 0 : index
      %c0_23 = arith.constant 0 : index
      %38 = vector.load %arg11[%c0_21, %c0_22, %c0_23] : memref<2x16x128xf32, #tpu.memory_space<vmem>>, vector<1x16x128xf32>
      %39 = vector.shape_cast %38 : vector<1x16x128xf32> to vector<16x128xf32>
      %40 = vector.broadcast %23 : vector<16x1xf32> to vector<16x128xf32>
      %41 = arith.mulf %40, %39 : vector<16x128xf32>
      %42 = arith.truncf %26 : vector<16x16xf32> to vector<16x16xbf16>
      %cst_24 = arith.constant dense<0.000000e+00> : vector<16x128xf32>
      %43 = tpu.matmul %42, %37, %cst_24 {dimension_numbers = #tpu.dot_dimension_numbers<[1], [0], [0], [1], [0, 0, 1, 1], [], []>} : vector<16x16xbf16>, vector<16x128xbf16>, vector<16x128xf32> -> vector<16x128xf32>
      %44 = arith.addf %41, %43 : vector<16x128xf32>
      %c0_25 = arith.constant 0 : index
      %c0_26 = arith.constant 0 : index
      %c0_27 = arith.constant 0 : index
      %45 = vector.load %arg11[%c0_25, %c0_26, %c0_27] : memref<2x16x128xf32, #tpu.memory_space<vmem>>, vector<1x16x128xf32>
      %46 = vector.shape_cast %45 : vector<1x16x128xf32> to vector<16x128xf32>
      %47 = vector.shape_cast %44 : vector<16x128xf32> to vector<1x16x128xf32>
      tpu.vector_store %arg11[%c0_25, %c0_26, %c0_27], %47 {strides = array<i32>} : memref<2x16x128xf32, #tpu.memory_space<vmem>>, vector<1x16x128xf32>,
      %c0_28 = arith.constant 0 : index
      %c0_29 = arith.constant 0 : index
      %c0_30 = arith.constant 0 : index
      %48 = vector.load %arg9[%c0_28, %c0_29, %c0_30] : memref<2x16x1xf32, #tpu.memory_space<vmem>>, vector<1x16x1xf32>
      %49 = vector.shape_cast %48 : vector<1x16x1xf32> to vector<16x1xf32>
      %50 = vector.shape_cast %21 : vector<16x1xf32> to vector<1x16x1xf32>
      tpu.vector_store %arg9[%c0_28, %c0_29, %c0_30], %50 {strides = array<i32>} : memref<2x16x1xf32, #tpu.memory_space<vmem>>, vector<1x16x1xf32>,
      %c0_31 = arith.constant 0 : index
      %c128 = arith.constant 128 : index
      %51 = vector.load %arg8[%c0_31, %c128] : memref<16x256xbf16, #tpu.memory_space<vmem>>, vector<16x128xbf16>
      %c0_32 = arith.constant 0 : index
      %c0_33 = arith.constant 0 : index
      %c128_34 = arith.constant 128 : index
      %52 = vector.load %arg5[%c0_32, %c0_33, %c128_34] : memref<1x16x256xbf16, #tpu.memory_space<vmem>>, vector<1x16x128xbf16>
      %53 = vector.shape_cast %52 : vector<1x16x128xbf16> to vector<16x128xbf16>
      %cst_35 = arith.constant dense<0.000000e+00> : vector<16x16xf32>
      %54 = tpu.matmul %51, %53, %cst_35 {dimension_numbers = #tpu.dot_dimension_numbers<[1], [1], [0], [0], [0, 0, 1, 0], [], []>} : vector<16x128xbf16>, vector<16x128xbf16>, vector<16x16xf32> -> vector<16x16xf32>
      %c1 = arith.constant 1 : index
      %c0_36 = arith.constant 0 : index
      %c0_37 = arith.constant 0 : index
      %55 = vector.load %arg9[%c1, %c0_36, %c0_37] : memref<2x16x1xf32, #tpu.memory_space<vmem>>, vector<1x16x1xf32>
      %56 = vector.shape_cast %55 : vector<1x16x1xf32> to vector<16x1xf32>
      %cst_38 = arith.constant dense<0xFF800000> : vector<16xf32>
      %57 = vector.multi_reduction <maximumf>, %54, %cst_38 [1] : vector<16x16xf32> to vector<16xf32>
      %58 = vector.shape_cast %57 : vector<16xf32> to vector<16x1xf32>
      %59 = arith.maximumf %56, %58 : vector<16x1xf32>
      %60 = arith.subf %56, %59 : vector<16x1xf32>
      %61 = math.exp %60 : vector<16x1xf32>
      %62 = vector.broadcast %59 : vector<16x1xf32> to vector<16x16xf32>
      %63 = arith.subf %54, %62 : vector<16x16xf32>
      %64 = math.exp %63 : vector<16x16xf32>
      %c1_39 = arith.constant 1 : index
      %c0_40 = arith.constant 0 : index
      %c0_41 = arith.constant 0 : index
      %65 = vector.load %arg10[%c1_39, %c0_40, %c0_41] : memref<2x16x1xf32, #tpu.memory_space<vmem>>, vector<1x16x1xf32>
      %66 = vector.shape_cast %65 : vector<1x16x1xf32> to vector<16x1xf32>
      %67 = arith.mulf %61, %66 : vector<16x1xf32>
      %cst_42 = arith.constant dense<0.000000e+00> : vector<16xf32>
      %68 = vector.multi_reduction <add>, %64, %cst_42 [1] : vector<16x16xf32> to vector<16xf32>
      %69 = vector.shape_cast %68 : vector<16xf32> to vector<16x1xf32>
      %70 = arith.addf %67, %69 : vector<16x1xf32>
      %c1_43 = arith.constant 1 : index
      %c0_44 = arith.constant 0 : index
      %c0_45 = arith.constant 0 : index
      %71 = vector.load %arg10[%c1_43, %c0_44, %c0_45] : memref<2x16x1xf32, #tpu.memory_space<vmem>>, vector<1x16x1xf32>
      %72 = vector.shape_cast %71 : vector<1x16x1xf32> to vector<16x1xf32>
      %73 = vector.shape_cast %70 : vector<16x1xf32> to vector<1x16x1xf32>
      tpu.vector_store %arg10[%c1_43, %c0_44, %c0_45], %73 {strides = array<i32>} : memref<2x16x1xf32, #tpu.memory_space<vmem>>, vector<1x16x1xf32>,
      %c0_46 = arith.constant 0 : index
      %c0_47 = arith.constant 0 : index
      %c128_48 = arith.constant 128 : index
      %74 = vector.load %arg6[%c0_46, %c0_47, %c128_48] : memref<1x16x256xbf16, #tpu.memory_space<vmem>>, vector<1x16x128xbf16>
      %75 = vector.shape_cast %74 : vector<1x16x128xbf16> to vector<16x128xbf16>
      %c1_49 = arith.constant 1 : index
      %c0_50 = arith.constant 0 : index
      %c0_51 = arith.constant 0 : index
      %76 = vector.load %arg11[%c1_49, %c0_50, %c0_51] : memref<2x16x128xf32, #tpu.memory_space<vmem>>, vector<1x16x128xf32>
      %77 = vector.shape_cast %76 : vector<1x16x128xf32> to vector<16x128xf32>
      %78 = vector.broadcast %61 : vector<16x1xf32> to vector<16x128xf32>
      %79 = arith.mulf %78, %77 : vector<16x128xf32>
      %80 = arith.truncf %64 : vector<16x16xf32> to vector<16x16xbf16>
      %cst_52 = arith.constant dense<0.000000e+00> : vector<16x128xf32>
      %81 = tpu.matmul %80, %75, %cst_52 {dimension_numbers = #tpu.dot_dimension_numbers<[1], [0], [0], [1], [0, 0, 1, 1], [], []>} : vector<16x16xbf16>, vector<16x128xbf16>, vector<16x128xf32> -> vector<16x128xf32>
      %82 = arith.addf %79, %81 : vector<16x128xf32>
      %c1_53 = arith.constant 1 : index
      %c0_54 = arith.constant 0 : index
      %c0_55 = arith.constant 0 : index
      %83 = vector.load %arg11[%c1_53, %c0_54, %c0_55] : memref<2x16x128xf32, #tpu.memory_space<vmem>>, vector<1x16x128xf32>
      %84 = vector.shape_cast %83 : vector<1x16x128xf32> to vector<16x128xf32>
      %85 = vector.shape_cast %82 : vector<16x128xf32> to vector<1x16x128xf32>
      tpu.vector_store %arg11[%c1_53, %c0_54, %c0_55], %85 {strides = array<i32>} : memref<2x16x128xf32, #tpu.memory_space<vmem>>, vector<1x16x128xf32>,
      %c1_56 = arith.constant 1 : index
      %c0_57 = arith.constant 0 : index
      %c0_58 = arith.constant 0 : index
      %86 = vector.load %arg9[%c1_56, %c0_57, %c0_58] : memref<2x16x1xf32, #tpu.memory_space<vmem>>, vector<1x16x1xf32>
      %87 = vector.shape_cast %86 : vector<1x16x1xf32> to vector<16x1xf32>
      %88 = vector.shape_cast %59 : vector<16x1xf32> to vector<1x16x1xf32>
      tpu.vector_store %arg9[%c1_56, %c0_57, %c0_58], %88 {strides = array<i32>} : memref<2x16x1xf32, #tpu.memory_space<vmem>>, vector<1x16x1xf32>,
    } else {
    }
    %10 = arith.cmpi eq, %3, %1 : i32
    %11 = arith.extui %10 : i1 to i32
    %c0_i32_2 = arith.constant 0 : i32
    %12 = arith.cmpi ne, %11, %c0_i32_2 : i32
    scf.if %12 {
      %c0 = arith.constant 0 : index
      %c0_3 = arith.constant 0 : index
      %13 = vector.load %arg8[%c0, %c0_3] : memref<16x256xbf16, #tpu.memory_space<vmem>>, vector<16x128xbf16>
      %c0_4 = arith.constant 0 : index
      %c0_5 = arith.constant 0 : index
      %c0_6 = arith.constant 0 : index
      %14 = vector.load %arg5[%c0_4, %c0_5, %c0_6] : memref<1x16x256xbf16, #tpu.memory_space<vmem>>, vector<1x16x128xbf16>
      %15 = vector.shape_cast %14 : vector<1x16x128xbf16> to vector<16x128xbf16>
      %cst = arith.constant dense<0.000000e+00> : vector<16x16xf32>
      %16 = tpu.matmul %13, %15, %cst {dimension_numbers = #tpu.dot_dimension_numbers<[1], [1], [0], [0], [0, 0, 1, 0], [], []>} : vector<16x128xbf16>, vector<16x128xbf16>, vector<16x16xf32> -> vector<16x16xf32>
      %17 = tpu.iota {dimensions = array<i32: 0>} : vector<16x16xi32>
      %18 = tpu.iota {dimensions = array<i32: 1>} : vector<16x16xi32>
      %19 = arith.cmpi sle, %18, %17 : vector<16x16xi32>
      %cst_7 = arith.constant -1.000000e+30 : f32
      %20 = vector.broadcast %cst_7 : f32 to vector<16x16xf32>
      %21 = arith.select %19, %16, %20 : vector<16x16xi1>, vector<16x16xf32>
      %c0_8 = arith.constant 0 : index
      %c0_9 = arith.constant 0 : index
      %c0_10 = arith.constant 0 : index
      %22 = vector.load %arg9[%c0_8, %c0_9, %c0_10] : memref<2x16x1xf32, #tpu.memory_space<vmem>>, vector<1x16x1xf32>
      %23 = vector.shape_cast %22 : vector<1x16x1xf32> to vector<16x1xf32>
      %cst_11 = arith.constant dense<0xFF800000> : vector<16xf32>
      %24 = vector.multi_reduction <maximumf>, %21, %cst_11 [1] : vector<16x16xf32> to vector<16xf32>
      %25 = vector.shape_cast %24 : vector<16xf32> to vector<16x1xf32>
      %26 = arith.maximumf %23, %25 : vector<16x1xf32>
      %27 = arith.subf %23, %26 : vector<16x1xf32>
      %28 = math.exp %27 : vector<16x1xf32>
      %29 = vector.broadcast %26 : vector<16x1xf32> to vector<16x16xf32>
      %30 = arith.subf %21, %29 : vector<16x16xf32>
      %31 = math.exp %30 : vector<16x16xf32>
      %c0_12 = arith.constant 0 : index
      %c0_13 = arith.constant 0 : index
      %c0_14 = arith.constant 0 : index
      %32 = vector.load %arg10[%c0_12, %c0_13, %c0_14] : memref<2x16x1xf32, #tpu.memory_space<vmem>>, vector<1x16x1xf32>
      %33 = vector.shape_cast %32 : vector<1x16x1xf32> to vector<16x1xf32>
      %34 = arith.mulf %28, %33 : vector<16x1xf32>
      %cst_15 = arith.constant dense<0.000000e+00> : vector<16xf32>
      %35 = vector.multi_reduction <add>, %31, %cst_15 [1] : vector<16x16xf32> to vector<16xf32>
      %36 = vector.shape_cast %35 : vector<16xf32> to vector<16x1xf32>
      %37 = arith.addf %34, %36 : vector<16x1xf32>
      %c0_16 = arith.constant 0 : index
      %c0_17 = arith.constant 0 : index
      %c0_18 = arith.constant 0 : index
      %38 = vector.load %arg10[%c0_16, %c0_17, %c0_18] : memref<2x16x1xf32, #tpu.memory_space<vmem>>, vector<1x16x1xf32>
      %39 = vector.shape_cast %38 : vector<1x16x1xf32> to vector<16x1xf32>
      %40 = vector.shape_cast %37 : vector<16x1xf32> to vector<1x16x1xf32>
      tpu.vector_store %arg10[%c0_16, %c0_17, %c0_18], %40 {strides = array<i32>} : memref<2x16x1xf32, #tpu.memory_space<vmem>>, vector<1x16x1xf32>,
      %c0_19 = arith.constant 0 : index
      %c0_20 = arith.constant 0 : index
      %c0_21 = arith.constant 0 : index
      %41 = vector.load %arg6[%c0_19, %c0_20, %c0_21] : memref<1x16x256xbf16, #tpu.memory_space<vmem>>, vector<1x16x128xbf16>
      %42 = vector.shape_cast %41 : vector<1x16x128xbf16> to vector<16x128xbf16>
      %c0_22 = arith.constant 0 : index
      %c0_23 = arith.constant 0 : index
      %c0_24 = arith.constant 0 : index
      %43 = vector.load %arg11[%c0_22, %c0_23, %c0_24] : memref<2x16x128xf32, #tpu.memory_space<vmem>>, vector<1x16x128xf32>
      %44 = vector.shape_cast %43 : vector<1x16x128xf32> to vector<16x128xf32>
      %45 = vector.broadcast %28 : vector<16x1xf32> to vector<16x128xf32>
      %46 = arith.mulf %45, %44 : vector<16x128xf32>
      %47 = arith.truncf %31 : vector<16x16xf32> to vector<16x16xbf16>
      %cst_25 = arith.constant dense<0.000000e+00> : vector<16x128xf32>
      %48 = tpu.matmul %47, %42, %cst_25 {dimension_numbers = #tpu.dot_dimension_numbers<[1], [0], [0], [1], [0, 0, 1, 1], [], []>} : vector<16x16xbf16>, vector<16x128xbf16>, vector<16x128xf32> -> vector<16x128xf32>
      %49 = arith.addf %46, %48 : vector<16x128xf32>
      %c0_26 = arith.constant 0 : index
      %c0_27 = arith.constant 0 : index
      %c0_28 = arith.constant 0 : index
      %50 = vector.load %arg11[%c0_26, %c0_27, %c0_28] : memref<2x16x128xf32, #tpu.memory_space<vmem>>, vector<1x16x128xf32>
      %51 = vector.shape_cast %50 : vector<1x16x128xf32> to vector<16x128xf32>
      %52 = vector.shape_cast %49 : vector<16x128xf32> to vector<1x16x128xf32>
      tpu.vector_store %arg11[%c0_26, %c0_27, %c0_28], %52 {strides = array<i32>} : memref<2x16x128xf32, #tpu.memory_space<vmem>>, vector<1x16x128xf32>,
      %c0_29 = arith.constant 0 : index
      %c0_30 = arith.constant 0 : index
      %c0_31 = arith.constant 0 : index
      %53 = vector.load %arg9[%c0_29, %c0_30, %c0_31] : memref<2x16x1xf32, #tpu.memory_space<vmem>>, vector<1x16x1xf32>
      %54 = vector.shape_cast %53 : vector<1x16x1xf32> to vector<16x1xf32>
      %55 = vector.shape_cast %26 : vector<16x1xf32> to vector<1x16x1xf32>
      tpu.vector_store %arg9[%c0_29, %c0_30, %c0_31], %55 {strides = array<i32>} : memref<2x16x1xf32, #tpu.memory_space<vmem>>, vector<1x16x1xf32>,
      %c0_32 = arith.constant 0 : index
      %c128 = arith.constant 128 : index
      %56 = vector.load %arg8[%c0_32, %c128] : memref<16x256xbf16, #tpu.memory_space<vmem>>, vector<16x128xbf16>
      %c0_33 = arith.constant 0 : index
      %c0_34 = arith.constant 0 : index
      %c128_35 = arith.constant 128 : index
      %57 = vector.load %arg5[%c0_33, %c0_34, %c128_35] : memref<1x16x256xbf16, #tpu.memory_space<vmem>>, vector<1x16x128xbf16>
      %58 = vector.shape_cast %57 : vector<1x16x128xbf16> to vector<16x128xbf16>
      %cst_36 = arith.constant dense<0.000000e+00> : vector<16x16xf32>
      %59 = tpu.matmul %56, %58, %cst_36 {dimension_numbers = #tpu.dot_dimension_numbers<[1], [1], [0], [0], [0, 0, 1, 0], [], []>} : vector<16x128xbf16>, vector<16x128xbf16>, vector<16x16xf32> -> vector<16x16xf32>
      %60 = tpu.iota {dimensions = array<i32: 0>} : vector<16x16xi32>
      %61 = tpu.iota {dimensions = array<i32: 1>} : vector<16x16xi32>
      %62 = arith.cmpi sle, %61, %60 : vector<16x16xi32>
      %cst_37 = arith.constant -1.000000e+30 : f32
      %63 = vector.broadcast %cst_37 : f32 to vector<16x16xf32>
      %64 = arith.select %62, %59, %63 : vector<16x16xi1>, vector<16x16xf32>
      %c1 = arith.constant 1 : index
      %c0_38 = arith.constant 0 : index
      %c0_39 = arith.constant 0 : index
      %65 = vector.load %arg9[%c1, %c0_38, %c0_39] : memref<2x16x1xf32, #tpu.memory_space<vmem>>, vector<1x16x1xf32>
      %66 = vector.shape_cast %65 : vector<1x16x1xf32> to vector<16x1xf32>
      %cst_40 = arith.constant dense<0xFF800000> : vector<16xf32>
      %67 = vector.multi_reduction <maximumf>, %64, %cst_40 [1] : vector<16x16xf32> to vector<16xf32>
      %68 = vector.shape_cast %67 : vector<16xf32> to vector<16x1xf32>
      %69 = arith.maximumf %66, %68 : vector<16x1xf32>
      %70 = arith.subf %66, %69 : vector<16x1xf32>
      %71 = math.exp %70 : vector<16x1xf32>
      %72 = vector.broadcast %69 : vector<16x1xf32> to vector<16x16xf32>
      %73 = arith.subf %64, %72 : vector<16x16xf32>
      %74 = math.exp %73 : vector<16x16xf32>
      %c1_41 = arith.constant 1 : index
      %c0_42 = arith.constant 0 : index
      %c0_43 = arith.constant 0 : index
      %75 = vector.load %arg10[%c1_41, %c0_42, %c0_43] : memref<2x16x1xf32, #tpu.memory_space<vmem>>, vector<1x16x1xf32>
      %76 = vector.shape_cast %75 : vector<1x16x1xf32> to vector<16x1xf32>
      %77 = arith.mulf %71, %76 : vector<16x1xf32>
      %cst_44 = arith.constant dense<0.000000e+00> : vector<16xf32>
      %78 = vector.multi_reduction <add>, %74, %cst_44 [1] : vector<16x16xf32> to vector<16xf32>
      %79 = vector.shape_cast %78 : vector<16xf32> to vector<16x1xf32>
      %80 = arith.addf %77, %79 : vector<16x1xf32>
      %c1_45 = arith.constant 1 : index
      %c0_46 = arith.constant 0 : index
      %c0_47 = arith.constant 0 : index
      %81 = vector.load %arg10[%c1_45, %c0_46, %c0_47] : memref<2x16x1xf32, #tpu.memory_space<vmem>>, vector<1x16x1xf32>
      %82 = vector.shape_cast %81 : vector<1x16x1xf32> to vector<16x1xf32>
      %83 = vector.shape_cast %80 : vector<16x1xf32> to vector<1x16x1xf32>
      tpu.vector_store %arg10[%c1_45, %c0_46, %c0_47], %83 {strides = array<i32>} : memref<2x16x1xf32, #tpu.memory_space<vmem>>, vector<1x16x1xf32>,
      %c0_48 = arith.constant 0 : index
      %c0_49 = arith.constant 0 : index
      %c128_50 = arith.constant 128 : index
      %84 = vector.load %arg6[%c0_48, %c0_49, %c128_50] : memref<1x16x256xbf16, #tpu.memory_space<vmem>>, vector<1x16x128xbf16>
      %85 = vector.shape_cast %84 : vector<1x16x128xbf16> to vector<16x128xbf16>
      %c1_51 = arith.constant 1 : index
      %c0_52 = arith.constant 0 : index
      %c0_53 = arith.constant 0 : index
      %86 = vector.load %arg11[%c1_51, %c0_52, %c0_53] : memref<2x16x128xf32, #tpu.memory_space<vmem>>, vector<1x16x128xf32>
      %87 = vector.shape_cast %86 : vector<1x16x128xf32> to vector<16x128xf32>
      %88 = vector.broadcast %71 : vector<16x1xf32> to vector<16x128xf32>
      %89 = arith.mulf %88, %87 : vector<16x128xf32>
      %90 = arith.truncf %74 : vector<16x16xf32> to vector<16x16xbf16>
      %cst_54 = arith.constant dense<0.000000e+00> : vector<16x128xf32>
      %91 = tpu.matmul %90, %85, %cst_54 {dimension_numbers = #tpu.dot_dimension_numbers<[1], [0], [0], [1], [0, 0, 1, 1], [], []>} : vector<16x16xbf16>, vector<16x128xbf16>, vector<16x128xf32> -> vector<16x128xf32>
      %92 = arith.addf %89, %91 : vector<16x128xf32>
      %c1_55 = arith.constant 1 : index
      %c0_56 = arith.constant 0 : index
      %c0_57 = arith.constant 0 : index
      %93 = vector.load %arg11[%c1_55, %c0_56, %c0_57] : memref<2x16x128xf32, #tpu.memory_space<vmem>>, vector<1x16x128xf32>
      %94 = vector.shape_cast %93 : vector<1x16x128xf32> to vector<16x128xf32>
      %95 = vector.shape_cast %92 : vector<16x128xf32> to vector<1x16x128xf32>
      tpu.vector_store %arg11[%c1_55, %c0_56, %c0_57], %95 {strides = array<i32>} : memref<2x16x128xf32, #tpu.memory_space<vmem>>, vector<1x16x128xf32>,
      %c1_58 = arith.constant 1 : index
      %c0_59 = arith.constant 0 : index
      %c0_60 = arith.constant 0 : index
      %96 = vector.load %arg9[%c1_58, %c0_59, %c0_60] : memref<2x16x1xf32, #tpu.memory_space<vmem>>, vector<1x16x1xf32>
      %97 = vector.shape_cast %96 : vector<1x16x1xf32> to vector<16x1xf32>
      %98 = vector.shape_cast %69 : vector<16x1xf32> to vector<1x16x1xf32>
      tpu.vector_store %arg9[%c1_58, %c0_59, %c0_60], %98 {strides = array<i32>} : memref<2x16x1xf32, #tpu.memory_space<vmem>>, vector<1x16x1xf32>,
      %c0_61 = arith.constant 0 : index
      %c0_62 = arith.constant 0 : index
      %c0_63 = arith.constant 0 : index
      %99 = vector.load %arg10[%c0_61, %c0_62, %c0_63] : memref<2x16x1xf32, #tpu.memory_space<vmem>>, vector<1x16x1xf32>
      %100 = vector.shape_cast %99 : vector<1x16x1xf32> to vector<16x1xf32>
      %101 = tpu.reciprocal %100 : vector<16x1xf32> -> vector<16x1xf32>
      %c0_64 = arith.constant 0 : index
      %c0_65 = arith.constant 0 : index
      %c0_66 = arith.constant 0 : index
      %102 = vector.load %arg11[%c0_64, %c0_65, %c0_66] : memref<2x16x128xf32, #tpu.memory_space<vmem>>, vector<1x16x128xf32>
      %103 = vector.shape_cast %102 : vector<1x16x128xf32> to vector<16x128xf32>
      %104 = vector.broadcast %101 : vector<16x1xf32> to vector<16x128xf32>
      %105 = arith.mulf %103, %104 : vector<16x128xf32>
      %106 = arith.truncf %105 : vector<16x128xf32> to vector<16x128xbf16>
      %c0_67 = arith.constant 0 : index
      %c0_68 = arith.constant 0 : index
      %c0_69 = arith.constant 0 : index
      %107 = vector.load %arg7[%c0_67, %c0_68, %c0_69] : memref<1x16x256xbf16, #tpu.memory_space<vmem>>, vector<1x16x128xbf16>
      %108 = vector.shape_cast %107 : vector<1x16x128xbf16> to vector<16x128xbf16>
      %109 = vector.shape_cast %106 : vector<16x128xbf16> to vector<1x16x128xbf16>
      tpu.vector_store %arg7[%c0_67, %c0_68, %c0_69], %109 {strides = array<i32>} : memref<1x16x256xbf16, #tpu.memory_space<vmem>>, vector<1x16x128xbf16>,
      %c1_70 = arith.constant 1 : index
      %c0_71 = arith.constant 0 : index
      %c0_72 = arith.constant 0 : index
      %110 = vector.load %arg10[%c1_70, %c0_71, %c0_72] : memref<2x16x1xf32, #tpu.memory_space<vmem>>, vector<1x16x1xf32>
      %111 = vector.shape_cast %110 : vector<1x16x1xf32> to vector<16x1xf32>
      %112 = tpu.reciprocal %111 : vector<16x1xf32> -> vector<16x1xf32>
      %c1_73 = arith.constant 1 : index
      %c0_74 = arith.constant 0 : index
      %c0_75 = arith.constant 0 : index
      %113 = vector.load %arg11[%c1_73, %c0_74, %c0_75] : memref<2x16x128xf32, #tpu.memory_space<vmem>>, vector<1x16x128xf32>
      %114 = vector.shape_cast %113 : vector<1x16x128xf32> to vector<16x128xf32>
      %115 = vector.broadcast %112 : vector<16x1xf32> to vector<16x128xf32>
      %116 = arith.mulf %114, %115 : vector<16x128xf32>
      %117 = arith.truncf %116 : vector<16x128xf32> to vector<16x128xbf16>
      %c0_76 = arith.constant 0 : index
      %c0_77 = arith.constant 0 : index
      %c128_78 = arith.constant 128 : index
      %118 = vector.load %arg7[%c0_76, %c0_77, %c128_78] : memref<1x16x256xbf16, #tpu.memory_space<vmem>>, vector<1x16x128xbf16>
      %119 = vector.shape_cast %118 : vector<1x16x128xbf16> to vector<16x128xbf16>
      %120 = vector.shape_cast %117 : vector<16x128xbf16> to vector<1x16x128xbf16>
      tpu.vector_store %arg7[%c0_76, %c0_77, %c128_78], %120 {strides = array<i32>} : memref<1x16x256xbf16, #tpu.memory_space<vmem>>, vector<1x16x128xbf16>,
    } else {
    }
    return
  }
  func.func @transform_0(%arg0: i32, %arg1: i32, %arg2: memref<10xi32, #tpu.memory_space<smem>>, %arg3: memref<10xi32, #tpu.memory_space<smem>>) -> (i32, i32, i32) {
    %0 = arith.index_cast %arg1 : i32 to index
    %1 = memref.load %arg2[%0] : memref<10xi32, #tpu.memory_space<smem>>
    %c0_i32 = arith.constant 0 : i32
    %c0_i32_0 = arith.constant 0 : i32
    return %arg0, %1, %c0_i32 : i32, i32, i32
  }
  func.func @transform_1(%arg0: i32, %arg1: i32, %arg2: memref<10xi32, #tpu.memory_space<smem>>, %arg3: memref<10xi32, #tpu.memory_space<smem>>) -> (i32, i32, i32) {
    %0 = arith.index_cast %arg1 : i32 to index
    %1 = memref.load %arg3[%0] : memref<10xi32, #tpu.memory_space<smem>>
    %c1_i32 = arith.constant 1 : i32
    %c0_i32 = arith.constant 0 : i32
    return %arg0, %1, %c1_i32 : i32, i32, i32
  }
  func.func @transform_2(%arg0: i32, %arg1: i32, %arg2: memref<10xi32, #tpu.memory_space<smem>>, %arg3: memref<10xi32, #tpu.memory_space<smem>>) -> (i32, i32, i32) {
    %0 = arith.index_cast %arg1 : i32 to index
    %1 = memref.load %arg3[%0] : memref<10xi32, #tpu.memory_space<smem>>
    %c2_i32 = arith.constant 2 : i32
    %c0_i32 = arith.constant 0 : i32
    return %arg0, %1, %c2_i32 : i32, i32, i32
  }
  func.func @transform_3(%arg0: i32, %arg1: i32, %arg2: memref<10xi32, #tpu.memory_space<smem>>, %arg3: memref<10xi32, #tpu.memory_space<smem>>) -> (i32, i32, i32) {
    %0 = arith.index_cast %arg1 : i32 to index
    %1 = memref.load %arg2[%0] : memref<10xi32, #tpu.memory_space<smem>>
    %c0_i32 = arith.constant 0 : i32
    %c0_i32_0 = arith.constant 0 : i32
    return %arg0, %1, %c0_i32 : i32, i32, i32
  }
}

</mosaic_0001>

<bundles_post_ra>
// kernel: causal_self_attention.5
= control target key start
LH: loop header
LB: loop body
LE: loop exit
PB: predicated region body
PF: predicated region fallthrough
CT: control target
= control target key end

     0   :  { %s1072_s0 = inlined_call_operand.vmem [shape: bf16[128,256], index: 0, kind: input, shape index: {}]   ;;  %s1073_s1 = inlined_call_operand.vmem [shape: bf16[256,256], index: 1, kind: input, shape index: {}]   ;;  %s1074_s2 = inlined_call_operand.vmem [shape: f32[1,256], index: 2, kind: input, shape index: {}]   ;;  %s1075_s3 = inlined_call_operand.hbm [shape: f32[128,256], index: 3, kind: output, shape index: {}]  }
   0x1   :  { %v758_v0 = vld [vmem:[%s1073_s1 + $0x4] ss:$8 sps:$4 sm:$0xff]   ;;  %v760_v1 = vld [vmem:[%s1073_s1] ss:$8 sps:$4 sm:$0xff]   ;;  %v761_v2 = vld [vmem:[%s1073_s1 + $0x14] ss:$8 sps:$4 sm:$0xff]  }
   0x2   :  { %371 = vmatprep.subr.bf16.mxu0 %v758_v0  ;;  %723 = vmatprep.subr.bf16.mxu1 %v758_v0  ;;  %v763_v3 = vld [vmem:[%s1073_s1 + $0x10] ss:$8 sps:$4 sm:$0xff]   ;;  %v764_v4 = vld [vmem:[%s1073_s1 + $0x24] ss:$8 sps:$4 sm:$0xff]   ;;  %v766_v5 = vld [vmem:[%s1073_s1 + $0x20] ss:$8 sps:$4 sm:$0xff]  }
   0x3   :  { %372 = vmatpush1.bf16.msra.mxu0 %v760_v1  ;;  %739 = vmatpush1.bf16.msra.mxu1 %v760_v1  ;;  %v767_v6 = vld [vmem:[%s1073_s1 + $0x34] ss:$8 sps:$4 sm:$0xff]   ;;  %v769_v7 = vld [vmem:[%s1073_s1 + $0x30] ss:$8 sps:$4 sm:$0xff]   ;;  %v770_v8 = vld [vmem:[%s1073_s1 + $0x44] ss:$8 sps:$4 sm:$0xff]  }
   0x4   :  { %373 = vmatprep.subr.bf16.mxu0 %v761_v2  ;;  %724 = vmatprep.subr.bf16.mxu1 %v761_v2  ;;  %v772_v9 = vld [vmem:[%s1073_s1 + $0x40] ss:$8 sps:$4 sm:$0xff]   ;;  %v773_v10 = vld [vmem:[%s1073_s1 + $0x54] ss:$8 sps:$4 sm:$0xff]   ;;  %v775_v11 = vld [vmem:[%s1073_s1 + $0x50] ss:$8 sps:$4 sm:$0xff]  }
   0x5   :  { %v776_v12 = vld [vmem:[%s1073_s1 + $0x64] ss:$8 sps:$4 sm:$0xff]   ;;  %v778_v14 = vld [vmem:[%s1073_s1 + $0x60] ss:$8 sps:$4 sm:$0xff]   ;;  %v779_v16 = vld [vmem:[%s1073_s1 + $0x74] ss:$8 sps:$4 sm:$0xff]  }
   0x6   :  { %v808_v13 = vld [vmem:[%s1072_s0 + $0x4] ss:$8 sps:$4 sm:$0xff]   ;;  %v781_v17 = vld [vmem:[%s1073_s1 + $0x70] ss:$8 sps:$4 sm:$0xff]   ;;  %v784_v19 = vld [vmem:[%s1073_s1 + $0x80] ss:$8 sps:$4 sm:$0xff]  }
   0x7   :  { %374 = vmatpush1.bf16.msra.mxu0 %v763_v3  ;;  %740 = vmatpush1.bf16.msra.mxu1 %v763_v3  ;;  %v811_v15 = vld [vmem:[%s1072_s0 + $0x44] ss:$8 sps:$4 sm:$0xff]   ;;  %v785_v20 = vld [vmem:[%s1073_s1 + $0x94] ss:$8 sps:$4 sm:$0xff]  }
   0x8   :  { %375 = vmatprep.subr.bf16.mxu0 %v764_v4  ;;  %725 = vmatprep.subr.bf16.mxu1 %v764_v4  ;;  %v782_v18 = vld [vmem:[%s1073_s1 + $0x84] ss:$8 sps:$4 sm:$0xff]  }
   0x9   :  { %403 = vmatprep.mubr.bf16.mxu0 %v808_v13  ;;  %443 = vmatprep.mubr.bf16.mxu1 %v811_v15 }
   0xb   :  { %376 = vmatpush1.bf16.msra.mxu0 %v766_v5  ;;  %741 = vmatpush1.bf16.msra.mxu1 %v766_v5 }
   0xc   :  { %377 = vmatprep.subr.bf16.mxu0 %v767_v6  ;;  %726 = vmatprep.subr.bf16.mxu1 %v767_v6 }
   0xf   :  { %378 = vmatpush1.bf16.msra.mxu0 %v769_v7  ;;  %742 = vmatpush1.bf16.msra.mxu1 %v769_v7 }
  0x10   :  { %379 = vmatprep.subr.bf16.mxu0 %v770_v8  ;;  %727 = vmatprep.subr.bf16.mxu1 %v770_v8 }
  0x13   :  { %380 = vmatpush1.bf16.msra.mxu0 %v772_v9  ;;  %743 = vmatpush1.bf16.msra.mxu1 %v772_v9 }
  0x14   :  { %381 = vmatprep.subr.bf16.mxu0 %v773_v10  ;;  %728 = vmatprep.subr.bf16.mxu1 %v773_v10 }
  0x17   :  { %382 = vmatpush1.bf16.msra.mxu0 %v775_v11  ;;  %744 = vmatpush1.bf16.msra.mxu1 %v775_v11 }
  0x18   :  { %383 = vmatprep.subr.bf16.mxu0 %v776_v12  ;;  %729 = vmatprep.subr.bf16.mxu1 %v776_v12 }
  0x1b   :  { %384 = vmatpush1.bf16.msra.mxu0 %v778_v14  ;;  %745 = vmatpush1.bf16.msra.mxu1 %v778_v14 }
  0x1c   :  { %385 = vmatprep.subr.bf16.mxu0 %v779_v16  ;;  %730 = vmatprep.subr.bf16.mxu1 %v779_v16 }
  0x1f   :  { %386 = vmatpush1.bf16.msra.mxu0 %v781_v17  ;;  %746 = vmatpush1.bf16.msra.mxu1 %v781_v17 }
  0x20   :  { %387 = vmatprep.subr.bf16.mxu0 %v782_v18  ;;  %731 = vmatprep.subr.bf16.mxu1 %v782_v18 }
  0x21   :  { %8 = vsyncpa [#allocation4], 0  ;;  %v787_v21 = vld [vmem:[%s1073_s1 + $0x90] ss:$8 sps:$4 sm:$0xff]   ;;  %v788_v22 = vld [vmem:[%s1073_s1 + $0xa4] ss:$8 sps:$4 sm:$0xff]   ;;  %v585_v48 = vlaneseq }
  0x22   :  { %v790_v23 = vld [vmem:[%s1073_s1 + $0xa0] ss:$8 sps:$4 sm:$0xff]   ;;  %v791_v24 = vld [vmem:[%s1073_s1 + $0xb4] ss:$8 sps:$4 sm:$0xff]   ;;  %v793_v25 = vld [vmem:[%s1073_s1 + $0xb0] ss:$8 sps:$4 sm:$0xff]  }
  0x23   :  { %388 = vmatpush1.bf16.msra.mxu0 %v784_v19  ;;  %747 = vmatpush1.bf16.msra.mxu1 %v784_v19  ;;  %v794_v26 = vld [vmem:[%s1073_s1 + $0xc4] ss:$8 sps:$4 sm:$0xff]   ;;  %v796_v27 = vld [vmem:[%s1073_s1 + $0xc0] ss:$8 sps:$4 sm:$0xff]   ;;  %v797_v28 = vld [vmem:[%s1073_s1 + $0xd4] ss:$8 sps:$4 sm:$0xff]  }
  0x24   :  { %389 = vmatprep.subr.bf16.mxu0 %v785_v20  ;;  %732 = vmatprep.subr.bf16.mxu1 %v785_v20  ;;  %v799_v29 = vld [vmem:[%s1073_s1 + $0xd0] ss:$8 sps:$4 sm:$0xff]   ;;  %v800_v30 = vld [vmem:[%s1073_s1 + $0xe4] ss:$8 sps:$4 sm:$0xff]   ;;  %v802_v31 = vld [vmem:[%s1073_s1 + $0xe0] ss:$8 sps:$4 sm:$0xff]  }
  0x25   :  { %v803_v32 = vld [vmem:[%s1073_s1 + $0xf4] ss:$8 sps:$4 sm:$0xff]   ;;  %v805_v33 = vld [vmem:[%s1073_s1 + $0xf0] ss:$8 sps:$4 sm:$0xff]   ;;  %v806_v34 = vld [vmem:[%s1072_s0] ss:$8 sps:$4 sm:$0xff]  }
  0x26   :  { %v809_v35 = vld [vmem:[%s1072_s0 + $0x40] ss:$8 sps:$4 sm:$0xff]   ;;  %v812_v36 = vld [vmem:[%s1072_s0 + $0x14] ss:$8 sps:$4 sm:$0xff]   ;;  %v816_v38 = vld [vmem:[%s1072_s0 + $0x10] ss:$8 sps:$4 sm:$0xff]  }
  0x27   :  { %390 = vmatpush1.bf16.msra.mxu0 %v787_v21  ;;  %748 = vmatpush1.bf16.msra.mxu1 %v787_v21  ;;  %v814_v37 = vld [vmem:[%s1072_s0 + $0x54] ss:$8 sps:$4 sm:$0xff]   ;;  %v817_v39 = vld [vmem:[%s1072_s0 + $0x50] ss:$8 sps:$4 sm:$0xff]   ;;  %v818_v40 = vld [vmem:[%s1072_s0 + $0x24] ss:$8 sps:$4 sm:$0xff]  }
  0x28   :  { %391 = vmatprep.subr.bf16.mxu0 %v788_v22  ;;  %733 = vmatprep.subr.bf16.mxu1 %v788_v22  ;;  %v820_v41 = vld [vmem:[%s1072_s0 + $0x64] ss:$8 sps:$4 sm:$0xff]   ;;  %v822_v42 = vld [vmem:[%s1072_s0 + $0x20] ss:$8 sps:$4 sm:$0xff]   ;;  %v824_v44 = vld [vmem:[%s1072_s0 + $0x34] ss:$8 sps:$4 sm:$0xff]  }
  0x29   :  { %v823_v43 = vld [vmem:[%s1072_s0 + $0x60] ss:$8 sps:$4 sm:$0xff]   ;;  %v826_v45 = vld [vmem:[%s1072_s0 + $0x74] ss:$8 sps:$4 sm:$0xff]   ;;  %v828_v46 = vld [vmem:[%s1072_s0 + $0x30] ss:$8 sps:$4 sm:$0xff]  }
  0x2a   :  { %v829_v47 = vld [vmem:[%s1072_s0 + $0x70] ss:$8 sps:$4 sm:$0xff]   ;;  %v586_v49 = vshrl.u32 %v585_v48, 7  ;;  %v583_v51 = vld [vmem:[%s1074_s2] sm:$0x3]  ;;  %s854_s0 = smov [#allocation3]  }
  0x2b   :  { %392 = vmatpush1.bf16.msra.mxu0 %v790_v23  ;;  %749 = vmatpush1.bf16.msra.mxu1 %v790_v23  ;;  %s664_s2 = sshll.u32 %s854_s0, 4  ;;  %s665_s2 = int_to_ptr.vmem [resolvable:$true] %s664_s2 }
  0x2c   :  { %393 = vmatprep.subr.bf16.mxu0 %v791_v24  ;;  %734 = vmatprep.subr.bf16.mxu1 %v791_v24  ;;  %v587_v50 = vsub.s32 0, %v586_v49  ;;  %v591_v52 = vsub.s32 1, %v586_v49  ;;  %s830_s28 = scalar_lea.vmem %s665_s2, 4096  ;;  %p835_p1 = scmp.lt.s32.totalorder %s665_s2, %s665_s2 }
  0x2d   :  { %p831_p0 = scmp.ne.s32.totalorder %s665_s2, %s830_s28  ;;  %p836_p2 = scmp.lt.s32.totalorder %s830_s28, %s830_s28 }
  0x2e   :  { %v1024_v53 = vrot.slane %v583_v51, %v587_v50  ;;  %v1026_v54 = vrot.slane %v583_v51, %v591_v52 }
  0x2f   :  { %394 = vmatpush1.bf16.msra.mxu0 %v793_v25  ;;  %750 = vmatpush1.bf16.msra.mxu1 %v793_v25  ;;  %p837_p3 = por %p836_p2, %p835_p1 }
  0x30   :  { %395 = vmatprep.subr.bf16.mxu0 %v794_v26  ;;  %735 = vmatprep.subr.bf16.mxu1 %v794_v26 }
  0x31   :  { %p838_p4 = pnand %p837_p3, %p831_p0 }
  0x33   :  { %396 = vmatpush1.bf16.msra.mxu0 %v796_v27  ;;  %751 = vmatpush1.bf16.msra.mxu1 %v796_v27 }
  0x34   :  { %397 = vmatprep.subr.bf16.mxu0 %v797_v28  ;;  %736 = vmatprep.subr.bf16.mxu1 %v797_v28 }
  0x37   :  { %398 = vmatpush1.bf16.msra.mxu0 %v799_v29  ;;  %752 = vmatpush1.bf16.msra.mxu1 %v799_v29 }
  0x38   :  { %399 = vmatprep.subr.bf16.mxu0 %v800_v30  ;;  %737 = vmatprep.subr.bf16.mxu1 %v800_v30 }
  0x3b   :  { %400 = vmatpush1.bf16.msra.mxu0 %v802_v31  ;;  %753 = vmatpush1.bf16.msra.mxu1 %v802_v31 }
  0x3c   :  { %401 = vmatprep.subr.bf16.mxu0 %v803_v32  ;;  %738 = vmatprep.subr.bf16.mxu1 %v803_v32 }
  0x3f   :  { %402 = vmatpush1.bf16.msra.mxu0 %v805_v33  ;;  %754 = vmatpush1.bf16.msra.mxu1 %v805_v33 }
  0x42   :  { %404 = vmatmul.mubr.bf16.vlgmr.msra.gmra.mrb[0].mxu0 %v806_v34  ;;  %444 = vmatmul.mubr.bf16.vlgmr.msra.gmra.mrb[0].mxu1 %v809_v35 }
  0x43   :  { %413 = vmatprep.mubr.bf16.mxu0 %v812_v36  ;;  %453 = vmatprep.mubr.bf16.mxu1 %v814_v37 }
  0x4a   :  { %414 = vmatmul.mubr.bf16.gmra.mrb[4].mxu0 %v816_v38  ;;  %454 = vmatmul.mubr.bf16.gmra.mrb[4].mxu1 %v817_v39 }
  0x4b   :  { %423 = vmatprep.mubr.bf16.mxu0 %v818_v40  ;;  %463 = vmatprep.mubr.bf16.mxu1 %v820_v41 }
  0x52   :  { %424 = vmatmul.mubr.bf16.gmra.mrb[8].mxu0 %v822_v42  ;;  %464 = vmatmul.mubr.bf16.gmra.mrb[8].mxu1 %v823_v43 }
  0x53   :  { %433 = vmatprep.mubr.bf16.mxu0 %v824_v44  ;;  %473 = vmatprep.mubr.bf16.mxu1 %v826_v45 }
  0x5a   :  { %434 = vmatmul.mubr.bf16.gmra.mrb[12].mxu0 %v828_v46  ;;  %474 = vmatmul.mubr.bf16.gmra.mrb[12].mxu1 %v829_v47 }
 0x115   :  { %v405_v55 = vpop.f32.mrb[0].mxu0  ;;  %v445_v56 = vpop.f32.mrb[0].mxu1 }
 0x116   :  { %v595_v57 = vadd.f32 %v1024_v53, %v405_v55  ;;  %v611_v58 = vadd.f32 %v1024_v53, %v445_v56  ;;  %v407_v59 = vpop.f32.mrb[1].mxu0  ;;  %v447_v60 = vpop.f32.mrb[1].mxu1 }
 0x117   :  { %v596_v61 = vadd.f32 %v1026_v54, %v407_v59  ;;  %v612_v62 = vadd.f32 %v1026_v54, %v447_v60  ;;  %v409_v63 = vpop.f32.mrb[2].mxu0  ;;  %v449_v0 = vpop.f32.mrb[2].mxu1 }
 0x118   :  { %627 = vst [vmem:[#allocation3] sm:$0xff] %v595_v57  ;;  %643 = vst [vmem:[#allocation3 + $0x80] sm:$0xff] %v611_v58  ;;  %v597_v1 = vadd.f32 %v1024_v53, %v409_v63  ;;  %v613_v2 = vadd.f32 %v1024_v53, %v449_v0  ;;  %v411_v3 = vpop.f32.mrb[3].mxu0  ;;  %v451_v4 = vpop.f32.mrb[3].mxu1 }
 0x119   :  { %628 = vst [vmem:[#allocation3 + $0x8] sm:$0xff] %v596_v61  ;;  %644 = vst [vmem:[#allocation3 + $0x88] sm:$0xff] %v612_v62  ;;  %v598_v5 = vadd.f32 %v1026_v54, %v411_v3  ;;  %v614_v6 = vadd.f32 %v1026_v54, %v451_v4 }
 0x11a   :  { %629 = vst [vmem:[#allocation3 + $0x10] sm:$0xff] %v597_v1  ;;  %645 = vst [vmem:[#allocation3 + $0x90] sm:$0xff] %v613_v2 }
 0x11b   :  { %630 = vst [vmem:[#allocation3 + $0x18] sm:$0xff] %v598_v5  ;;  %646 = vst [vmem:[#allocation3 + $0x98] sm:$0xff] %v614_v6 }
 0x11d   :  { %v415_v7 = vpop.f32.mrb[4].mxu0  ;;  %v455_v8 = vpop.f32.mrb[4].mxu1 }
 0x11e   :  { %v599_v9 = vadd.f32 %v1024_v53, %v415_v7  ;;  %v615_v10 = vadd.f32 %v1024_v53, %v455_v8  ;;  %v417_v11 = vpop.f32.mrb[5].mxu0  ;;  %v457_v12 = vpop.f32.mrb[5].mxu1 }
 0x11f   :  { %v600_v13 = vadd.f32 %v1026_v54, %v417_v11  ;;  %v616_v14 = vadd.f32 %v1026_v54, %v457_v12  ;;  %v419_v15 = vpop.f32.mrb[6].mxu0  ;;  %v459_v16 = vpop.f32.mrb[6].mxu1 }
 0x120   :  { %631 = vst [vmem:[#allocation3 + $0x20] sm:$0xff] %v599_v9  ;;  %647 = vst [vmem:[#allocation3 + $0xa0] sm:$0xff] %v615_v10  ;;  %v601_v17 = vadd.f32 %v1024_v53, %v419_v15  ;;  %v617_v18 = vadd.f32 %v1024_v53, %v459_v16  ;;  %v421_v19 = vpop.f32.mrb[7].mxu0  ;;  %v461_v20 = vpop.f32.mrb[7].mxu1 }
 0x121   :  { %632 = vst [vmem:[#allocation3 + $0x28] sm:$0xff] %v600_v13  ;;  %648 = vst [vmem:[#allocation3 + $0xa8] sm:$0xff] %v616_v14  ;;  %v602_v21 = vadd.f32 %v1026_v54, %v421_v19  ;;  %v618_v22 = vadd.f32 %v1026_v54, %v461_v20 }
 0x122   :  { %633 = vst [vmem:[#allocation3 + $0x30] sm:$0xff] %v601_v17  ;;  %649 = vst [vmem:[#allocation3 + $0xb0] sm:$0xff] %v617_v18 }
 0x123   :  { %634 = vst [vmem:[#allocation3 + $0x38] sm:$0xff] %v602_v21  ;;  %650 = vst [vmem:[#allocation3 + $0xb8] sm:$0xff] %v618_v22 }
 0x125   :  { %v425_v23 = vpop.f32.mrb[8].mxu0  ;;  %v465_v24 = vpop.f32.mrb[8].mxu1 }
 0x126   :  { %v603_v25 = vadd.f32 %v1024_v53, %v425_v23  ;;  %v619_v26 = vadd.f32 %v1024_v53, %v465_v24  ;;  %v427_v27 = vpop.f32.mrb[9].mxu0  ;;  %v467_v28 = vpop.f32.mrb[9].mxu1 }
 0x127   :  { %v604_v29 = vadd.f32 %v1026_v54, %v427_v27  ;;  %v620_v30 = vadd.f32 %v1026_v54, %v467_v28  ;;  %v429_v31 = vpop.f32.mrb[10].mxu0  ;;  %v469_v32 = vpop.f32.mrb[10].mxu1 }
 0x128   :  { %635 = vst [vmem:[#allocation3 + $0x40] sm:$0xff] %v603_v25  ;;  %651 = vst [vmem:[#allocation3 + $0xc0] sm:$0xff] %v619_v26  ;;  %v605_v33 = vadd.f32 %v1024_v53, %v429_v31  ;;  %v621_v34 = vadd.f32 %v1024_v53, %v469_v32  ;;  %v431_v35 = vpop.f32.mrb[11].mxu0  ;;  %v471_v36 = vpop.f32.mrb[11].mxu1 }
 0x129   :  { %636 = vst [vmem:[#allocation3 + $0x48] sm:$0xff] %v604_v29  ;;  %652 = vst [vmem:[#allocation3 + $0xc8] sm:$0xff] %v620_v30  ;;  %v606_v37 = vadd.f32 %v1026_v54, %v431_v35  ;;  %v622_v38 = vadd.f32 %v1026_v54, %v471_v36 }
 0x12a   :  { %637 = vst [vmem:[#allocation3 + $0x50] sm:$0xff] %v605_v33  ;;  %653 = vst [vmem:[#allocation3 + $0xd0] sm:$0xff] %v621_v34 }
 0x12b   :  { %638 = vst [vmem:[#allocation3 + $0x58] sm:$0xff] %v606_v37  ;;  %654 = vst [vmem:[#allocation3 + $0xd8] sm:$0xff] %v622_v38 }
 0x12d   :  { %v435_v39 = vpop.f32.mrb[12].mxu0  ;;  %v475_v40 = vpop.f32.mrb[12].mxu1 }
 0x12e   :  { %v607_v41 = vadd.f32 %v1024_v53, %v435_v39  ;;  %v623_v42 = vadd.f32 %v1024_v53, %v475_v40  ;;  %v437_v43 = vpop.f32.mrb[13].mxu0  ;;  %v477_v44 = vpop.f32.mrb[13].mxu1 }
 0x12f   :  { %v608_v45 = vadd.f32 %v1026_v54, %v437_v43  ;;  %v624_v46 = vadd.f32 %v1026_v54, %v477_v44  ;;  %v439_v47 = vpop.f32.mrb[14].mxu0  ;;  %v479_v48 = vpop.f32.mrb[14].mxu1 }
 0x130   :  { %639 = vst [vmem:[#allocation3 + $0x60] sm:$0xff] %v607_v41  ;;  %655 = vst [vmem:[#allocation3 + $0xe0] sm:$0xff] %v623_v42  ;;  %v609_v49 = vadd.f32 %v1024_v53, %v439_v47  ;;  %v625_v50 = vadd.f32 %v1024_v53, %v479_v48  ;;  %v441_v51 = vpop.f32.mrb[15].mxu0  ;;  %v481_v52 = vpop.f32.mrb[15].mxu1 }
 0x131   :  { %640 = vst [vmem:[#allocation3 + $0x68] sm:$0xff] %v608_v45  ;;  %656 = vst [vmem:[#allocation3 + $0xe8] sm:$0xff] %v624_v46  ;;  %v610_v55 = vadd.f32 %v1026_v54, %v441_v51  ;;  %v626_v56 = vadd.f32 %v1026_v54, %v481_v52 }
 0x132   :  { %641 = vst [vmem:[#allocation3 + $0x70] sm:$0xff] %v609_v49  ;;  %657 = vst [vmem:[#allocation3 + $0xf0] sm:$0xff] %v625_v50 }
 0x133   :  { %642 = vst [vmem:[#allocation3 + $0x78] sm:$0xff] %v610_v55  ;;  %658 = vst [vmem:[#allocation3 + $0xf8] sm:$0xff] %v626_v56 }
 0x134   :  { %841 = shalt.err (!%p838_p4)
}
 0x135   :  { %s842_s4 = scalar_lea.hbm %s1075_s3, 4096 }
 0x136   :  { %p843_p5 = scmp.ne.s32.totalorder %s1075_s3, %s842_s4  ;;  %p846_p6 = scmp.lt.u32.totalorder %s842_s4, %s1075_s3 }
 0x138   :  { %p848_p7 = pnand %p846_p6, %p843_p5 }
 0x13a   :  { %851 = shalt.err (!%p848_p7)
}
 0x13b   :  { %s855_s8 = smov 256   ;;  %s856_s9 = smov 16  }
 0x13c   :  { %670 = dma.vmem_to_hbm [thread:$0]  %s665_s2, 4096, %s1075_s3, [#allocation4], %s855_s8, %s855_s8, %s856_s9  }
 0x13d   :  { %852 = dma.done.wait [#allocation4], 4096  }
 0x13e   :  { %853 = vsyncadd [#allocation4], 4294963200 }
 0x13f   :  { %674 = vsyncpa [#allocation4], 1 }

// kernel: causal_self_attention.4
= control target key start
LH: loop header
LB: loop body
LE: loop exit
PB: predicated region body
PF: predicated region fallthrough
CT: control target
= control target key end

     0   :  { %s2045_s0 = inlined_call_operand.vmem [shape: s32[10], index: 0, kind: input, shape index: {}]   ;;  %s2046_s2 = inlined_call_operand.vmem [shape: bf16[2,64,768], index: 2, kind: input, shape index: {}, may-alias: {2,3,4}]   ;;  %s2047_s3 = inlined_call_operand.vmem [shape: bf16[2,64,768], index: 3, kind: input, shape index: {}, may-alias: {2,3,4}]   ;;  %s2048_s4 = inlined_call_operand.vmem [shape: bf16[2,64,768], index: 4, kind: input, shape index: {}, may-alias: {2,3,4}]   ;;  %s2049_s5 = inlined_call_operand.vmem [shape: bf16[2,64,256], index: 5, kind: output, shape index: {}]   ;;  %s2050_s1 = inlined_call_operand.vmem [shape: s32[10], index: 1, kind: input, shape index: {}]  }
   0x1   :  { %2055 = sst [smem:[#allocation17_spill]] %s2046_s2  ;;  %s10_s20 = sshll.u32 %s2045_s0, 4  ;;  %s11_s20 = int_to_ptr.vmem [resolvable:$true] %s10_s20 }
   0x2   :  { %2056 = sst [smem:[#allocation18_spill]] %s2047_s3  ;;  %s14_s23 = sshll.u32 %s2050_s1, 4  ;;  %s15_s23 = int_to_ptr.vmem [resolvable:$true] %s14_s23 }
   0x3   :  { %2057 = sst [smem:[#allocation19_spill]] %s2049_s5  ;;  %s1608_s24 = scalar_lea.vmem %s11_s20, 16 }
   0x4   :  { %p1609_p0 = scmp.ne.s32.totalorder %s11_s20, %s1608_s24  ;;  %p1613_p1 = scmp.lt.s32.totalorder %s11_s20, %s11_s20 }
   0x5   :  { %p1614_p2 = scmp.lt.s32.totalorder %s1608_s24, %s1608_s24 }
   0x7   :  { %p1615_p3 = por %p1614_p2, %p1613_p1 }
   0x9   :  { %p1616_p4 = pnand %p1615_p3, %p1609_p0 }
   0xb   :  { %1619 = shalt.err (!%p1616_p4)  }
   0xc   :  { %s1722_s25 = smov [#allocation7]   ;;  %s1620_s26 = scalar_lea.vmem %s15_s23, 16 }
   0xd   :  { %13 = dma.vmem_to_smem %s11_s20, 16, %s1722_s25, [#allocation6] }
   0xe   :  { %p1621_p5 = scmp.ne.s32.totalorder %s15_s23, %s1620_s26  ;;  %p1625_p6 = scmp.lt.s32.totalorder %s15_s23, %s15_s23 }
   0xf   :  { %p1626_p7 = scmp.lt.s32.totalorder %s1620_s26, %s1620_s26 }
  0x11   :  { %p1627_p8 = por %p1626_p7, %p1625_p6 }
  0x13   :  { %p1628_p9 = pnand %p1627_p8, %p1621_p5 }
  0x15   :  { %1631 = shalt.err (!%p1628_p9)  }
  0x16   :  { %s1723_s0 = smov [#allocation8]  }
  0x17   :  { %17 = dma.vmem_to_smem %s15_s23, 16, %s1723_s0, [#allocation6] }
  0x18   :  { %1676 = dma.done.wait [#allocation6], 32 }
  0x19   :  { %1677 = vsyncadd [#allocation6], 4294967264 }
  0x1a   :  { %19 = sfence }
  0x1b   :  { %s1768_s1 = smov 0   ;;  %s1770_s27 = smov 0  }
  0x1c   :  { %s1772_s28 = smov 0   ;;  %s1774_s29 = smov 0  }
  0x1d   :  { %s1776_s30 = smov 0   ;;  %s1778_s6 = smov 0  }
  0x1e   :  { %s1780_s7 = smov 0   ;;  %s1782_s8 = smov 0  }
  0x1f   :  { %s1784_s9 = smov 0   ;;  %s1786_s10 = smov 0  }
  0x20   :  { %s1788_s11 = smov 0  }
  0x21 LB: > { %2058 = sst [smem:[#allocation13_spill]] %s1688_s28  ;;  %s34_s12 = sadd.s32 1, %s1712_s9  ;;  %s1720_s11 = sphi %s1788_s11, %s25_s11   ;;  %s1716_s10 = sphi %s1786_s10, %s2081_s10   ;;  %s1712_s9 = sphi %s1784_s9, %s2080_s9   ;;  %s1708_s8 = sphi %s1782_s8, %s2079_s8   ;;  %s1704_s7 = sphi %s1780_s7, %s2078_s7   ;;  %s1700_s6 = sphi %s1778_s6, %s2077_s6   ;;  %s1696_s30 = sphi %s1776_s30, %s2076_s30   ;;  %s1692_s29 = sphi %s1774_s29, %s2075_s29   ;;  %s1688_s28 = sphi %s1772_s28, %s2074_s28   ;;  %s1684_s27 = sphi %s1770_s27, %s2073_s27   ;;  %s1680_s1 = sphi %s1768_s1, %s2072_s1  }
  0x22   : > { %2059 = sst [smem:[#allocation14_spill]] %s1704_s7  ;;  %p35_p10 = scmp.ge.s32.totalorder %s34_s12, 10 }
  0x23   : > { %2060 = sst [smem:[#allocation15_spill]] %s1708_s8  ;;  %s37_s13 = sadd.s32 1, %s1716_s10 }
  0x24   : > { %s41_s14 = sld [smem:[#allocation7 + %s1712_s9]]  ;;  %p55_p11 = scmp.ne.s32.totalorder %s1700_s6, %s1696_s30 }
  0x25   : > { %s2083_s12 = smov (%p35_p10, %s34_s12), 0  ;;  %s2085_s13 = smov (!%p35_p10, %s37_s13), %s1716_s10 }
  0x26   : > { %s42_s15 = sld [smem:[#allocation7 + %s2083_s12]]  ;;  %p56_p12 = scmp.eq.s32.totalorder %s1720_s11, 0 }
  0x27   : > { %p39_p13 = scmp.ge.s32.totalorder %s2085_s13, 2  ;;  %s71_s16 = sld [smem:[#allocation8 + %s1712_s9]] }
  0x28   : > { %p1836_p0 = por %p56_p12, %p55_p11  ;;  %s72_s18 = sld [smem:[#allocation8 + %s2083_s12]] }
  0x29   : > { %s2087_s13 = smov (%p39_p13, %s2085_s13), 0  ;;  %s48_s19 = sadd.s32 1, %s1700_s6 }
  0x2a   : > { %2062 = sst [smem:[#allocation16_spill]] %s2087_s13  ;;  %p85_p1 = scmp.ne.s32.totalorder %s1692_s29, %s1688_s28 }
  0x2b   : > { %s43_s20 = ssub.s32 %s1716_s10, %s2087_s13  ;;  %s101_s21 = sld [smem:[#allocation8 + %s1712_s9]] }
  0x2c   : > { %s44_s22 = ssub.s32 %s41_s14, %s42_s15  ;;  %p1851_p2 = por %p85_p1, %p56_p12 }
  0x2d   : > { %s45_s24 = sor.u32 %s44_s22, %s43_s20  ;;  %s102_s25 = sld [smem:[#allocation8 + %s2083_s12]] }
  0x2e   : > { %p46_p3 = scmp.eq.s32.totalorder %s45_s24, 0  ;;  %s74_s26 = ssub.s32 %s71_s16, %s72_s18 }
  0x2f   : > { %s75_s0 = sor.u32 %s74_s26, %s43_s20  ;;  %s78_s5 = sadd.s32 1, %s1692_s29 }
  0x30   : > { %s1858_s8 = scalar_select %p46_p3, %s1700_s6, %s48_s19  }
  0x31   : > { %p76_p4 = scmp.eq.s32.totalorder %s75_s0, 0  ;;  %p115_p5 = scmp.ne.s32.totalorder %s1684_s27, %s1680_s1 }
  0x32   : > { %s108_s28 = sadd.s32 1, %s1684_s27  ;;  %p1346_p8 = scmp.ge.s32.totalorder %s1720_s11, 20 }
  0x33   : > { %s1863_s13 = scalar_select %p76_p4, %s1692_s29, %s78_s5  }
  0x34   : > { %s104_s7 = ssub.s32 %s101_s21, %s102_s25  ;;  %p1867_p6 = por %p115_p5, %p56_p12 }
  0x35   : > { %s105_s15 = sor.u32 %s104_s7, %s43_s20  ;;  %171 = sbr.rel (%p1346_p8) target bundleno = 99 (0x63), region = 16 }
  0x36   : > { %p106_p7 = scmp.eq.s32.totalorder %s105_s15, 0 }
  0x38   : > { %s1873_s22 = scalar_select %p106_p7, %s1684_s27, %s108_s28  }
  0x3c   : > { %174 = sbr.rel (!%p1836_p0) target bundleno = 73 (0x49), region = 20  ;;  %s179_s5 = sld [smem:[#allocation7 + %s1712_s9]] (%p1836_p0) }
  0x3d   : > { %s176_s16 = sand.u32 (%p1836_p0), 1, %s1700_s6   ;;  %s1457_s18 = smul.u32 (%p1836_p0), 48, %s1716_s10 }
  0x3e   : > { %s1347_s19 = sshll.u32 (%p1836_p0), %s176_s16, 4  ;;  %s2065_s2 = sld [smem:[#allocation17_spill]] (%p1836_p0) }
  0x3f   : > { %s178_s26 = scalar_lea.vmem (%p1836_p0), [#allocation9], %s1347_s19 }
  0x42   : > { %s1456_s21 = smul.u32 (%p1836_p0), 12, %s179_s5 }
  0x44   : > { %s183_s24 = sadd.s32 %s1457_s18, %s1456_s21 }
  0x45   : > { %s1350_s7 = sshll.u32 %s183_s24, 2 }
  0x46   : > { %s185_s28 = scalar_lea.vmem %s2065_s2, %s1350_s7 }
  0x47   : > { %v215_v0 = vld [vmem:[%s185_s28] sm:$0xff]  ;;  %v217_v1 = vld [vmem:[%s185_s28 + $0x18] sm:$0xff] }
  0x48   : > { %216 = vst [vmem:[%s178_s26] sm:$0xff] %v215_v0  ;;  %218 = vst [vmem:[%s178_s26 + $0x8] sm:$0xff] %v217_v1 }
  0x49 PF: > { %224 = sbr.rel (!%p1851_p2) target bundleno = 86 (0x56), region = 58  ;;  %s229_s17 = sld [smem:[#allocation8 + %s1712_s9]] (%p1851_p2) }
  0x4a   : > { %s226_s0 = sand.u32 (%p1851_p2), 1, %s1692_s29   ;;  %s1242_s15 = smul.u32 (%p1851_p2), 48, %s1716_s10 }
  0x4b   : > { %s1351_s5 = sshll.u32 (%p1851_p2), %s226_s0, 4  ;;  %s2066_s3 = sld [smem:[#allocation18_spill]] (%p1851_p2) }
  0x4c   : > { %s228_s20 = scalar_lea.vmem (%p1851_p2), [#allocation10], %s1351_s5 }
  0x4f   : > { %s1241_s16 = smul.u32 (%p1851_p2), 12, %s229_s17 }
  0x51   : > { %s1243_s18 = sadd.s32 %s1242_s15, %s1241_s16 }
  0x52   : > { %s1352_s21 = sshll.u32 %s1243_s18, 2 }
  0x53   : > { %s1245_s19 = scalar_lea.vmem %s2066_s3, %s1352_s21 }
  0x54   : > { %v1353_v2 = vld [vmem:[%s1245_s19 + $0x8] sm:$0xff]  ;;  %v1354_v3 = vld [vmem:[%s1245_s19 + $0x20] sm:$0xff] }
  0x55   : > { %267 = vst [vmem:[%s228_s20] sm:$0xff] %v1353_v2  ;;  %269 = vst [vmem:[%s228_s20 + $0x8] sm:$0xff] %v1354_v3 }
  0x56 PF: > { %275 = sbr.rel (!%p1867_p6) target bundleno = 99 (0x63), region = 96  ;;  %s280_s23 = sld [smem:[#allocation8 + %s1712_s9]] (%p1867_p6) }
  0x57   : > { %s277_s25 = sand.u32 (%p1867_p6), 1, %s1684_s27   ;;  %s1250_s28 = smul.u32 (%p1867_p6), 48, %s1716_s10 }
  0x58   : > { %s1355_s26 = sshll.u32 (%p1867_p6), %s277_s25, 4 }
  0x59   : > { %s279_s21 = scalar_lea.vmem (%p1867_p6), [#allocation11], %s1355_s26 }
  0x5c   : > { %s1249_s17 = smul.u32 (%p1867_p6), 12, %s280_s23 }
  0x5e   : > { %s1251_s0 = sadd.s32 %s1250_s28, %s1249_s17 }
  0x5f   : > { %s1356_s15 = sshll.u32 %s1251_s0, 2 }
  0x60   : > { %s1253_s5 = scalar_lea.vmem %s2048_s4, %s1356_s15 }
  0x61   : > { %v1357_v4 = vld [vmem:[%s1253_s5 + $0x10] sm:$0xff]  ;;  %v1358_v5 = vld [vmem:[%s1253_s5 + $0x28] sm:$0xff] }
  0x62   : > { %318 = vst [vmem:[%s279_s21] sm:$0xff] %v1357_v4  ;;  %320 = vst [vmem:[%s279_s21 + $0x8] sm:$0xff] %v1358_v5 }
  0x63 PF: > { %p1359_p9 = scmp.ge.s32.totalorder %s1720_s11, 1  ;;  %p325_p10 = scmp.lt.s32.totalorder %s1720_s11, 21 }
  0x65   : > { %p326_p11 = pnand %p1359_p9, %p325_p10 }
  0x66   : > { %s2067_s14 = sld [smem:[#allocation13_spill]] (!%p326_p11)  ;;  %s2068_s24 = sld [smem:[#allocation14_spill]] (!%p326_p11) }
  0x67   : > { %329 = sbr.rel (%p326_p11) target bundleno = 2701 (0xa8d), region = 134  ;;  %s2069_s7 = sld [smem:[#allocation15_spill]] (!%p326_p11) }
  0x68   : > { %s332_s19 = sand.u32 (!%p326_p11), 1, %s1696_s30   ;;  %s346_s28 = sand.u32 (!%p326_p11), 1, %s1680_s1  }
  0x69   : > { %s1360_s23 = sshll.u32 (!%p326_p11), %s332_s19, 4  ;;  %s1362_s17 = sshll.u32 (!%p326_p11), %s346_s28, 4 }
  0x6a   : > { %s2070_s19 = sld [smem:[#allocation19_spill]] (!%p326_p11)  ;;  %s334_s1 = scalar_lea.vmem (!%p326_p11), [#allocation9], %s1360_s23 }
  0x6b   : > { %s1921_s3 = scalar_lea.vmem (!%p326_p11), [#allocation11], %s1362_s17 }
  0x6c   : > { %s339_s20 = sand.u32 (!%p326_p11), 1, %s2067_s14   ;;  %s389_s26 = sld [smem:[#allocation7 + %s2068_s24]] (!%p326_p11) }
  0x6d   : > { %s1361_s25 = sshll.u32 (!%p326_p11), %s339_s20, 4  ;;  %p391_p12 = scmp.lt.s32.totalorder (!%p326_p11), %s2069_s7, 1 }
  0x6e   : > { %s1908_s0 = sld [smem:[#allocation7 + %s2068_s24]]  ;;  %s1919_s28 = scalar_lea.vmem [#allocation10], %s1361_s25 }
  0x6f   : > { %s2089_s7 = smov (!%p391_p12, %s2069_s7), 1  ;;  %s1912_s15 = sld [smem:[#allocation8 + %s2068_s24]] }
  0x70   : > { %s1365_s18 = sshll.u32 %s2089_s7, 4 }
  0x72   : > { %s1363_s16 = sshll.u32 %s389_s26, 1 }
  0x73   : > { %p393_p13 = scmp.lt.s32.totalorder %s1363_s16, 7 }
  0x75   : > { %s2091_s16 = smov (!%p393_p13, %s1363_s16), 7  ;;  %p1367_p0 = scmp.ne.s32.totalorder %s1912_s15, 0 }
  0x76   : > { %s1364_s5 = sshll.u32 %s2091_s16, 1  ;;  %v409_v6 = vld [vmem:[%s334_s1] sm:$0xff] (!%p1367_p0)  ;;  %v410_v7 = vld [vmem:[%s334_s1 + $0x8] sm:$0xff] (!%p1367_p0)  ;;  %vm423_vm0 = vcmask (!%p1367_p0), 7168   ;;  %v1724_v12 = vmov (!%p1367_p0), -inf   ;;  %v1725_v13 = vmov (!%p1367_p0), 0.0  }
  0x77   : > { %s397_s21 = sadd.s32 %s1365_s18, %s1364_s5  ;;  %408 = sbr.rel (%p1367_p0) target bundleno = 127 (0x7f), region = 150  ;;  %v411_v8 = vunpack.c.l.bf16 (!%p1367_p0), %v409_v6  ;;  %v413_v9 = vunpack.c.l.bf16 (!%p1367_p0), %v410_v7  ;;  %v412_v10 = vunpack.c.h.bf16 (!%p1367_p0), %v409_v6  ;;  %v414_v11 = vunpack.c.h.bf16 (!%p1367_p0), %v410_v7  ;;  %424 = vst.msk [vmem:[#allocation3] sm:$0xff] (!%p1367_p0), %vm423_vm0, %v1724_v12  ;;  %425 = vst.msk [vmem:[#allocation3 + $0x8] sm:$0xff] (!%p1367_p0), %vm423_vm0, %v1724_v12 }
  0x78   : > { %s1366_s2 = sshll.u32 %s397_s21, 2  ;;  %426 = vst.msk [vmem:[#allocation3 + $0x10] sm:$0xff] (!%p1367_p0), %vm423_vm0, %v1724_v12  ;;  %427 = vst.msk [vmem:[#allocation3 + $0x18] sm:$0xff] (!%p1367_p0), %vm423_vm0, %v1724_v12 }
  0x79   : > { %s1917_s20 = scalar_lea.vmem %s2070_s19, %s1366_s2  ;;  %428 = vst.msk [vmem:[#allocation4] sm:$0xff] (!%p1367_p0), %vm423_vm0, %v1725_v13  ;;  %429 = vst.msk [vmem:[#allocation4 + $0x8] sm:$0xff] (!%p1367_p0), %vm423_vm0, %v1725_v13  ;;  %v415_v14 = vmul.f32 (!%p1367_p0), 0.088388346, %v411_v8  ;;  %v417_v15 = vmul.f32 (!%p1367_p0), 0.088388346, %v413_v9 }
  0x7a   : > { %430 = vst.msk [vmem:[#allocation4 + $0x10] sm:$0xff] (!%p1367_p0), %vm423_vm0, %v1725_v13  ;;  %431 = vst.msk [vmem:[#allocation4 + $0x18] sm:$0xff] (!%p1367_p0), %vm423_vm0, %v1725_v13  ;;  %v416_v16 = vmul.f32 (!%p1367_p0), 0.088388346, %v412_v10  ;;  %v418_v17 = vmul.f32 (!%p1367_p0), 0.088388346, %v414_v11 }
  0x7b   : > { %432 = vst [vmem:[#allocation5] sm:$0xff] (!%p1367_p0), %v1725_v13  ;;  %433 = vst [vmem:[#allocation5 + $0x8] sm:$0xff] (!%p1367_p0), %v1725_v13  ;;  %v419_v18 = vpack.c.bf16 (!%p1367_p0), %v417_v15, %v415_v14 }
  0x7c   : > { %434 = vst [vmem:[#allocation5 + $0x10] sm:$0xff] (!%p1367_p0), %v1725_v13  ;;  %435 = vst [vmem:[#allocation5 + $0x18] sm:$0xff] (!%p1367_p0), %v1725_v13  ;;  %v420_v19 = vpack.c.bf16 (!%p1367_p0), %v418_v17, %v416_v16 }
  0x7d   : > { %421 = vst [vmem:[#allocation2] sm:$0xff] (!%p1367_p0), %v419_v18 }
  0x7e   : > { %422 = vst [vmem:[#allocation2 + $0x8] sm:$0xff] %v420_v19 }
  0x7f PF: > { %p1368_p1 = scmp.ge.s32.totalorder %s1912_s15, %s1908_s0 }
  0x80   : > { %v1726_v20 = vmov (!%p1368_p1), 0.0   ;;  %v1558_v21 = vld [vmem:[%s1919_s28] ss:$8 sps:$4 sm:$0xff] (!%p1368_p1)   ;;  %vm1727_vm1 = vmmov (!%p1368_p1), 0   ;;  %vm492_vm2 = vcmask (!%p1368_p1), 130048   ;;  %v1728_v29 = vmov (!%p1368_p1), 0  }
  0x81   : > { %439 = sbr.rel (%p1368_p1) target bundleno = 1373 (0x55d), region = 154  ;;  %1408 = vmatprep.subr.bf16.mxu0 (!%p1368_p1), %v1726_v20  ;;  %1410 = vmatprep.mubr.msk.bf16.mxu0 (!%p1368_p1), %vm1727_vm1, %v1726_v20  ;;  %v490_v30 = vld [vmem:[#allocation3] sm:$0xff] (!%p1368_p1)  ;;  %vm535_vm3 = vcmask (!%p1368_p1), 7168   ;;  %v491_v33 = vld [vmem:[#allocation3 + $0x8] sm:$0xff] (!%p1368_p1)  ;;  %v662_v60 = vld [vmem:[#allocation3 + $0x10] sm:$0xff] (!%p1368_p1) }
  0x82   : > { %1414 = vmatprep.subr.bf16.mxu1 (!%p1368_p1), %v1726_v20  ;;  %1416 = vmatprep.mubr.msk.bf16.mxu1 (!%p1368_p1), %vm1727_vm1, %v1726_v20  ;;  %v1559_v38 = vld [vmem:[%s1921_s3] ss:$8 sps:$4 sm:$0xff] (!%p1368_p1)   ;;  %v1560_v47 = vld [vmem:[%s1919_s28 + $0x4] ss:$8 sps:$4 sm:$0xff] (!%p1368_p1)  }
  0x83   : > { %1409 = vmatpush3.bf16.xpose.msra.mxu0 (!%p1368_p1), %v1558_v21  ;;  %1556 = vset.pattern.permute.xlu1 (!%p1368_p1), %v1728_v29  ;;  %v663_v62 = vld [vmem:[#allocation3 + $0x18] sm:$0xff] (!%p1368_p1) }
  0x84   : > { %1426 = vmatprep.subr.bf16.mxu0 (!%p1368_p1), %v1726_v20  ;;  %1557 = vset.pattern.permute.xlu0 (!%p1368_p1), %v1728_v29  ;;  %v1561_v3 = vld [vmem:[%s1921_s3 + $0x4] ss:$8 sps:$4 sm:$0xff] (!%p1368_p1)  }
  0x85   : > { %v440_v22 = vld [vmem:[#allocation2] sm:$0xff] (!%p1368_p1)  ;;  %1415 = vmatpush3.bf16.msra.mxu1 (!%p1368_p1), %v1559_v38  ;;  %v611_v49 = vld [vmem:[#allocation2 + $0x8] sm:$0xff] (!%p1368_p1) }
  0x86   : > { %1420 = vmatprep.subr.bf16.mxu1 (!%p1368_p1), %v1726_v20 }
  0x8a   : > { %1411 = vmatmul.mubr.bf16.vlgmr.msra.gmra.mrb[0].mxu0 %v440_v22 }
  0x8b   : > { %1428 = vmatprep.mubr.msk.bf16.mxu0 %vm1727_vm1, %v1726_v20  ;;  %1427 = vmatpush3.bf16.msra.mxu0 %v1561_v3 }
 0x15d   : > { %v483_v23 = vpop.f32.mrb[0].mxu0 }
 0x15e   : > { %v1412_v24 = vpop.f32.mrb[1].mxu0  ;;  %v493_v25 = vsel %vm492_vm2, %v483_v23, -inf }
 0x15f   : > { %494 = vmax.xlane.f32.xlu0 %v493_v25  ;;  %v486_v26 = vpop.f32.mrb[2].mxu0  ;;  %v523_v25 = vld [vmem:[#allocation4] sm:$0xff] }
 0x160   : > { %v1413_v27 = vpop.f32.mrb[3].mxu0  ;;  %v496_v28 = vsel %vm492_vm2, %v486_v26, -inf }
 0x163   : > { %497 = vmax.xlane.f32.xlu0 %v496_v28 }
 0x1ec   : > { %v495_v31 = vpop.xlane.xlu0 %494 }
 0x1ed   : > { %v499_v32 = vmax.f32 %v490_v30, %v495_v31 }
 0x1ef   : > { %v501_v34 = vsub.f32 %v490_v30, %v499_v32  ;;  %609 = vst.msk [vmem:[#allocation3] sm:$0xff] %vm535_vm3, %v499_v32  ;;  %509 = vperm.xlu1 %1556, %v499_v32   ;;  %v524_v30 = vld [vmem:[#allocation4 + $0x8] sm:$0xff]  ;;  %v540_v32 = vld [vmem:[#allocation5] sm:$0xff] }
 0x1f0   : > { %v498_v35 = vpop.xlane.xlu0 %497 }
 0x1f1   : > { %v500_v36 = vmax.f32 %v491_v33, %v498_v35  ;;  %v503_v6 = vmul.f32 1.442695, %v501_v34 }
 0x1f3   : > { %v502_v37 = vsub.f32 %v491_v33, %v500_v36  ;;  %610 = vst.msk [vmem:[#allocation3 + $0x8] sm:$0xff] %vm535_vm3, %v500_v36  ;;  %514 = vperm.xlu1 %1556, %v500_v36  }
 0x1f5   : > { %v505_v7 = vmul.f32 1.442695, %v502_v37  ;;  %v541_v37 = vld [vmem:[#allocation5 + $0x8] sm:$0xff] }
 0x26e   : > { %v510_v39 = vpop.permute.xlu1 %509 }
 0x26f   : > { %v517_v40 = vsub.f32 %v483_v23, %v510_v39 }
 0x271   : > { %v519_v41 = vmul.f32 1.442695, %v517_v40 }
 0x272   : > { %v515_v42 = vpop.permute.xlu1 %514 }
 0x273   : > { %v518_v43 = vsub.f32 %v486_v26, %v515_v42  ;;  %1562 = vpow2.f32 %v519_v41  ;;  %v695_v42 = vld [vmem:[#allocation4 + $0x10] sm:$0xff] }
 0x275   : > { %v521_v44 = vmul.f32 1.442695, %v518_v43 }
 0x277   : > { %1564 = vpow2.f32 %v521_v44 }
 0x278   : > { %1566 = vpow2.f32 %v503_v6 }
 0x279   : > { %1568 = vpow2.f32 %v505_v7 }
 0x27d   : > { %v1563_v45 = vpop.eup %1562 }
 0x27e   : > { %v527_v4 = vsel %vm492_vm2, %v1563_v45, 0.0 }
 0x281   : > { %v1565_v46 = vpop.eup %1564 }
 0x282   : > { %v554_v48 = vpack.c.bf16 %v1565_v46, %v1563_v45  ;;  %v530_v5 = vsel %vm492_vm2, %v1565_v46, 0.0  ;;  %v1567_v10 = vpop.eup %1566  ;;  %v696_v45 = vld [vmem:[#allocation4 + $0x18] sm:$0xff] }
 0x283   : > { %v1569_v11 = vpop.eup %1568  ;;  %v525_v27 = vmul.f32 %v1567_v10, %v523_v25 }
 0x284   : > { %1417 = vmatmul.mubr.msk.bf16.vlgmr.msra.gmra.mrb[0].mxu1 %vm492_vm2, %v554_v48  ;;  %v526_v31 = vmul.f32 %v1569_v11, %v524_v30 }
 0x285   : > { %1421 = vmatpush3.bf16.xpose.msra.mxu1 %v1560_v47  ;;  %1422 = vmatprep.mubr.msk.bf16.mxu1 %vm1727_vm1, %v1726_v20 }
 0x28c   : > { %1423 = vmatmul.mubr.bf16.vlgmr.msra.gmra.mrb[4].mxu1 %v611_v49 }
 0x357   : > { %v1938_v50 = vpop.f32.mrb[0].mxu1 }
 0x358   : > { %v1418_v51 = vpop.f32.mrb[1].mxu1 }
 0x359   : > { %v1940_v52 = vpop.f32.mrb[2].mxu1  ;;  %v712_v51 = vld [vmem:[#allocation5 + $0x10] sm:$0xff] }
 0x35a   : > { %v1419_v53 = vpop.f32.mrb[3].mxu1 }
 0x35b   : > { %v713_v53 = vld [vmem:[#allocation5 + $0x18] sm:$0xff] }
 0x35f   : > { %v654_v54 = vpop.f32.mrb[4].mxu1 }
 0x360   : > { %v1424_v55 = vpop.f32.mrb[5].mxu1  ;;  %v664_v56 = vsel %vm492_vm2, %v654_v54, -inf }
 0x361   : > { %665 = vmax.xlane.f32.xlu0 %v664_v56  ;;  %v657_v57 = vpop.f32.mrb[6].mxu1 }
 0x362   : > { %v1425_v58 = vpop.f32.mrb[7].mxu1  ;;  %v667_v59 = vsel %vm492_vm2, %v657_v57, -inf }
 0x363   : > { %668 = vmax.xlane.f32.xlu1 %v667_v59 }
 0x3ee   : > { %v666_v61 = vpop.xlane.xlu0 %665 }
 0x3ef   : > { %v670_v63 = vmax.f32 %v662_v60, %v666_v61 }
 0x3f0   : > { %v669_v0 = vpop.xlane.xlu1 %668 }
 0x3f1   : > { %781 = vst.msk [vmem:[#allocation3 + $0x10] sm:$0xff] %vm535_vm3, %v670_v63  ;;  %v671_v1 = vmax.f32 %v663_v62, %v669_v0  ;;  %680 = vperm.xlu0 %1557, %v670_v63   ;;  %v672_v8 = vsub.f32 %v662_v60, %v670_v63 }
 0x3f3   : > { %v673_v2 = vsub.f32 %v663_v62, %v671_v1  ;;  %782 = vst.msk [vmem:[#allocation3 + $0x18] sm:$0xff] %vm535_vm3, %v671_v1  ;;  %685 = vperm.xlu1 %1556, %v671_v1   ;;  %v674_v9 = vmul.f32 1.442695, %v672_v8 }
 0x3f5   : > { %1570 = vpow2.f32 %v674_v9  ;;  %v676_v24 = vmul.f32 1.442695, %v673_v2 }
 0x3ff   : > { %v1571_v12 = vpop.eup %1570 }
 0x400   : > { %v697_v43 = vmul.f32 %v1571_v12, %v695_v42 }
 0x410   : > { %528 = vadd.xlane.f32.xlu0 %v527_v4 }
 0x417   : > { %531 = vadd.xlane.f32.xlu1 %v530_v5 }
 0x426   : > { %544 = vperm.xlu0 %1557, %v1567_v10  }
 0x428   : > { %549 = vperm.xlu1 %1556, %v1569_v11  }
 0x42c   : > { %716 = vperm.xlu1 %1556, %v1571_v12  }
 0x470   : > { %v681_v13 = vpop.permute.xlu0 %680 }
 0x471   : > { %v688_v14 = vsub.f32 %v654_v54, %v681_v13 }
 0x472   : > { %v686_v15 = vpop.permute.xlu1 %685 }
 0x473   : > { %v690_v16 = vmul.f32 1.442695, %v688_v14  ;;  %v689_v17 = vsub.f32 %v657_v57, %v686_v15 }
 0x475   : > { %1572 = vpow2.f32 %v690_v16  ;;  %v692_v18 = vmul.f32 1.442695, %v689_v17 }
 0x477   : > { %1574 = vpow2.f32 %v692_v18 }
 0x478   : > { %1576 = vpow2.f32 %v676_v24 }
 0x47f   : > { %v1573_v19 = vpop.eup %1572 }
 0x480   : > { %v699_v20 = vsel %vm492_vm2, %v1573_v19, 0.0 }
 0x481   : > { %v1575_v21 = vpop.eup %1574  ;;  %700 = vadd.xlane.f32.xlu0 %v699_v20 }
 0x482   : > { %v726_v22 = vpack.c.bf16 %v1575_v21, %v1573_v19  ;;  %v702_v23 = vsel %vm492_vm2, %v1575_v21, 0.0  ;;  %v1577_v26 = vpop.eup %1576 }
 0x483   : > { %v698_v47 = vmul.f32 %v1577_v26, %v696_v45 }
 0x484   : > { %1429 = vmatmul.mubr.msk.bf16.vlgmr.msra.gmra.mrb[4].mxu0 %vm492_vm2, %v726_v22 }
 0x485   : > { %703 = vadd.xlane.f32.xlu0 %v702_v23 }
 0x49b   : > { %721 = vperm.xlu0 %1557, %v1577_v26  }
 0x49d   : > { %v529_v28 = vpop.xlane.xlu0 %528 }
 0x49e   : > { %v533_v29 = vadd.f32 %v529_v28, %v525_v27 }
 0x4a0   : > { %536 = vst.msk [vmem:[#allocation4] sm:$0xff] %vm535_vm3, %v533_v29 }
 0x4a4   : > { %v532_v33 = vpop.xlane.xlu1 %531 }
 0x4a5   : > { %v534_v34 = vadd.f32 %v532_v33, %v526_v31  ;;  %v545_v35 = vpop.permute.xlu0 %544 }
 0x4a6   : > { %v552_v36 = vmul.f32 %v545_v35, %v540_v32 }
 0x4a7   : > { %537 = vst.msk [vmem:[#allocation4 + $0x8] sm:$0xff] %vm535_vm3, %v534_v34 }
 0x4a8   : > { %v605_v38 = vadd.f32 %v1938_v50, %v552_v36  ;;  %v550_v39 = vpop.permute.xlu1 %549 }
 0x4a9   : > { %v553_v40 = vmul.f32 %v550_v39, %v541_v37 }
 0x4aa   : > { %607 = vst [vmem:[#allocation5] sm:$0xff] %v605_v38 }
 0x4ab   : > { %v606_v41 = vadd.f32 %v1940_v52, %v553_v40 }
 0x4ac   : > { %v717_v50 = vpop.permute.xlu1 %716 }
 0x4ad   : > { %608 = vst [vmem:[#allocation5 + $0x8] sm:$0xff] %v606_v41  ;;  %v724_v55 = vmul.f32 %v717_v50, %v712_v51 }
 0x50e   : > { %v701_v44 = vpop.xlane.xlu0 %700 }
 0x50f   : > { %v705_v46 = vadd.f32 %v701_v44, %v697_v43 }
 0x511   : > { %707 = vst.msk [vmem:[#allocation4 + $0x10] sm:$0xff] %vm535_vm3, %v705_v46 }
 0x512   : > { %v704_v48 = vpop.xlane.xlu0 %703 }
 0x513   : > { %v706_v49 = vadd.f32 %v704_v48, %v698_v47 }
 0x515   : > { %708 = vst.msk [vmem:[#allocation4 + $0x18] sm:$0xff] %vm535_vm3, %v706_v49 }
 0x51a   : > { %v722_v54 = vpop.permute.xlu0 %721 }
 0x51b   : > { %v725_v52 = vmul.f32 %v722_v54, %v713_v53 }
 0x557   : > { %v770_v56 = vpop.f32.mrb[4].mxu0 }
 0x558   : > { %v777_v57 = vadd.f32 %v770_v56, %v724_v55  ;;  %v1430_v58 = vpop.f32.mrb[5].mxu0 }
 0x559   : > { %v773_v59 = vpop.f32.mrb[6].mxu0 }
 0x55a   : > { %779 = vst [vmem:[#allocation5 + $0x10] sm:$0xff] %v777_v57  ;;  %v778_v60 = vadd.f32 %v773_v59, %v725_v52  ;;  %v1431_v61 = vpop.f32.mrb[7].mxu0 }
 0x55c   : > { %780 = vst [vmem:[#allocation5 + $0x18] sm:$0xff] %v778_v60 }
 0x55d PF: > { %p1375_p2 = scmp.ne.s32.totalorder %s1912_s15, %s1908_s0 }
 0x55e   : > { %v1729_v62 = vmov (!%p1375_p2), 0.0   ;;  %v1580_v63 = vld [vmem:[%s1919_s28] ss:$8 sps:$4 sm:$0xff] (!%p1375_p2)   ;;  %vm1730_vm4 = vmmov (!%p1375_p2), 0   ;;  %v837_v1 = vlaneseq (!%p1375_p2)  ;;  %vm848_vm6 = vcmask (!%p1375_p2), 130048  }
 0x55f   : > { %786 = sbr.rel (%p1375_p2) target bundleno = 2701 (0xa8d), region = 158  ;;  %1432 = vmatprep.subr.bf16.mxu0 (!%p1375_p2), %v1729_v62  ;;  %1434 = vmatprep.mubr.msk.bf16.mxu0 (!%p1375_p2), %vm1730_vm4, %v1729_v62  ;;  %v787_v0 = vld [vmem:[#allocation2] sm:$0xff] (!%p1375_p2)  ;;  %v1731_v13 = vmov (!%p1375_p2), 0   ;;  %v1968_v14 = vld [vmem:[#allocation3] sm:$0xff] (!%p1375_p2)  ;;  %vm891_vm8 = vcmask (!%p1375_p2), 7168   ;;  %v847_v17 = vld [vmem:[#allocation3 + $0x8] sm:$0xff] (!%p1375_p2) }
 0x560   : > { %1438 = vmatprep.subr.bf16.mxu1 (!%p1375_p2), %v1729_v62  ;;  %1440 = vmatprep.mubr.msk.bf16.mxu1 (!%p1375_p2), %vm1730_vm4, %v1729_v62  ;;  %v838_v2 = vshrl.u32 (!%p1375_p2), %v837_v1, 7  ;;  %v841_v3 = vand.u32 (!%p1375_p2), 127, %v837_v1  ;;  %v1581_v22 = vld [vmem:[%s1921_s3] ss:$8 sps:$4 sm:$0xff] (!%p1375_p2)   ;;  %v1582_v31 = vld [vmem:[%s1919_s28 + $0x4] ss:$8 sps:$4 sm:$0xff] (!%p1375_p2)  }
 0x561   : > { %1433 = vmatpush3.bf16.xpose.msra.mxu0 (!%p1375_p2), %v1580_v63  ;;  %1578 = vset.pattern.permute.xlu1 (!%p1375_p2), %v1731_v13  ;;  %v967_v33 = vld [vmem:[#allocation2 + $0x8] sm:$0xff] (!%p1375_p2)  ;;  %v1020_v46 = vld [vmem:[#allocation3 + $0x10] sm:$0xff] (!%p1375_p2) }
 0x562   : > { %1450 = vmatprep.subr.bf16.mxu0 (!%p1375_p2), %v1729_v62  ;;  %v839_v4 = vadd.s32 (!%p1375_p2), 8, %v838_v2  ;;  %vm842_vm5 = vcmp.le.s32.totalorder (!%p1375_p2), %v841_v3, %v838_v2  ;;  %1579 = vset.pattern.permute.xlu0 (!%p1375_p2), %v1731_v13  ;;  %v1021_v48 = vld [vmem:[#allocation3 + $0x18] sm:$0xff] (!%p1375_p2) }
 0x563   : > { %1439 = vmatpush3.bf16.msra.mxu1 (!%p1375_p2), %v1581_v22  ;;  %v1583_v54 = vld [vmem:[%s1921_s3 + $0x4] ss:$8 sps:$4 sm:$0xff] (!%p1375_p2)  }
 0x564   : > { %vm843_vm7 = vcmp.le.s32.totalorder (!%p1375_p2), %v841_v3, %v839_v4  ;;  %1444 = vmatprep.subr.bf16.mxu1 (!%p1375_p2), %v1729_v62 }
 0x568   : > { %1435 = vmatmul.mubr.bf16.vlgmr.msra.gmra.mrb[0].mxu0 %v787_v0 }
 0x569   : > { %1452 = vmatprep.mubr.msk.bf16.mxu0 %vm1730_vm4, %v1729_v62  ;;  %1451 = vmatpush3.bf16.msra.mxu0 %v1583_v54  ;;  %v1070_v54 = vld [vmem:[#allocation5 + $0x10] sm:$0xff] }
 0x63b   : > { %v830_v5 = vpop.f32.mrb[0].mxu0 }
 0x63c   : > { %v844_v6 = vsel %vm842_vm5, %v830_v5, -1e+30  ;;  %v1436_v7 = vpop.f32.mrb[1].mxu0 }
 0x63d   : > { %v833_v8 = vpop.f32.mrb[2].mxu0  ;;  %v849_v9 = vsel %vm848_vm6, %v844_v6, -inf }
 0x63e   : > { %v845_v10 = vsel %vm843_vm7, %v833_v8, -1e+30  ;;  %850 = vmax.xlane.f32.xlu0 %v849_v9  ;;  %v1437_v11 = vpop.f32.mrb[3].mxu0 }
 0x63f   : > { %v852_v12 = vsel %vm848_vm6, %v845_v10, -inf  ;;  %v879_v11 = vld [vmem:[#allocation4] sm:$0xff] }
 0x642   : > { %853 = vmax.xlane.f32.xlu0 %v852_v12 }
 0x6cb   : > { %v851_v15 = vpop.xlane.xlu0 %850 }
 0x6cc   : > { %v1971_v16 = vmax.f32 %v1968_v14, %v851_v15 }
 0x6ce   : > { %v857_v18 = vsub.f32 %v1968_v14, %v1971_v16  ;;  %965 = vst.msk [vmem:[#allocation3] sm:$0xff] %vm891_vm8, %v1971_v16  ;;  %865 = vperm.xlu1 %1578, %v1971_v16  }
 0x6cf   : > { %v854_v19 = vpop.xlane.xlu0 %853 }
 0x6d0   : > { %v856_v20 = vmax.f32 %v847_v17, %v854_v19  ;;  %v859_v8 = vmul.f32 1.442695, %v857_v18  ;;  %v880_v19 = vld [vmem:[#allocation4 + $0x8] sm:$0xff] }
 0x6d2   : > { %v858_v21 = vsub.f32 %v847_v17, %v856_v20  ;;  %966 = vst.msk [vmem:[#allocation3 + $0x8] sm:$0xff] %vm891_vm8, %v856_v20  ;;  %870 = vperm.xlu1 %1578, %v856_v20  }
 0x6d4   : > { %v861_v52 = vmul.f32 1.442695, %v858_v21 }
 0x74d   : > { %v866_v23 = vpop.permute.xlu1 %865 }
 0x74e   : > { %v873_v24 = vsub.f32 %v844_v6, %v866_v23  ;;  %v897_v23 = vld [vmem:[#allocation5 + $0x8] sm:$0xff] }
 0x750   : > { %v875_v25 = vmul.f32 1.442695, %v873_v24 }
 0x751   : > { %v871_v26 = vpop.permute.xlu1 %870 }
 0x752   : > { %v874_v27 = vsub.f32 %v845_v10, %v871_v26  ;;  %1584 = vpow2.f32 %v875_v25 }
 0x754   : > { %v877_v28 = vmul.f32 1.442695, %v874_v27 }
 0x756   : > { %1586 = vpow2.f32 %v877_v28  ;;  %v1053_v28 = vld [vmem:[#allocation4 + $0x10] sm:$0xff] }
 0x757   : > { %1588 = vpow2.f32 %v861_v52 }
 0x75c   : > { %v1585_v29 = vpop.eup %1584 }
 0x75d   : > { %v883_v55 = vsel %vm848_vm6, %v1585_v29, 0.0 }
 0x760   : > { %v1587_v30 = vpop.eup %1586 }
 0x761   : > { %v910_v32 = vpack.c.bf16 %v1587_v30, %v1585_v29  ;;  %v886_v56 = vsel %vm848_vm6, %v1587_v30, 0.0  ;;  %v1589_v59 = vpop.eup %1588 }
 0x762   : > { %v882_v20 = vmul.f32 %v1589_v59, %v880_v19 }
 0x763   : > { %1441 = vmatmul.mubr.msk.bf16.vlgmr.msra.gmra.mrb[0].mxu1 %vm848_vm6, %v910_v32 }
 0x764   : > { %1445 = vmatpush3.bf16.xpose.msra.mxu1 %v1582_v31  ;;  %1446 = vmatprep.mubr.msk.bf16.mxu1 %vm1730_vm4, %v1729_v62  ;;  %v1054_v31 = vld [vmem:[#allocation4 + $0x18] sm:$0xff] }
 0x76b   : > { %1447 = vmatmul.mubr.bf16.vlgmr.msra.gmra.mrb[4].mxu1 %v967_v33 }
 0x836   : > { %v1983_v34 = vpop.f32.mrb[0].mxu1 }
 0x837   : > { %v1442_v35 = vpop.f32.mrb[1].mxu1 }
 0x838   : > { %v1985_v36 = vpop.f32.mrb[2].mxu1 }
 0x839   : > { %v1443_v37 = vpop.f32.mrb[3].mxu1 }
 0x83e   : > { %v1010_v38 = vpop.f32.mrb[4].mxu1 }
 0x83f   : > { %v1017_v39 = vsel %vm842_vm5, %v1010_v38, -1e+30  ;;  %v1448_v40 = vpop.f32.mrb[5].mxu1 }
 0x840   : > { %v1013_v41 = vpop.f32.mrb[6].mxu1  ;;  %v1022_v42 = vsel %vm848_vm6, %v1017_v39, -inf }
 0x841   : > { %v1018_v43 = vsel %vm843_vm7, %v1013_v41, -1e+30  ;;  %1023 = vmax.xlane.f32.xlu0 %v1022_v42  ;;  %v1449_v44 = vpop.f32.mrb[7].mxu1 }
 0x842   : > { %v1025_v45 = vsel %vm848_vm6, %v1018_v43, -inf }
 0x843   : > { %1026 = vmax.xlane.f32.xlu1 %v1025_v45 }
 0x8ce   : > { %v1024_v47 = vpop.xlane.xlu0 %1023 }
 0x8cf   : > { %v1028_v49 = vmax.f32 %v1020_v46, %v1024_v47 }
 0x8d0   : > { %v1027_v51 = vpop.xlane.xlu1 %1026 }
 0x8d1   : > { %1139 = vst.msk [vmem:[#allocation3 + $0x10] sm:$0xff] %vm891_vm8, %v1028_v49  ;;  %v1029_v50 = vmax.f32 %v1021_v48, %v1027_v51  ;;  %1038 = vperm.xlu0 %1579, %v1028_v49   ;;  %v1030_v57 = vsub.f32 %v1020_v46, %v1028_v49 }
 0x8d3   : > { %v1031_v53 = vsub.f32 %v1021_v48, %v1029_v50  ;;  %1140 = vst.msk [vmem:[#allocation3 + $0x18] sm:$0xff] %vm891_vm8, %v1029_v50  ;;  %1043 = vperm.xlu1 %1578, %v1029_v50   ;;  %v1032_v58 = vmul.f32 1.442695, %v1030_v57 }
 0x8d5   : > { %1590 = vpow2.f32 %v1032_v58  ;;  %v1034_v9 = vmul.f32 1.442695, %v1031_v53 }
 0x8df   : > { %v1591_v60 = vpop.eup %1590 }
 0x8e0   : > { %v1055_v29 = vmul.f32 %v1591_v60, %v1053_v28 }
 0x8f0   : > { %884 = vadd.xlane.f32.xlu0 %v883_v55 }
 0x8f7   : > { %887 = vadd.xlane.f32.xlu1 %v886_v56 }
 0x908   : > { %905 = vperm.xlu1 %1578, %v1589_v59  }
 0x90c   : > { %1074 = vperm.xlu1 %1578, %v1591_v60  }
 0x950   : > { %v1039_v61 = vpop.permute.xlu0 %1038 }
 0x951   : > { %v1046_v62 = vsub.f32 %v1017_v39, %v1039_v61 }
 0x952   : > { %v1044_v63 = vpop.permute.xlu1 %1043 }
 0x953   : > { %v1048_v0 = vmul.f32 1.442695, %v1046_v62  ;;  %v1047_v1 = vsub.f32 %v1018_v43, %v1044_v63 }
 0x955   : > { %1592 = vpow2.f32 %v1048_v0  ;;  %v1050_v2 = vmul.f32 1.442695, %v1047_v1 }
 0x957   : > { %1594 = vpow2.f32 %v1050_v2 }
 0x958   : > { %1596 = vpow2.f32 %v859_v8 }
 0x959   : > { %1598 = vpow2.f32 %v1034_v9 }
 0x95f   : > { %v1593_v3 = vpop.eup %1592 }
 0x960   : > { %v1057_v4 = vsel %vm848_vm6, %v1593_v3, 0.0 }
 0x961   : > { %v1595_v5 = vpop.eup %1594  ;;  %1058 = vadd.xlane.f32.xlu0 %v1057_v4 }
 0x962   : > { %v1084_v6 = vpack.c.bf16 %v1595_v5, %v1593_v3  ;;  %v1060_v7 = vsel %vm848_vm6, %v1595_v5, 0.0  ;;  %v1597_v10 = vpop.eup %1596 }
 0x963   : > { %v881_v12 = vmul.f32 %v1597_v10, %v879_v11  ;;  %v1599_v15 = vpop.eup %1598 }
 0x964   : > { %1453 = vmatmul.mubr.msk.bf16.vlgmr.msra.gmra.mrb[4].mxu0 %vm848_vm6, %v1084_v6  ;;  %v1056_v33 = vmul.f32 %v1599_v15, %v1054_v31 }
 0x965   : > { %1061 = vadd.xlane.f32.xlu0 %v1060_v7 }
 0x97b   : > { %900 = vperm.xlu0 %1579, %v1597_v10  }
 0x97d   : > { %v885_v13 = vpop.xlane.xlu0 %884 }
 0x97e   : > { %v889_v17 = vadd.f32 %v885_v13, %v881_v12 }
 0x97f   : > { %1079 = vperm.xlu0 %1579, %v1599_v15  }
 0x980   : > { %892 = vst.msk [vmem:[#allocation4] sm:$0xff] %vm891_vm8, %v889_v17 }
 0x984   : > { %v888_v21 = vpop.xlane.xlu1 %887 }
 0x985   : > { %v890_v22 = vadd.f32 %v888_v21, %v882_v20 }
 0x987   : > { %893 = vst.msk [vmem:[#allocation4 + $0x8] sm:$0xff] %vm891_vm8, %v890_v22  ;;  %v1141_v14 = vld [vmem:[#allocation4] sm:$0xff] }
 0x988   : > { %v906_v16 = vpop.permute.xlu1 %905  ;;  %1600 = vrcp.f32 %v1141_v14 }
 0x989   : > { %v909_v18 = vmul.f32 %v906_v16, %v897_v23 }
 0x98b   : > { %v962_v24 = vadd.f32 %v1985_v36, %v909_v18  ;;  %v896_v36 = vld [vmem:[#allocation5] sm:$0xff] }
 0x98c   : > { %v1075_v45 = vpop.permute.xlu1 %1074 }
 0x98d   : > { %964 = vst [vmem:[#allocation5 + $0x8] sm:$0xff] %v962_v24  ;;  %v1082_v55 = vmul.f32 %v1075_v45, %v1070_v54 }
 0x98e   : > { %v1142_v25 = vld [vmem:[#allocation4 + $0x8] sm:$0xff] }
 0x98f   : > { %1602 = vrcp.f32 %v1142_v25 }
 0x992   : > { %v1601_v26 = vpop.eup %1600 }
 0x993   : > { %1149 = vperm.xlu1 %1578, %v1601_v26  }
 0x999   : > { %v1603_v27 = vpop.eup %1602 }
 0x99a   : > { %1154 = vperm.xlu0 %1579, %v1603_v27  }
 0x9ee   : > { %v1059_v30 = vpop.xlane.xlu0 %1058 }
 0x9ef   : > { %v1063_v32 = vadd.f32 %v1059_v30, %v1055_v29 }
 0x9f1   : > { %1065 = vst.msk [vmem:[#allocation4 + $0x10] sm:$0xff] %vm891_vm8, %v1063_v32 }
 0x9f2   : > { %v1062_v35 = vpop.xlane.xlu0 %1061 }
 0x9f3   : > { %v1064_v37 = vadd.f32 %v1062_v35, %v1056_v33 }
 0x9f5   : > { %1066 = vst.msk [vmem:[#allocation4 + $0x18] sm:$0xff] %vm891_vm8, %v1064_v37 }
 0x9f8   : > { %v1169_v38 = vld [vmem:[#allocation4 + $0x10] sm:$0xff] }
 0x9f9   : > { %1604 = vrcp.f32 %v1169_v38 }
 0x9fa   : > { %v901_v39 = vpop.permute.xlu0 %900 }
 0x9fb   : > { %v908_v40 = vmul.f32 %v901_v39, %v896_v36 }
 0x9fc   : > { %v1170_v41 = vld [vmem:[#allocation4 + $0x18] sm:$0xff] }
 0x9fd   : > { %v961_v42 = vadd.f32 %v1983_v34, %v908_v40  ;;  %1606 = vrcp.f32 %v1170_v41  ;;  %v1071_v34 = vld [vmem:[#allocation5 + $0x18] sm:$0xff] }
 0x9fe   : > { %v1080_v48 = vpop.permute.xlu0 %1079 }
 0x9ff   : > { %963 = vst [vmem:[#allocation5] sm:$0xff] %v961_v42  ;;  %v1083_v52 = vmul.f32 %v1080_v48, %v1071_v34 }
 0xa03   : > { %v1605_v43 = vpop.eup %1604 }
 0xa04   : > { %1177 = vperm.xlu1 %1578, %v1605_v43  }
 0xa07   : > { %v1607_v44 = vpop.eup %1606 }
 0xa08   : > { %1182 = vperm.xlu0 %1579, %v1607_v44  }
 0xa12   : > { %v1150_v46 = vpop.permute.xlu1 %1149 }
 0xa13   : > { %v1157_v47 = vmul.f32 %v1150_v46, %v961_v42 }
 0xa15   : > { %v1388_v49 = vpack.c.bf16 %v1157_v47, %v1157_v47 }
 0xa17   : > { %1167 = vst [vmem:[%s1917_s20] sm:$0xf] %v1388_v49 }
 0xa19   : > { %v1155_v51 = vpop.permute.xlu0 %1154 }
 0xa1a   : > { %v1158_v50 = vmul.f32 %v1155_v51, %v962_v24 }
 0xa1c   : > { %v1389_v53 = vpack.c.bf16 %v1158_v50, %v1158_v50 }
 0xa1e   : > { %1168 = vst [vmem:[%s1917_s20 + $0x8] sm:$0xf] %v1389_v53 }
 0xa37   : > { %v1128_v56 = vpop.f32.mrb[4].mxu0 }
 0xa38   : > { %v1135_v57 = vadd.f32 %v1128_v56, %v1082_v55  ;;  %v1454_v58 = vpop.f32.mrb[5].mxu0 }
 0xa39   : > { %v1131_v59 = vpop.f32.mrb[6].mxu0 }
 0xa3a   : > { %1137 = vst [vmem:[#allocation5 + $0x10] sm:$0xff] %v1135_v57  ;;  %v1136_v60 = vadd.f32 %v1131_v59, %v1083_v52  ;;  %v1455_v61 = vpop.f32.mrb[7].mxu0 }
 0xa3c   : > { %1138 = vst [vmem:[#allocation5 + $0x18] sm:$0xff] %v1136_v60 }
 0xa83   : > { %v1178_v62 = vpop.permute.xlu1 %1177 }
 0xa84   : > { %v1185_v63 = vmul.f32 %v1178_v62, %v1135_v57 }
 0xa86   : > { %v1390_v0 = vpack.c.bf16 %v1185_v63, %v1185_v63 }
 0xa87   : > { %v1183_v1 = vpop.permute.xlu0 %1182 }
 0xa88   : > { %1195 = vst [vmem:[%s1917_s20 + $0x4] sm:$0xf] %v1390_v0  ;;  %v1186_v2 = vmul.f32 %v1183_v1, %v1136_v60 }
 0xa8a   : > { %v1391_v3 = vpack.c.bf16 %v1186_v2, %v1186_v2 }
 0xa8c   : > { %1196 = vst [vmem:[%s1917_s20 + $0xc] sm:$0xf] %v1391_v3 }
 0xa8d PF: > { %s25_s11 = sadd.s32 1, %s1720_s11   ;;  %s2071_s2 = sld [smem:[#allocation16_spill]] }
 0xa8e   : > { %p22_p3 = scmp.ge.s32.totalorder %s25_s11, 22   ;;  %s2072_s1 = smov %s1684_s27 }
 0xa8f   : > { %s2073_s27 = smov %s1873_s22  ;;  %s2074_s28 = smov %s1692_s29 }
 0xa90   : > { %s2075_s29 = smov %s1863_s13  ;;  %s2076_s30 = smov %s1700_s6 }
 0xa91   : > { %s2077_s6 = smov %s1858_s8  ;;  %s2078_s7 = smov %s1712_s9 }
 0xa92   : > { %s2079_s8 = smov %s1716_s10  ;;  %s2080_s9 = smov %s2083_s12 }
 0xa93   : > { %s2081_s10 = smov %s2071_s2  ;;  %24 = sbr.rel (!%p22_p3) target bundleno = 33 (0x21), region = 215 }

// kernel: causal_self_attention.3
= control target key start
LH: loop header
LB: loop body
LE: loop exit
PB: predicated region body
PF: predicated region fallthrough
CT: control target
= control target key end

     0   :  { %8 = vsyncpa [#allocation4], 0  ;;  %s2749_s0 = inlined_call_operand.hbm [shape: f32[128,256], index: 0, kind: input, shape index: {}]   ;;  %s2750_s1 = inlined_call_operand.hbm [shape: bf16[256,768], index: 1, kind: input, shape index: {}]   ;;  %s2751_s2 = inlined_call_operand.vmem [shape: f32[1,768], index: 2, kind: input, shape index: {}]   ;;  %s2752_s3 = inlined_call_operand.vmem [shape: bf16[128,768], index: 3, kind: output, shape index: {}]  }
   0x1   :  { %9 = vsyncpa [#allocation6], 0  ;;  %s2384_s12 = smov [#allocation3]   ;;  %s2336_s16 = scalar_lea.hbm %s2749_s0, 4096 }
   0x2   :  { %s15_s13 = sshll.u32 %s2384_s12, 4  ;;  %p2337_p0 = scmp.ne.s32.totalorder %s2749_s0, %s2336_s16  ;;  %s16_s13 = int_to_ptr.vmem [resolvable:$true] %s15_s13 }
   0x3   :  { %p2340_p1 = scmp.lt.u32.totalorder %s2336_s16, %s2749_s0 }
   0x5   :  { %p2342_p2 = pnand %p2340_p1, %p2337_p0 }
   0x7   :  { %2345 = shalt.err (!%p2342_p2)
}
   0x8   :  { %s2346_s21 = scalar_lea.vmem %s16_s13, 4096  ;;  %p2351_p4 = scmp.lt.s32.totalorder %s16_s13, %s16_s13 }
   0x9   :  { %p2347_p3 = scmp.ne.s32.totalorder %s16_s13, %s2346_s21  ;;  %p2352_p5 = scmp.lt.s32.totalorder %s2346_s21, %s2346_s21 }
   0xb   :  { %p2353_p6 = por %p2352_p5, %p2351_p4 }
   0xd   :  { %p2354_p7 = pnand %p2353_p6, %p2347_p3 }
   0xf   :  { %2357 = shalt.err (!%p2354_p7)
}
  0x10   :  { %s2385_s22 = smov 256   ;;  %s2386_s23 = smov 16  }
  0x11   :  { %21 = dma.hbm_to_vmem [thread:$0]  %s2749_s0, 4096, %s16_s13, [#allocation4], %s2385_s22, %s2385_s22, %s2386_s23  }
  0x12   :  { %s2387_s26 = smov [#allocation5]   ;;  %s2358_s30 = scalar_lea.hbm %s2750_s1, 12288 }
  0x13   :  { %s27_s27 = sshll.u32 %s2387_s26, 4  ;;  %p2359_p8 = scmp.ne.s32.totalorder %s2750_s1, %s2358_s30  ;;  %s28_s27 = int_to_ptr.vmem [resolvable:$true] %s27_s27 }
  0x14   :  { %p2362_p9 = scmp.lt.u32.totalorder %s2358_s30, %s2750_s1 }
  0x16   :  { %p2364_p10 = pnand %p2362_p9, %p2359_p8 }
  0x18   :  { %2367 = shalt.err (!%p2364_p10)
}
  0x19   :  { %s2368_s8 = scalar_lea.vmem %s28_s27, 12288  ;;  %p2373_p12 = scmp.lt.s32.totalorder %s28_s27, %s28_s27 }
  0x1a   :  { %p2369_p11 = scmp.ne.s32.totalorder %s28_s27, %s2368_s8  ;;  %p2374_p13 = scmp.lt.s32.totalorder %s2368_s8, %s2368_s8 }
  0x1c   :  { %p2375_p0 = por %p2374_p13, %p2373_p12 }
  0x1e   :  { %p2376_p1 = pnand %p2375_p0, %p2369_p11 }
  0x20   :  { %2379 = shalt.err (!%p2376_p1)
}
  0x21   :  { %s2388_s0 = smov 384   ;;  %s2389_s9 = smov 24  }
  0x22   :  { %33 = dma.hbm_to_vmem [thread:$0]  %s2750_s1, 12288, %s28_s27, [#allocation6], %s2388_s0, %s2388_s0, %s2389_s9  }
  0x23   :  { %2380 = dma.done.wait [#allocation4], 4096  }
  0x24   :  { %2381 = vsyncadd [#allocation4], 4294963200 }
  0x25   :  { %2382 = dma.done.wait [#allocation6], 12288  }
  0x26   :  { %2383 = vsyncadd [#allocation6], 4294955008  ;;  %v2192_v0 = vld [vmem:[#allocation5 + $0x4] ss:$24 sps:$4 sm:$0xff]   ;;  %v2196_v2 = vld [vmem:[#allocation5] ss:$24 sps:$4 sm:$0xff]  }
  0x27   :  { %v2194_v1 = vld [vmem:[#allocation5 + $0xc] ss:$24 sps:$4 sm:$0xff]   ;;  %862 = vmatprep.subr.bf16.mxu0 %v2192_v0  ;;  %v2197_v3 = vld [vmem:[#allocation5 + $0x8] ss:$24 sps:$4 sm:$0xff]   ;;  %v2200_v5 = vld [vmem:[#allocation5 + $0x3c] ss:$24 sps:$4 sm:$0xff]  }
  0x28   :  { %975 = vmatprep.subr.bf16.mxu1 %v2194_v1  ;;  %v2198_v4 = vld [vmem:[#allocation5 + $0x34] ss:$24 sps:$4 sm:$0xff]   ;;  %863 = vmatpush1.bf16.msra.mxu0 %v2196_v2  ;;  %v2202_v6 = vld [vmem:[#allocation5 + $0x30] ss:$24 sps:$4 sm:$0xff]   ;;  %v2204_v8 = vld [vmem:[#allocation5 + $0x64] ss:$24 sps:$4 sm:$0xff]  }
  0x29   :  { %976 = vmatpush1.bf16.msra.mxu1 %v2197_v3  ;;  %864 = vmatprep.subr.bf16.mxu0 %v2198_v4  ;;  %v2203_v7 = vld [vmem:[#allocation5 + $0x38] ss:$24 sps:$4 sm:$0xff]   ;;  %v2206_v9 = vld [vmem:[#allocation5 + $0x6c] ss:$24 sps:$4 sm:$0xff]   ;;  %v2209_v11 = vld [vmem:[#allocation5 + $0x68] ss:$24 sps:$4 sm:$0xff]  }
  0x2a   :  { %977 = vmatprep.subr.bf16.mxu1 %v2200_v5  ;;  %v2208_v10 = vld [vmem:[#allocation5 + $0x60] ss:$24 sps:$4 sm:$0xff]   ;;  %v2210_v12 = vld [vmem:[#allocation5 + $0x94] ss:$24 sps:$4 sm:$0xff]   ;;  %v2214_v14 = vld [vmem:[#allocation5 + $0x90] ss:$24 sps:$4 sm:$0xff]  }
  0x2b   :  { %v2212_v13 = vld [vmem:[#allocation5 + $0x9c] ss:$24 sps:$4 sm:$0xff]   ;;  %v2215_v15 = vld [vmem:[#allocation5 + $0x98] ss:$24 sps:$4 sm:$0xff]   ;;  %v2218_v17 = vld [vmem:[#allocation5 + $0xcc] ss:$24 sps:$4 sm:$0xff]  }
  0x2c   :  { %865 = vmatpush1.bf16.msra.mxu0 %v2202_v6  ;;  %v2216_v16 = vld [vmem:[#allocation5 + $0xc4] ss:$24 sps:$4 sm:$0xff]   ;;  %v2220_v18 = vld [vmem:[#allocation5 + $0xc0] ss:$24 sps:$4 sm:$0xff]   ;;  %v2222_v20 = vld [vmem:[#allocation5 + $0xf4] ss:$24 sps:$4 sm:$0xff]  }
  0x2d   :  { %978 = vmatpush1.bf16.msra.mxu1 %v2203_v7  ;;  %866 = vmatprep.subr.bf16.mxu0 %v2204_v8  ;;  %v2221_v19 = vld [vmem:[#allocation5 + $0xc8] ss:$24 sps:$4 sm:$0xff]   ;;  %v2224_v21 = vld [vmem:[#allocation5 + $0xfc] ss:$24 sps:$4 sm:$0xff]   ;;  %v2227_v23 = vld [vmem:[#allocation5 + $0xf8] ss:$24 sps:$4 sm:$0xff]  }
  0x2e   :  { %979 = vmatprep.subr.bf16.mxu1 %v2206_v9  ;;  %v2226_v22 = vld [vmem:[#allocation5 + $0xf0] ss:$24 sps:$4 sm:$0xff]   ;;  %v2228_v24 = vld [vmem:[#allocation5 + $0x124] ss:$24 sps:$4 sm:$0xff]   ;;  %v2232_v26 = vld [vmem:[#allocation5 + $0x120] ss:$24 sps:$4 sm:$0xff]  }
  0x2f   :  { %v2230_v25 = vld [vmem:[#allocation5 + $0x12c] ss:$24 sps:$4 sm:$0xff]   ;;  %v2233_v27 = vld [vmem:[#allocation5 + $0x128] ss:$24 sps:$4 sm:$0xff]   ;;  %v2236_v29 = vld [vmem:[#allocation5 + $0x15c] ss:$24 sps:$4 sm:$0xff]  }
  0x30   :  { %867 = vmatpush1.bf16.msra.mxu0 %v2208_v10  ;;  %v2234_v28 = vld [vmem:[#allocation5 + $0x154] ss:$24 sps:$4 sm:$0xff]   ;;  %v2238_v30 = vld [vmem:[#allocation5 + $0x150] ss:$24 sps:$4 sm:$0xff]   ;;  %v2240_v32 = vld [vmem:[#allocation5 + $0x184] ss:$24 sps:$4 sm:$0xff]  }
  0x31   :  { %980 = vmatpush1.bf16.msra.mxu1 %v2209_v11  ;;  %868 = vmatprep.subr.bf16.mxu0 %v2210_v12  ;;  %v2239_v31 = vld [vmem:[#allocation5 + $0x158] ss:$24 sps:$4 sm:$0xff]   ;;  %v2242_v33 = vld [vmem:[#allocation5 + $0x18c] ss:$24 sps:$4 sm:$0xff]   ;;  %v2245_v35 = vld [vmem:[#allocation5 + $0x188] ss:$24 sps:$4 sm:$0xff]  }
  0x32   :  { %981 = vmatprep.subr.bf16.mxu1 %v2212_v13  ;;  %v2244_v34 = vld [vmem:[#allocation5 + $0x180] ss:$24 sps:$4 sm:$0xff]   ;;  %v2246_v36 = vld [vmem:[#allocation5 + $0x1b4] ss:$24 sps:$4 sm:$0xff]   ;;  %v2250_v38 = vld [vmem:[#allocation5 + $0x1b0] ss:$24 sps:$4 sm:$0xff]  }
  0x33   :  { %v2248_v37 = vld [vmem:[#allocation5 + $0x1bc] ss:$24 sps:$4 sm:$0xff]   ;;  %v2251_v39 = vld [vmem:[#allocation5 + $0x1b8] ss:$24 sps:$4 sm:$0xff]   ;;  %v2254_v41 = vld [vmem:[#allocation5 + $0x1ec] ss:$24 sps:$4 sm:$0xff]  }
  0x34   :  { %869 = vmatpush1.bf16.msra.mxu0 %v2214_v14  ;;  %v2252_v40 = vld [vmem:[#allocation5 + $0x1e4] ss:$24 sps:$4 sm:$0xff]   ;;  %v2256_v42 = vld [vmem:[#allocation5 + $0x1e0] ss:$24 sps:$4 sm:$0xff]   ;;  %v2258_v44 = vld [vmem:[#allocation5 + $0x214] ss:$24 sps:$4 sm:$0xff]  }
  0x35   :  { %982 = vmatpush1.bf16.msra.mxu1 %v2215_v15  ;;  %870 = vmatprep.subr.bf16.mxu0 %v2216_v16  ;;  %v2257_v43 = vld [vmem:[#allocation5 + $0x1e8] ss:$24 sps:$4 sm:$0xff]   ;;  %v2260_v45 = vld [vmem:[#allocation5 + $0x21c] ss:$24 sps:$4 sm:$0xff]   ;;  %v2263_v48 = vld [vmem:[#allocation5 + $0x218] ss:$24 sps:$4 sm:$0xff]  }
  0x36   :  { %983 = vmatprep.subr.bf16.mxu1 %v2218_v17  ;;  %v239_v46 = vld [vmem:[#allocation3 + $0x8] sm:$0xff]  ;;  %v241_v49 = vld [vmem:[#allocation3 + $0x18] sm:$0xff]  ;;  %v238_v3 = vld [vmem:[#allocation3] sm:$0xff] }
  0x37   :  { %v2262_v47 = vld [vmem:[#allocation5 + $0x210] ss:$24 sps:$4 sm:$0xff]   ;;  %v2264_v50 = vld [vmem:[#allocation5 + $0x244] ss:$24 sps:$4 sm:$0xff]   ;;  %v2434_v51 = vpack.c.bf16 %v241_v49, %v239_v46  ;;  %v2268_v53 = vld [vmem:[#allocation5 + $0x240] ss:$24 sps:$4 sm:$0xff]  }
  0x38   :  { %871 = vmatpush1.bf16.msra.mxu0 %v2220_v18  ;;  %v2266_v52 = vld [vmem:[#allocation5 + $0x24c] ss:$24 sps:$4 sm:$0xff]   ;;  %v2269_v54 = vld [vmem:[#allocation5 + $0x248] ss:$24 sps:$4 sm:$0xff]   ;;  %v2272_v56 = vld [vmem:[#allocation5 + $0x27c] ss:$24 sps:$4 sm:$0xff]  }
  0x39   :  { %984 = vmatpush1.bf16.msra.mxu1 %v2221_v19  ;;  %872 = vmatprep.subr.bf16.mxu0 %v2222_v20  ;;  %v2270_v55 = vld [vmem:[#allocation5 + $0x274] ss:$24 sps:$4 sm:$0xff]   ;;  %v2274_v57 = vld [vmem:[#allocation5 + $0x270] ss:$24 sps:$4 sm:$0xff]   ;;  %v2276_v59 = vld [vmem:[#allocation5 + $0x2a4] ss:$24 sps:$4 sm:$0xff]  }
  0x3a   :  { %985 = vmatprep.subr.bf16.mxu1 %v2224_v21  ;;  %894 = vmatprep.mubr.bf16.mxu0 %v2434_v51  ;;  %v2275_v58 = vld [vmem:[#allocation5 + $0x278] ss:$24 sps:$4 sm:$0xff]   ;;  %v2278_v60 = vld [vmem:[#allocation5 + $0x2ac] ss:$24 sps:$4 sm:$0xff]   ;;  %v2281_v62 = vld [vmem:[#allocation5 + $0x2a8] ss:$24 sps:$4 sm:$0xff]  }
  0x3b   :  { %1007 = vmatprep.mubr.bf16.mxu1 %v2434_v51  ;;  %v2280_v61 = vld [vmem:[#allocation5 + $0x2a0] ss:$24 sps:$4 sm:$0xff]   ;;  %v2282_v63 = vld [vmem:[#allocation5 + $0x2d4] ss:$24 sps:$4 sm:$0xff]   ;;  %v2286_v1 = vld [vmem:[#allocation5 + $0x2d0] ss:$24 sps:$4 sm:$0xff]  }
  0x3c   :  { %873 = vmatpush1.bf16.msra.mxu0 %v2226_v22  ;;  %v2284_v0 = vld [vmem:[#allocation5 + $0x2dc] ss:$24 sps:$4 sm:$0xff]   ;;  %v2287_v2 = vld [vmem:[#allocation5 + $0x2d8] ss:$24 sps:$4 sm:$0xff]   ;;  %v243_v7 = vld [vmem:[#allocation3 + $0x28] sm:$0xff] }
  0x3d   :  { %986 = vmatpush1.bf16.msra.mxu1 %v2227_v23  ;;  %874 = vmatprep.subr.bf16.mxu0 %v2228_v24  ;;  %v240_v4 = vld [vmem:[#allocation3 + $0x10] sm:$0xff]  ;;  %v245_v8 = vld [vmem:[#allocation3 + $0x38] sm:$0xff]  ;;  %v242_v13 = vld [vmem:[#allocation3 + $0x20] sm:$0xff] }
  0x3e   :  { %987 = vmatprep.subr.bf16.mxu1 %v2230_v25  ;;  %v2290_v5 = vld [vmem:[#allocation5 + $0x14] ss:$24 sps:$4 sm:$0xff]   ;;  %v2438_v6 = vpack.c.bf16 %v240_v4, %v238_v3  ;;  %v2288_v9 = vld [vmem:[#allocation5 + $0x10] ss:$24 sps:$4 sm:$0xff]   ;;  %v2293_v10 = vld [vmem:[#allocation5 + $0x44] ss:$24 sps:$4 sm:$0xff]   ;;  %v2440_v11 = vpack.c.bf16 %v245_v8, %v243_v7 }
  0x3f   :  { %v2291_v12 = vld [vmem:[#allocation5 + $0x40] ss:$24 sps:$4 sm:$0xff]   ;;  %v244_v14 = vld [vmem:[#allocation3 + $0x30] sm:$0xff]  ;;  %v247_v17 = vld [vmem:[#allocation3 + $0x48] sm:$0xff] }
  0x40   :  { %875 = vmatpush1.bf16.msra.mxu0 %v2232_v26  ;;  %v2296_v15 = vld [vmem:[#allocation5 + $0x74] ss:$24 sps:$4 sm:$0xff]   ;;  %v2446_v16 = vpack.c.bf16 %v244_v14, %v242_v13  ;;  %v249_v18 = vld [vmem:[#allocation3 + $0x58] sm:$0xff]  ;;  %v2294_v19 = vld [vmem:[#allocation5 + $0x70] ss:$24 sps:$4 sm:$0xff]  }
  0x41   :  { %988 = vmatpush1.bf16.msra.mxu1 %v2233_v27  ;;  %876 = vmatprep.subr.bf16.mxu0 %v2234_v28  ;;  %v2299_v20 = vld [vmem:[#allocation5 + $0xa4] ss:$24 sps:$4 sm:$0xff]   ;;  %v2448_v21 = vpack.c.bf16 %v249_v18, %v247_v17  ;;  %v2297_v22 = vld [vmem:[#allocation5 + $0xa0] ss:$24 sps:$4 sm:$0xff]   ;;  %v248_v24 = vld [vmem:[#allocation3 + $0x50] sm:$0xff] }
  0x42   :  { %989 = vmatprep.subr.bf16.mxu1 %v2236_v29  ;;  %v246_v23 = vld [vmem:[#allocation3 + $0x40] sm:$0xff]  ;;  %v2302_v25 = vld [vmem:[#allocation5 + $0xd4] ss:$24 sps:$4 sm:$0xff]   ;;  %v253_v28 = vld [vmem:[#allocation3 + $0x78] sm:$0xff] }
  0x43   :  { %v2454_v26 = vpack.c.bf16 %v248_v24, %v246_v23  ;;  %v251_v27 = vld [vmem:[#allocation3 + $0x68] sm:$0xff]  ;;  %v2329_v8 = vld [vmem:[#allocation5 + $0x284] ss:$24 sps:$4 sm:$0xff]   ;;  %v268_v13 = vld [vmem:[#allocation3 + $0xf0] sm:$0xff] }
  0x44   :  { %877 = vmatpush1.bf16.msra.mxu0 %v2238_v30  ;;  %v2300_v29 = vld [vmem:[#allocation5 + $0xd0] ss:$24 sps:$4 sm:$0xff]   ;;  %v2305_v30 = vld [vmem:[#allocation5 + $0x104] ss:$24 sps:$4 sm:$0xff]   ;;  %v2332_v14 = vld [vmem:[#allocation5 + $0x2b4] ss:$24 sps:$4 sm:$0xff]  }
  0x45   :  { %990 = vmatpush1.bf16.msra.mxu1 %v2239_v31  ;;  %878 = vmatprep.subr.bf16.mxu0 %v2240_v32  ;;  %v2456_v31 = vpack.c.bf16 %v253_v28, %v251_v27  ;;  %v2303_v32 = vld [vmem:[#allocation5 + $0x100] ss:$24 sps:$4 sm:$0xff]   ;;  %v2312_v49 = vld [vmem:[#allocation5 + $0x190] ss:$24 sps:$4 sm:$0xff]   ;;  %v2335_v18 = vld [vmem:[#allocation5 + $0x2e4] ss:$24 sps:$4 sm:$0xff]  }
  0x46   :  { %991 = vmatprep.subr.bf16.mxu1 %v2242_v33  ;;  %v250_v33 = vld [vmem:[#allocation3 + $0x60] sm:$0xff]  ;;  %v267_v4 = vld [vmem:[#allocation3 + $0xe8] sm:$0xff] }
  0x47   :  { %v2324_v7 = vld [vmem:[#allocation5 + $0x250] ss:$24 sps:$4 sm:$0xff]  }
  0x48   :  { %879 = vmatpush1.bf16.msra.mxu0 %v2244_v34  ;;  %v252_v34 = vld [vmem:[#allocation3 + $0x70] sm:$0xff] }
  0x49   :  { %992 = vmatpush1.bf16.msra.mxu1 %v2245_v35  ;;  %880 = vmatprep.subr.bf16.mxu0 %v2246_v36  ;;  %v2308_v35 = vld [vmem:[#allocation5 + $0x134] ss:$24 sps:$4 sm:$0xff]   ;;  %v2462_v36 = vpack.c.bf16 %v252_v34, %v250_v33  ;;  %v2330_v17 = vld [vmem:[#allocation5 + $0x2b0] ss:$24 sps:$4 sm:$0xff]  }
  0x4a   :  { %993 = vmatprep.subr.bf16.mxu1 %v2248_v37  ;;  %v255_v37 = vld [vmem:[#allocation3 + $0x88] sm:$0xff] }
  0x4c   :  { %881 = vmatpush1.bf16.msra.mxu0 %v2250_v38  ;;  %v257_v38 = vld [vmem:[#allocation3 + $0x98] sm:$0xff] }
  0x4d   :  { %994 = vmatpush1.bf16.msra.mxu1 %v2251_v39  ;;  %882 = vmatprep.subr.bf16.mxu0 %v2252_v40  ;;  %v2306_v39 = vld [vmem:[#allocation5 + $0x130] ss:$24 sps:$4 sm:$0xff]   ;;  %v2311_v40 = vld [vmem:[#allocation5 + $0x164] ss:$24 sps:$4 sm:$0xff]  }
  0x4e   :  { %995 = vmatprep.subr.bf16.mxu1 %v2254_v41  ;;  %v2464_v41 = vpack.c.bf16 %v257_v38, %v255_v37 }
  0x50   :  { %883 = vmatpush1.bf16.msra.mxu0 %v2256_v42  ;;  %v2309_v42 = vld [vmem:[#allocation5 + $0x160] ss:$24 sps:$4 sm:$0xff]  }
  0x51   :  { %996 = vmatpush1.bf16.msra.mxu1 %v2257_v43  ;;  %884 = vmatprep.subr.bf16.mxu0 %v2258_v44  ;;  %v254_v43 = vld [vmem:[#allocation3 + $0x80] sm:$0xff]  ;;  %v256_v44 = vld [vmem:[#allocation3 + $0x90] sm:$0xff] }
  0x52   :  { %997 = vmatprep.subr.bf16.mxu1 %v2260_v45  ;;  %v2314_v45 = vld [vmem:[#allocation5 + $0x194] ss:$24 sps:$4 sm:$0xff]   ;;  %v2470_v46 = vpack.c.bf16 %v256_v44, %v254_v43 }
  0x54   :  { %885 = vmatpush1.bf16.msra.mxu0 %v2262_v47  ;;  %v259_v47 = vld [vmem:[#allocation3 + $0xa8] sm:$0xff] }
  0x55   :  { %998 = vmatpush1.bf16.msra.mxu1 %v2263_v48  ;;  %886 = vmatprep.subr.bf16.mxu0 %v2264_v50  ;;  %v261_v48 = vld [vmem:[#allocation3 + $0xb8] sm:$0xff] }
  0x56   :  { %999 = vmatprep.subr.bf16.mxu1 %v2266_v52  ;;  %v2317_v50 = vld [vmem:[#allocation5 + $0x1c4] ss:$24 sps:$4 sm:$0xff]   ;;  %v2472_v52 = vpack.c.bf16 %v261_v48, %v259_v47 }
  0x58   :  { %887 = vmatpush1.bf16.msra.mxu0 %v2268_v53  ;;  %v2315_v53 = vld [vmem:[#allocation5 + $0x1c0] ss:$24 sps:$4 sm:$0xff]  }
  0x59   :  { %1000 = vmatpush1.bf16.msra.mxu1 %v2269_v54  ;;  %888 = vmatprep.subr.bf16.mxu0 %v2270_v55  ;;  %v258_v54 = vld [vmem:[#allocation3 + $0xa0] sm:$0xff]  ;;  %v260_v55 = vld [vmem:[#allocation3 + $0xb0] sm:$0xff] }
  0x5a   :  { %1001 = vmatprep.subr.bf16.mxu1 %v2272_v56  ;;  %v2320_v56 = vld [vmem:[#allocation5 + $0x1f4] ss:$24 sps:$4 sm:$0xff]  }
  0x5c   :  { %889 = vmatpush1.bf16.msra.mxu0 %v2274_v57  ;;  %v2478_v57 = vpack.c.bf16 %v260_v55, %v258_v54 }
  0x5d   :  { %1002 = vmatpush1.bf16.msra.mxu1 %v2275_v58  ;;  %890 = vmatprep.subr.bf16.mxu0 %v2276_v59  ;;  %v263_v58 = vld [vmem:[#allocation3 + $0xc8] sm:$0xff]  ;;  %v265_v59 = vld [vmem:[#allocation3 + $0xd8] sm:$0xff] }
  0x5e   :  { %1003 = vmatprep.subr.bf16.mxu1 %v2278_v60  ;;  %v2318_v60 = vld [vmem:[#allocation5 + $0x1f0] ss:$24 sps:$4 sm:$0xff]  }
  0x60   :  { %891 = vmatpush1.bf16.msra.mxu0 %v2280_v61  ;;  %v2323_v61 = vld [vmem:[#allocation5 + $0x224] ss:$24 sps:$4 sm:$0xff]  }
  0x61   :  { %1004 = vmatpush1.bf16.msra.mxu1 %v2281_v62  ;;  %892 = vmatprep.subr.bf16.mxu0 %v2282_v63  ;;  %v283_v62 = vpack.c.bf16 %v265_v59, %v263_v58  ;;  %v2321_v63 = vld [vmem:[#allocation5 + $0x220] ss:$24 sps:$4 sm:$0xff]  }
  0x62   :  { %1005 = vmatprep.subr.bf16.mxu1 %v2284_v0  ;;  %v262_v0 = vld [vmem:[#allocation3 + $0xc0] sm:$0xff] }
  0x64   :  { %893 = vmatpush1.bf16.msra.mxu0 %v2286_v1  ;;  %v264_v1 = vld [vmem:[#allocation3 + $0xd0] sm:$0xff] }
  0x65   :  { %1006 = vmatpush1.bf16.msra.mxu1 %v2287_v2  ;;  %1088 = vmatprep.subr.bf16.mxu0 %v2290_v5  ;;  %v2326_v2 = vld [vmem:[#allocation5 + $0x254] ss:$24 sps:$4 sm:$0xff]   ;;  %v282_v3 = vpack.c.bf16 %v264_v1, %v262_v0 }
  0x66   :  { %2154 = vmatprep.subr.bf16.mxu1 %v2290_v5  ;;  %v269_v5 = vld [vmem:[#allocation3 + $0xf8] sm:$0xff] }
  0x67   :  { %895 = vmatmul.mubr.bf16.vlgmr.msra.gmra.mrb[0].mxu0 %v2438_v6 }
  0x68   :  { %1008 = vmatmul.mubr.bf16.vlgmr.msra.gmra.mrb[0].mxu1 %v2438_v6  ;;  %1089 = vmatpush1.bf16.msra.mxu0 %v2288_v9 }
  0x69   :  { %2170 = vmatpush1.bf16.msra.mxu1 %v2288_v9  ;;  %1090 = vmatprep.subr.bf16.mxu0 %v2293_v10  ;;  %v285_v9 = vpack.c.bf16 %v269_v5, %v267_v4 }
  0x6a   :  { %2155 = vmatprep.subr.bf16.mxu1 %v2293_v10  ;;  %904 = vmatprep.mubr.bf16.mxu0 %v2440_v11  ;;  %v2327_v10 = vld [vmem:[#allocation5 + $0x280] ss:$24 sps:$4 sm:$0xff]  }
  0x6b   :  { %1017 = vmatprep.mubr.bf16.mxu1 %v2440_v11 }
  0x6c   :  { %1091 = vmatpush1.bf16.msra.mxu0 %v2291_v12 }
  0x6d   :  { %2171 = vmatpush1.bf16.msra.mxu1 %v2291_v12  ;;  %1092 = vmatprep.subr.bf16.mxu0 %v2296_v15  ;;  %v266_v12 = vld [vmem:[#allocation3 + $0xe0] sm:$0xff] }
  0x6e   :  { %2156 = vmatprep.subr.bf16.mxu1 %v2296_v15  ;;  %v284_v15 = vpack.c.bf16 %v268_v13, %v266_v12 }
  0x6f   :  { %905 = vmatmul.mubr.bf16.gmra.mrb[4].mxu0 %v2446_v16 }
  0x70   :  { %1018 = vmatmul.mubr.bf16.gmra.mrb[4].mxu1 %v2446_v16  ;;  %1093 = vmatpush1.bf16.msra.mxu0 %v2294_v19 }
  0x71   :  { %2172 = vmatpush1.bf16.msra.mxu1 %v2294_v19  ;;  %1094 = vmatprep.subr.bf16.mxu0 %v2299_v20  ;;  %v2333_v19 = vld [vmem:[#allocation5 + $0x2e0] ss:$24 sps:$4 sm:$0xff]  }
  0x72   :  { %2157 = vmatprep.subr.bf16.mxu1 %v2299_v20  ;;  %914 = vmatprep.mubr.bf16.mxu0 %v2448_v21 }
  0x73   :  { %1027 = vmatprep.mubr.bf16.mxu1 %v2448_v21 }
  0x74   :  { %1095 = vmatpush1.bf16.msra.mxu0 %v2297_v22 }
  0x75   :  { %2173 = vmatpush1.bf16.msra.mxu1 %v2297_v22  ;;  %1096 = vmatprep.subr.bf16.mxu0 %v2302_v25 }
  0x76   :  { %2158 = vmatprep.subr.bf16.mxu1 %v2302_v25 }
  0x77   :  { %915 = vmatmul.mubr.bf16.gmra.mrb[8].mxu0 %v2454_v26 }
  0x78   :  { %1028 = vmatmul.mubr.bf16.gmra.mrb[8].mxu1 %v2454_v26  ;;  %1097 = vmatpush1.bf16.msra.mxu0 %v2300_v29 }
  0x79   :  { %2174 = vmatpush1.bf16.msra.mxu1 %v2300_v29  ;;  %1098 = vmatprep.subr.bf16.mxu0 %v2305_v30 }
  0x7a   :  { %2159 = vmatprep.subr.bf16.mxu1 %v2305_v30  ;;  %924 = vmatprep.mubr.bf16.mxu0 %v2456_v31 }
  0x7b   :  { %1037 = vmatprep.mubr.bf16.mxu1 %v2456_v31 }
  0x7c   :  { %1099 = vmatpush1.bf16.msra.mxu0 %v2303_v32 }
  0x7d   :  { %2175 = vmatpush1.bf16.msra.mxu1 %v2303_v32  ;;  %1100 = vmatprep.subr.bf16.mxu0 %v2308_v35 }
  0x7e   :  { %2160 = vmatprep.subr.bf16.mxu1 %v2308_v35 }
  0x7f   :  { %925 = vmatmul.mubr.bf16.gmra.mrb[12].mxu0 %v2462_v36 }
  0x80   :  { %1038 = vmatmul.mubr.bf16.gmra.mrb[12].mxu1 %v2462_v36  ;;  %1101 = vmatpush1.bf16.msra.mxu0 %v2306_v39 }
  0x81   :  { %2176 = vmatpush1.bf16.msra.mxu1 %v2306_v39  ;;  %1102 = vmatprep.subr.bf16.mxu0 %v2311_v40 }
  0x82   :  { %2161 = vmatprep.subr.bf16.mxu1 %v2311_v40  ;;  %934 = vmatprep.mubr.bf16.mxu0 %v2464_v41 }
  0x83   :  { %1047 = vmatprep.mubr.bf16.mxu1 %v2464_v41 }
  0x84   :  { %1103 = vmatpush1.bf16.msra.mxu0 %v2309_v42 }
  0x85   :  { %2177 = vmatpush1.bf16.msra.mxu1 %v2309_v42  ;;  %1104 = vmatprep.subr.bf16.mxu0 %v2314_v45 }
  0x86   :  { %2162 = vmatprep.subr.bf16.mxu1 %v2314_v45 }
  0x87   :  { %935 = vmatmul.mubr.bf16.gmra.mrb[16].mxu0 %v2470_v46 }
  0x88   :  { %1048 = vmatmul.mubr.bf16.gmra.mrb[16].mxu1 %v2470_v46  ;;  %1105 = vmatpush1.bf16.msra.mxu0 %v2312_v49 }
  0x89   :  { %2178 = vmatpush1.bf16.msra.mxu1 %v2312_v49  ;;  %1106 = vmatprep.subr.bf16.mxu0 %v2317_v50 }
  0x8a   :  { %2163 = vmatprep.subr.bf16.mxu1 %v2317_v50  ;;  %944 = vmatprep.mubr.bf16.mxu0 %v2472_v52 }
  0x8b   :  { %1057 = vmatprep.mubr.bf16.mxu1 %v2472_v52 }
  0x8c   :  { %1107 = vmatpush1.bf16.msra.mxu0 %v2315_v53 }
  0x8d   :  { %2179 = vmatpush1.bf16.msra.mxu1 %v2315_v53  ;;  %1108 = vmatprep.subr.bf16.mxu0 %v2320_v56 }
  0x8e   :  { %2164 = vmatprep.subr.bf16.mxu1 %v2320_v56 }
  0x8f   :  { %945 = vmatmul.mubr.bf16.gmra.mrb[20].mxu0 %v2478_v57 }
  0x90   :  { %1058 = vmatmul.mubr.bf16.gmra.mrb[20].mxu1 %v2478_v57  ;;  %1109 = vmatpush1.bf16.msra.mxu0 %v2318_v60 }
  0x91   :  { %2180 = vmatpush1.bf16.msra.mxu1 %v2318_v60  ;;  %1110 = vmatprep.subr.bf16.mxu0 %v2323_v61 }
  0x92   :  { %2165 = vmatprep.subr.bf16.mxu1 %v2323_v61  ;;  %954 = vmatprep.mubr.bf16.mxu0 %v283_v62 }
  0x93   :  { %1067 = vmatprep.mubr.bf16.mxu1 %v283_v62 }
  0x94   :  { %1111 = vmatpush1.bf16.msra.mxu0 %v2321_v63 }
  0x95   :  { %2181 = vmatpush1.bf16.msra.mxu1 %v2321_v63  ;;  %1112 = vmatprep.subr.bf16.mxu0 %v2326_v2 }
  0x96   :  { %2166 = vmatprep.subr.bf16.mxu1 %v2326_v2 }
  0x97   :  { %955 = vmatmul.mubr.bf16.gmra.mrb[24].mxu0 %v282_v3 }
  0x98   :  { %1068 = vmatmul.mubr.bf16.gmra.mrb[24].mxu1 %v282_v3  ;;  %1113 = vmatpush1.bf16.msra.mxu0 %v2324_v7 }
  0x99   :  { %2182 = vmatpush1.bf16.msra.mxu1 %v2324_v7  ;;  %1114 = vmatprep.subr.bf16.mxu0 %v2329_v8 }
  0x9a   :  { %2167 = vmatprep.subr.bf16.mxu1 %v2329_v8  ;;  %964 = vmatprep.mubr.bf16.mxu0 %v285_v9 }
  0x9b   :  { %1077 = vmatprep.mubr.bf16.mxu1 %v285_v9 }
  0x9c   :  { %1115 = vmatpush1.bf16.msra.mxu0 %v2327_v10 }
  0x9d   :  { %2183 = vmatpush1.bf16.msra.mxu1 %v2327_v10  ;;  %1116 = vmatprep.subr.bf16.mxu0 %v2332_v14 }
  0x9e   :  { %2168 = vmatprep.subr.bf16.mxu1 %v2332_v14 }
  0x9f   :  { %965 = vmatmul.mubr.bf16.gmra.mrb[28].mxu0 %v284_v15 }
  0xa0   :  { %1078 = vmatmul.mubr.bf16.gmra.mrb[28].mxu1 %v284_v15  ;;  %1117 = vmatpush1.bf16.msra.mxu0 %v2330_v17 }
  0xa1   :  { %2184 = vmatpush1.bf16.msra.mxu1 %v2330_v17  ;;  %1118 = vmatprep.subr.bf16.mxu0 %v2335_v18 }
  0xa2   :  { %2169 = vmatprep.subr.bf16.mxu1 %v2335_v18  ;;  %1120 = vmatprep.mubr.bf16.mxu0 %v2434_v51  ;;  %v1494_v51 = vlaneseq }
  0xa3   :  { %1160 = vmatprep.mubr.bf16.mxu1 %v2464_v41 }
  0xa4   :  { %1119 = vmatpush1.bf16.msra.mxu0 %v2333_v19 }
  0xa5   :  { %2185 = vmatpush1.bf16.msra.mxu1 %v2333_v19 }
  0xa7   :  { %1121 = vmatmul.mubr.bf16.vlgmr.msra.gmra.mrb[32].mxu0 %v2438_v6  ;;  %v1495_v6 = vshrl.u32 %v1494_v51, 7 }
  0xa8   :  { %1161 = vmatmul.mubr.bf16.vlgmr.msra.gmra.mrb[32].mxu1 %v2470_v46  ;;  %1130 = vmatprep.mubr.bf16.mxu0 %v2440_v11 }
  0xa9   :  { %1170 = vmatprep.mubr.bf16.mxu1 %v2472_v52  ;;  %v1512_v11 = vsub.s32 4, %v1495_v6  ;;  %v1516_v20 = vsub.s32 5, %v1495_v6  ;;  %v1496_v23 = vsub.s32 0, %v1495_v6  ;;  %v1504_v24 = vsub.s32 2, %v1495_v6 }
  0xaa   :  { %v1500_v25 = vsub.s32 1, %v1495_v6 }
  0xaf   :  { %1131 = vmatmul.mubr.bf16.gmra.mrb[36].mxu0 %v2446_v16  ;;  %v1492_v16 = vld [vmem:[%s2751_s2] sm:$0x3f] }
  0xb0   :  { %1171 = vmatmul.mubr.bf16.gmra.mrb[36].mxu1 %v2478_v57  ;;  %1140 = vmatprep.mubr.bf16.mxu0 %v2448_v21  ;;  %v2497_v22 = vrot.slane %v1492_v16, %v1512_v11  ;;  %v2499_v21 = vrot.slane %v1492_v16, %v1516_v20  ;;  %v2501_v27 = vrot.slane %v1492_v16, %v1496_v23 }
  0xb1   :  { %1180 = vmatprep.mubr.bf16.mxu1 %v283_v62  ;;  %v2503_v28 = vrot.slane %v1492_v16, %v1504_v24  ;;  %v2505_v29 = vrot.slane %v1492_v16, %v1500_v25 }
  0xb7   :  { %1141 = vmatmul.mubr.bf16.gmra.mrb[40].mxu0 %v2454_v26  ;;  %v1508_v26 = vsub.s32 3, %v1495_v6 }
  0xb8   :  { %1181 = vmatmul.mubr.bf16.gmra.mrb[40].mxu1 %v282_v3  ;;  %1150 = vmatprep.mubr.bf16.mxu0 %v2456_v31 }
  0xb9   :  { %1190 = vmatprep.mubr.bf16.mxu1 %v285_v9  ;;  %v2507_v30 = vrot.slane %v1492_v16, %v1508_v26 }
  0xbf   :  { %1151 = vmatmul.mubr.bf16.gmra.mrb[44].mxu0 %v2462_v36 }
  0xc0   :  { %1191 = vmatmul.mubr.bf16.gmra.mrb[44].mxu1 %v284_v15 }
 0x13a   :  { %v896_v31 = vpop.f32.mrb[0].mxu0 }
 0x13b   :  { %v1009_v32 = vpop.f32.mrb[0].mxu1  ;;  %v1524_v33 = vadd.f32 %v2501_v27, %v896_v31  ;;  %v898_v35 = vpop.f32.mrb[1].mxu0 }
 0x13c   :  { %v1526_v34 = vadd.f32 %v2503_v28, %v1009_v32  ;;  %v1011_v36 = vpop.f32.mrb[1].mxu1  ;;  %v1525_v37 = vadd.f32 %v2505_v29, %v898_v35  ;;  %v900_v39 = vpop.f32.mrb[2].mxu0 }
 0x13d   :  { %v1527_v38 = vadd.f32 %v2507_v30, %v1011_v36  ;;  %v1013_v40 = vpop.f32.mrb[2].mxu1  ;;  %v1530_v41 = vadd.f32 %v2501_v27, %v900_v39  ;;  %v902_v43 = vpop.f32.mrb[3].mxu0 }
 0x13e   :  { %v1532_v42 = vadd.f32 %v2503_v28, %v1013_v40  ;;  %v1015_v44 = vpop.f32.mrb[3].mxu1  ;;  %v2106_v45 = vpack.c.bf16 %v1525_v37, %v1524_v33  ;;  %v1531_v47 = vadd.f32 %v2505_v29, %v902_v43 }
 0x13f   :  { %v2107_v46 = vpack.c.bf16 %v1527_v38, %v1526_v34  ;;  %v1533_v48 = vadd.f32 %v2507_v30, %v1015_v44 }
 0x140   :  { %1908 = vst [vmem:[%s2752_s3] sm:$0xff] %v2106_v45  ;;  %v2109_v49 = vpack.c.bf16 %v1531_v47, %v1530_v41 }
 0x141   :  { %1909 = vst [vmem:[%s2752_s3 + $0x8] sm:$0xff] %v2107_v46  ;;  %v2110_v50 = vpack.c.bf16 %v1533_v48, %v1532_v42 }
 0x142   :  { %1911 = vst [vmem:[%s2752_s3 + $0x18] sm:$0xff] %v2109_v49  ;;  %v906_v52 = vpop.f32.mrb[4].mxu0 }
 0x143   :  { %1912 = vst [vmem:[%s2752_s3 + $0x20] sm:$0xff] %v2110_v50  ;;  %v1019_v53 = vpop.f32.mrb[4].mxu1  ;;  %v1536_v54 = vadd.f32 %v2501_v27, %v906_v52  ;;  %v908_v56 = vpop.f32.mrb[5].mxu0 }
 0x144   :  { %v1538_v55 = vadd.f32 %v2503_v28, %v1019_v53  ;;  %v1021_v57 = vpop.f32.mrb[5].mxu1  ;;  %v1537_v58 = vadd.f32 %v2505_v29, %v908_v56  ;;  %v910_v60 = vpop.f32.mrb[6].mxu0 }
 0x145   :  { %v1539_v59 = vadd.f32 %v2507_v30, %v1021_v57  ;;  %v1023_v61 = vpop.f32.mrb[6].mxu1  ;;  %v1542_v62 = vadd.f32 %v2501_v27, %v910_v60  ;;  %v912_v0 = vpop.f32.mrb[7].mxu0 }
 0x146   :  { %v1544_v63 = vadd.f32 %v2503_v28, %v1023_v61  ;;  %v1025_v1 = vpop.f32.mrb[7].mxu1  ;;  %v2112_v2 = vpack.c.bf16 %v1537_v58, %v1536_v54  ;;  %v1543_v4 = vadd.f32 %v2505_v29, %v912_v0 }
 0x147   :  { %v2113_v3 = vpack.c.bf16 %v1539_v59, %v1538_v55  ;;  %v1545_v5 = vadd.f32 %v2507_v30, %v1025_v1 }
 0x148   :  { %1914 = vst [vmem:[%s2752_s3 + $0x30] sm:$0xff] %v2112_v2  ;;  %v2115_v7 = vpack.c.bf16 %v1543_v4, %v1542_v62 }
 0x149   :  { %1915 = vst [vmem:[%s2752_s3 + $0x38] sm:$0xff] %v2113_v3  ;;  %v2116_v8 = vpack.c.bf16 %v1545_v5, %v1544_v63 }
 0x14a   :  { %1917 = vst [vmem:[%s2752_s3 + $0x48] sm:$0xff] %v2115_v7  ;;  %v916_v9 = vpop.f32.mrb[8].mxu0 }
 0x14b   :  { %1918 = vst [vmem:[%s2752_s3 + $0x50] sm:$0xff] %v2116_v8  ;;  %v1029_v10 = vpop.f32.mrb[8].mxu1  ;;  %v1548_v12 = vadd.f32 %v2501_v27, %v916_v9  ;;  %v918_v14 = vpop.f32.mrb[9].mxu0 }
 0x14c   :  { %v1550_v13 = vadd.f32 %v2503_v28, %v1029_v10  ;;  %v1031_v15 = vpop.f32.mrb[9].mxu1  ;;  %v1549_v17 = vadd.f32 %v2505_v29, %v918_v14  ;;  %v920_v19 = vpop.f32.mrb[10].mxu0 }
 0x14d   :  { %v1551_v18 = vadd.f32 %v2507_v30, %v1031_v15  ;;  %v1033_v51 = vpop.f32.mrb[10].mxu1  ;;  %v1554_v6 = vadd.f32 %v2501_v27, %v920_v19  ;;  %v922_v16 = vpop.f32.mrb[11].mxu0 }
 0x14e   :  { %v1556_v11 = vadd.f32 %v2503_v28, %v1033_v51  ;;  %v1035_v20 = vpop.f32.mrb[11].mxu1  ;;  %v2118_v23 = vpack.c.bf16 %v1549_v17, %v1548_v12  ;;  %v1555_v25 = vadd.f32 %v2505_v29, %v922_v16 }
 0x14f   :  { %v2119_v24 = vpack.c.bf16 %v1551_v18, %v1550_v13  ;;  %v1557_v26 = vadd.f32 %v2507_v30, %v1035_v20 }
 0x150   :  { %1920 = vst [vmem:[%s2752_s3 + $0x60] sm:$0xff] %v2118_v23  ;;  %v2121_v31 = vpack.c.bf16 %v1555_v25, %v1554_v6 }
 0x151   :  { %1921 = vst [vmem:[%s2752_s3 + $0x68] sm:$0xff] %v2119_v24  ;;  %v2122_v32 = vpack.c.bf16 %v1557_v26, %v1556_v11 }
 0x152   :  { %1923 = vst [vmem:[%s2752_s3 + $0x78] sm:$0xff] %v2121_v31  ;;  %v926_v33 = vpop.f32.mrb[12].mxu0 }
 0x153   :  { %1924 = vst [vmem:[%s2752_s3 + $0x80] sm:$0xff] %v2122_v32  ;;  %v1039_v34 = vpop.f32.mrb[12].mxu1  ;;  %v1560_v35 = vadd.f32 %v2501_v27, %v926_v33  ;;  %v928_v37 = vpop.f32.mrb[13].mxu0 }
 0x154   :  { %v1562_v36 = vadd.f32 %v2503_v28, %v1039_v34  ;;  %v1041_v38 = vpop.f32.mrb[13].mxu1  ;;  %v1561_v39 = vadd.f32 %v2505_v29, %v928_v37  ;;  %v930_v41 = vpop.f32.mrb[14].mxu0 }
 0x155   :  { %v1563_v40 = vadd.f32 %v2507_v30, %v1041_v38  ;;  %v1043_v42 = vpop.f32.mrb[14].mxu1  ;;  %v1566_v43 = vadd.f32 %v2501_v27, %v930_v41  ;;  %v932_v45 = vpop.f32.mrb[15].mxu0 }
 0x156   :  { %v1568_v44 = vadd.f32 %v2503_v28, %v1043_v42  ;;  %v1045_v46 = vpop.f32.mrb[15].mxu1  ;;  %v2124_v47 = vpack.c.bf16 %v1561_v39, %v1560_v35  ;;  %v1567_v49 = vadd.f32 %v2505_v29, %v932_v45 }
 0x157   :  { %v2125_v48 = vpack.c.bf16 %v1563_v40, %v1562_v36  ;;  %v1569_v50 = vadd.f32 %v2507_v30, %v1045_v46 }
 0x158   :  { %1926 = vst [vmem:[%s2752_s3 + $0x90] sm:$0xff] %v2124_v47  ;;  %v2127_v52 = vpack.c.bf16 %v1567_v49, %v1566_v43 }
 0x159   :  { %1927 = vst [vmem:[%s2752_s3 + $0x98] sm:$0xff] %v2125_v48  ;;  %v2128_v53 = vpack.c.bf16 %v1569_v50, %v1568_v44 }
 0x15a   :  { %1929 = vst [vmem:[%s2752_s3 + $0xa8] sm:$0xff] %v2127_v52  ;;  %v936_v54 = vpop.f32.mrb[16].mxu0 }
 0x15b   :  { %1930 = vst [vmem:[%s2752_s3 + $0xb0] sm:$0xff] %v2128_v53  ;;  %v1049_v55 = vpop.f32.mrb[16].mxu1  ;;  %v1572_v56 = vadd.f32 %v2501_v27, %v936_v54  ;;  %v938_v58 = vpop.f32.mrb[17].mxu0 }
 0x15c   :  { %v1574_v57 = vadd.f32 %v2503_v28, %v1049_v55  ;;  %v1051_v59 = vpop.f32.mrb[17].mxu1  ;;  %v1573_v60 = vadd.f32 %v2505_v29, %v938_v58  ;;  %v940_v62 = vpop.f32.mrb[18].mxu0 }
 0x15d   :  { %v1575_v61 = vadd.f32 %v2507_v30, %v1051_v59  ;;  %v1053_v63 = vpop.f32.mrb[18].mxu1  ;;  %v1578_v0 = vadd.f32 %v2501_v27, %v940_v62  ;;  %v942_v2 = vpop.f32.mrb[19].mxu0 }
 0x15e   :  { %v1580_v1 = vadd.f32 %v2503_v28, %v1053_v63  ;;  %v1055_v3 = vpop.f32.mrb[19].mxu1  ;;  %v2130_v4 = vpack.c.bf16 %v1573_v60, %v1572_v56  ;;  %v1579_v7 = vadd.f32 %v2505_v29, %v942_v2 }
 0x15f   :  { %v2131_v5 = vpack.c.bf16 %v1575_v61, %v1574_v57  ;;  %v1581_v8 = vadd.f32 %v2507_v30, %v1055_v3 }
 0x160   :  { %1932 = vst [vmem:[%s2752_s3 + $0xc0] sm:$0xff] %v2130_v4  ;;  %v2133_v9 = vpack.c.bf16 %v1579_v7, %v1578_v0 }
 0x161   :  { %1933 = vst [vmem:[%s2752_s3 + $0xc8] sm:$0xff] %v2131_v5  ;;  %v2134_v10 = vpack.c.bf16 %v1581_v8, %v1580_v1 }
 0x162   :  { %1935 = vst [vmem:[%s2752_s3 + $0xd8] sm:$0xff] %v2133_v9  ;;  %v946_v12 = vpop.f32.mrb[20].mxu0 }
 0x163   :  { %1936 = vst [vmem:[%s2752_s3 + $0xe0] sm:$0xff] %v2134_v10  ;;  %v1059_v13 = vpop.f32.mrb[20].mxu1  ;;  %v1584_v14 = vadd.f32 %v2501_v27, %v946_v12  ;;  %v948_v17 = vpop.f32.mrb[21].mxu0 }
 0x164   :  { %v1586_v15 = vadd.f32 %v2503_v28, %v1059_v13  ;;  %v1061_v18 = vpop.f32.mrb[21].mxu1  ;;  %v1585_v19 = vadd.f32 %v2505_v29, %v948_v17  ;;  %v950_v6 = vpop.f32.mrb[22].mxu0 }
 0x165   :  { %v1587_v51 = vadd.f32 %v2507_v30, %v1061_v18  ;;  %v1063_v11 = vpop.f32.mrb[22].mxu1  ;;  %v1590_v16 = vadd.f32 %v2501_v27, %v950_v6  ;;  %v952_v23 = vpop.f32.mrb[23].mxu0 }
 0x166   :  { %v1592_v20 = vadd.f32 %v2503_v28, %v1063_v11  ;;  %v1065_v24 = vpop.f32.mrb[23].mxu1  ;;  %v2136_v25 = vpack.c.bf16 %v1585_v19, %v1584_v14  ;;  %v1591_v31 = vadd.f32 %v2505_v29, %v952_v23 }
 0x167   :  { %v2137_v26 = vpack.c.bf16 %v1587_v51, %v1586_v15  ;;  %v1593_v32 = vadd.f32 %v2507_v30, %v1065_v24 }
 0x168   :  { %1938 = vst [vmem:[%s2752_s3 + $0xf0] sm:$0xff] %v2136_v25  ;;  %v2139_v33 = vpack.c.bf16 %v1591_v31, %v1590_v16 }
 0x169   :  { %1939 = vst [vmem:[%s2752_s3 + $0xf8] sm:$0xff] %v2137_v26  ;;  %v2140_v34 = vpack.c.bf16 %v1593_v32, %v1592_v20 }
 0x16a   :  { %1941 = vst [vmem:[%s2752_s3 + $0x108] sm:$0xff] %v2139_v33  ;;  %v956_v35 = vpop.f32.mrb[24].mxu0 }
 0x16b   :  { %1942 = vst [vmem:[%s2752_s3 + $0x110] sm:$0xff] %v2140_v34  ;;  %v1069_v36 = vpop.f32.mrb[24].mxu1  ;;  %v1596_v37 = vadd.f32 %v2501_v27, %v956_v35  ;;  %v958_v39 = vpop.f32.mrb[25].mxu0 }
 0x16c   :  { %v1598_v38 = vadd.f32 %v2503_v28, %v1069_v36  ;;  %v1071_v40 = vpop.f32.mrb[25].mxu1  ;;  %v1597_v41 = vadd.f32 %v2505_v29, %v958_v39  ;;  %v960_v43 = vpop.f32.mrb[26].mxu0 }
 0x16d   :  { %v1599_v42 = vadd.f32 %v2507_v30, %v1071_v40  ;;  %v1073_v44 = vpop.f32.mrb[26].mxu1  ;;  %v1602_v45 = vadd.f32 %v2501_v27, %v960_v43  ;;  %v962_v47 = vpop.f32.mrb[27].mxu0 }
 0x16e   :  { %v1604_v46 = vadd.f32 %v2503_v28, %v1073_v44  ;;  %v1075_v48 = vpop.f32.mrb[27].mxu1  ;;  %v2142_v49 = vpack.c.bf16 %v1597_v41, %v1596_v37  ;;  %v1603_v52 = vadd.f32 %v2505_v29, %v962_v47 }
 0x16f   :  { %v2143_v50 = vpack.c.bf16 %v1599_v42, %v1598_v38  ;;  %v1605_v53 = vadd.f32 %v2507_v30, %v1075_v48 }
 0x170   :  { %1944 = vst [vmem:[%s2752_s3 + $0x120] sm:$0xff] %v2142_v49  ;;  %v2145_v54 = vpack.c.bf16 %v1603_v52, %v1602_v45 }
 0x171   :  { %1945 = vst [vmem:[%s2752_s3 + $0x128] sm:$0xff] %v2143_v50  ;;  %v2146_v55 = vpack.c.bf16 %v1605_v53, %v1604_v46 }
 0x172   :  { %1947 = vst [vmem:[%s2752_s3 + $0x138] sm:$0xff] %v2145_v54  ;;  %v966_v56 = vpop.f32.mrb[28].mxu0 }
 0x173   :  { %1948 = vst [vmem:[%s2752_s3 + $0x140] sm:$0xff] %v2146_v55  ;;  %v1079_v57 = vpop.f32.mrb[28].mxu1  ;;  %v1608_v58 = vadd.f32 %v2501_v27, %v966_v56  ;;  %v968_v60 = vpop.f32.mrb[29].mxu0 }
 0x174   :  { %v1610_v59 = vadd.f32 %v2503_v28, %v1079_v57  ;;  %v1081_v61 = vpop.f32.mrb[29].mxu1  ;;  %v1609_v62 = vadd.f32 %v2505_v29, %v968_v60  ;;  %v970_v0 = vpop.f32.mrb[30].mxu0 }
 0x175   :  { %v1611_v63 = vadd.f32 %v2507_v30, %v1081_v61  ;;  %v1083_v1 = vpop.f32.mrb[30].mxu1  ;;  %v1614_v2 = vadd.f32 %v2501_v27, %v970_v0  ;;  %v972_v4 = vpop.f32.mrb[31].mxu0 }
 0x176   :  { %v1616_v3 = vadd.f32 %v2503_v28, %v1083_v1  ;;  %v1085_v5 = vpop.f32.mrb[31].mxu1  ;;  %v2148_v7 = vpack.c.bf16 %v1609_v62, %v1608_v58  ;;  %v1615_v9 = vadd.f32 %v2505_v29, %v972_v4 }
 0x177   :  { %v2149_v8 = vpack.c.bf16 %v1611_v63, %v1610_v59  ;;  %v1617_v10 = vadd.f32 %v2507_v30, %v1085_v5 }
 0x178   :  { %1950 = vst [vmem:[%s2752_s3 + $0x150] sm:$0xff] %v2148_v7  ;;  %v2151_v12 = vpack.c.bf16 %v1615_v9, %v1614_v2 }
 0x179   :  { %1951 = vst [vmem:[%s2752_s3 + $0x158] sm:$0xff] %v2149_v8  ;;  %v2152_v27 = vpack.c.bf16 %v1617_v10, %v1616_v3 }
 0x17a   :  { %1953 = vst [vmem:[%s2752_s3 + $0x168] sm:$0xff] %v2151_v12  ;;  %v1122_v28 = vpop.f32.mrb[32].mxu0 }
 0x17b   :  { %1954 = vst [vmem:[%s2752_s3 + $0x170] sm:$0xff] %v2152_v27  ;;  %v1162_v29 = vpop.f32.mrb[32].mxu1  ;;  %v1528_v30 = vadd.f32 %v2497_v22, %v1122_v28  ;;  %v1124_v14 = vpop.f32.mrb[33].mxu0 }
 0x17c   :  { %v1576_v13 = vadd.f32 %v2497_v22, %v1162_v29  ;;  %v1164_v15 = vpop.f32.mrb[33].mxu1  ;;  %v1529_v17 = vadd.f32 %v2499_v21, %v1124_v14  ;;  %v1126_v19 = vpop.f32.mrb[34].mxu0 }
 0x17d   :  { %v1577_v18 = vadd.f32 %v2499_v21, %v1164_v15  ;;  %v1166_v51 = vpop.f32.mrb[34].mxu1  ;;  %v1534_v6 = vadd.f32 %v2497_v22, %v1126_v19  ;;  %v1128_v16 = vpop.f32.mrb[35].mxu0 }
 0x17e   :  { %v1582_v11 = vadd.f32 %v2497_v22, %v1166_v51  ;;  %v1168_v20 = vpop.f32.mrb[35].mxu1  ;;  %v2108_v23 = vpack.c.bf16 %v1529_v17, %v1528_v30  ;;  %v1535_v25 = vadd.f32 %v2499_v21, %v1128_v16 }
 0x17f   :  { %v2132_v24 = vpack.c.bf16 %v1577_v18, %v1576_v13  ;;  %v1583_v26 = vadd.f32 %v2499_v21, %v1168_v20 }
 0x180   :  { %1910 = vst [vmem:[%s2752_s3 + $0x10] sm:$0xff] %v2108_v23  ;;  %v2111_v31 = vpack.c.bf16 %v1535_v25, %v1534_v6 }
 0x181   :  { %1934 = vst [vmem:[%s2752_s3 + $0xd0] sm:$0xff] %v2132_v24  ;;  %v2135_v32 = vpack.c.bf16 %v1583_v26, %v1582_v11 }
 0x182   :  { %1913 = vst [vmem:[%s2752_s3 + $0x28] sm:$0xff] %v2111_v31  ;;  %v1132_v33 = vpop.f32.mrb[36].mxu0 }
 0x183   :  { %1937 = vst [vmem:[%s2752_s3 + $0xe8] sm:$0xff] %v2135_v32  ;;  %v1172_v34 = vpop.f32.mrb[36].mxu1  ;;  %v1540_v35 = vadd.f32 %v2497_v22, %v1132_v33  ;;  %v1134_v37 = vpop.f32.mrb[37].mxu0 }
 0x184   :  { %v1588_v36 = vadd.f32 %v2497_v22, %v1172_v34  ;;  %v1174_v38 = vpop.f32.mrb[37].mxu1  ;;  %v1541_v39 = vadd.f32 %v2499_v21, %v1134_v37  ;;  %v1136_v41 = vpop.f32.mrb[38].mxu0 }
 0x185   :  { %v1589_v40 = vadd.f32 %v2499_v21, %v1174_v38  ;;  %v1176_v42 = vpop.f32.mrb[38].mxu1  ;;  %v1546_v43 = vadd.f32 %v2497_v22, %v1136_v41  ;;  %v1138_v45 = vpop.f32.mrb[39].mxu0 }
 0x186   :  { %v1594_v44 = vadd.f32 %v2497_v22, %v1176_v42  ;;  %v1178_v46 = vpop.f32.mrb[39].mxu1  ;;  %v2114_v47 = vpack.c.bf16 %v1541_v39, %v1540_v35  ;;  %v1547_v49 = vadd.f32 %v2499_v21, %v1138_v45 }
 0x187   :  { %v2138_v48 = vpack.c.bf16 %v1589_v40, %v1588_v36  ;;  %v1595_v50 = vadd.f32 %v2499_v21, %v1178_v46 }
 0x188   :  { %1916 = vst [vmem:[%s2752_s3 + $0x40] sm:$0xff] %v2114_v47  ;;  %v2117_v52 = vpack.c.bf16 %v1547_v49, %v1546_v43 }
 0x189   :  { %1940 = vst [vmem:[%s2752_s3 + $0x100] sm:$0xff] %v2138_v48  ;;  %v2141_v53 = vpack.c.bf16 %v1595_v50, %v1594_v44 }
 0x18a   :  { %1919 = vst [vmem:[%s2752_s3 + $0x58] sm:$0xff] %v2117_v52  ;;  %v1142_v54 = vpop.f32.mrb[40].mxu0 }
 0x18b   :  { %1943 = vst [vmem:[%s2752_s3 + $0x118] sm:$0xff] %v2141_v53  ;;  %v1182_v55 = vpop.f32.mrb[40].mxu1  ;;  %v1552_v56 = vadd.f32 %v2497_v22, %v1142_v54  ;;  %v1144_v58 = vpop.f32.mrb[41].mxu0 }
 0x18c   :  { %v1600_v57 = vadd.f32 %v2497_v22, %v1182_v55  ;;  %v1184_v59 = vpop.f32.mrb[41].mxu1  ;;  %v1553_v60 = vadd.f32 %v2499_v21, %v1144_v58  ;;  %v1146_v62 = vpop.f32.mrb[42].mxu0 }
 0x18d   :  { %v1601_v61 = vadd.f32 %v2499_v21, %v1184_v59  ;;  %v1186_v63 = vpop.f32.mrb[42].mxu1  ;;  %v1558_v0 = vadd.f32 %v2497_v22, %v1146_v62  ;;  %v1148_v2 = vpop.f32.mrb[43].mxu0 }
 0x18e   :  { %v1606_v1 = vadd.f32 %v2497_v22, %v1186_v63  ;;  %v1188_v3 = vpop.f32.mrb[43].mxu1  ;;  %v2120_v4 = vpack.c.bf16 %v1553_v60, %v1552_v56  ;;  %v1559_v7 = vadd.f32 %v2499_v21, %v1148_v2 }
 0x18f   :  { %v2144_v5 = vpack.c.bf16 %v1601_v61, %v1600_v57  ;;  %v1607_v8 = vadd.f32 %v2499_v21, %v1188_v3 }
 0x190   :  { %1922 = vst [vmem:[%s2752_s3 + $0x70] sm:$0xff] %v2120_v4  ;;  %v2123_v9 = vpack.c.bf16 %v1559_v7, %v1558_v0 }
 0x191   :  { %1946 = vst [vmem:[%s2752_s3 + $0x130] sm:$0xff] %v2144_v5  ;;  %v2147_v10 = vpack.c.bf16 %v1607_v8, %v1606_v1 }
 0x192   :  { %1925 = vst [vmem:[%s2752_s3 + $0x88] sm:$0xff] %v2123_v9  ;;  %v1152_v12 = vpop.f32.mrb[44].mxu0 }
 0x193   :  { %1949 = vst [vmem:[%s2752_s3 + $0x148] sm:$0xff] %v2147_v10  ;;  %v1192_v27 = vpop.f32.mrb[44].mxu1  ;;  %v1564_v28 = vadd.f32 %v2497_v22, %v1152_v12  ;;  %v1154_v30 = vpop.f32.mrb[45].mxu0 }
 0x194   :  { %v1612_v29 = vadd.f32 %v2497_v22, %v1192_v27  ;;  %v1194_v13 = vpop.f32.mrb[45].mxu1  ;;  %v1565_v14 = vadd.f32 %v2499_v21, %v1154_v30  ;;  %v1156_v17 = vpop.f32.mrb[46].mxu0 }
 0x195   :  { %v1613_v15 = vadd.f32 %v2499_v21, %v1194_v13  ;;  %v1196_v18 = vpop.f32.mrb[46].mxu1  ;;  %v1570_v19 = vadd.f32 %v2497_v22, %v1156_v17  ;;  %v1158_v6 = vpop.f32.mrb[47].mxu0 }
 0x196   :  { %v1618_v51 = vadd.f32 %v2497_v22, %v1196_v18  ;;  %v1198_v11 = vpop.f32.mrb[47].mxu1  ;;  %v2126_v16 = vpack.c.bf16 %v1565_v14, %v1564_v28  ;;  %v1571_v23 = vadd.f32 %v2499_v21, %v1158_v6 }
 0x197   :  { %v2150_v20 = vpack.c.bf16 %v1613_v15, %v1612_v29  ;;  %v1619_v24 = vadd.f32 %v2499_v21, %v1198_v11 }
 0x198   :  { %1928 = vst [vmem:[%s2752_s3 + $0xa0] sm:$0xff] %v2126_v16  ;;  %v2129_v25 = vpack.c.bf16 %v1571_v23, %v1570_v19 }
 0x199   :  { %1952 = vst [vmem:[%s2752_s3 + $0x160] sm:$0xff] %v2150_v20  ;;  %v2153_v26 = vpack.c.bf16 %v1619_v24, %v1618_v51 }
 0x19a   :  { %1931 = vst [vmem:[%s2752_s3 + $0xb8] sm:$0xff] %v2129_v25 }
 0x19b   :  { %1955 = vst [vmem:[%s2752_s3 + $0x178] sm:$0xff] %v2153_v26 }
 0x19c   :  { %1960 = vsyncpa [#allocation4], 1 }
 0x19d   :  { %1961 = vsyncpa [#allocation6], 1 }

</bundles_post_ra>
